<compile_context>
chip_gen: v5e
topology: v5e:2x2
jax: 0.10.0
libtpu: 0.0.40
codegen_flags: <defaults>
</compile_context>

<pallas_src>
import jax
import jax.numpy as jnp
from jax.experimental import pallas as pl
from jax.experimental.pallas import tpu as pltpu


# ------------------------------- constants ---------------------------------

MLP_IN = 9
EMB_IN = 10
IN_CAT = MLP_IN + EMB_IN          # 19 (mlp_x | emb_x concatenated)
HID = 400                          # base / em_base output width
GATE_HID = 256
MOD_HID = 256
OUT_DIM = 8
FUSED_W = 1024                     # fused first-layer output width
EM_OFF = 512                       # em half starts at a 128-aligned lane


# ----------------------------- kernel helpers ------------------------------

def _relu(v):
    return jnp.maximum(v, 0.0)


def _lin(x, w_ref, b_ref):
    # bf16 MXU operands, f32 accumulation, f32 bias add.
    return jnp.dot(x.astype(jnp.bfloat16), w_ref[...],
                   preferred_element_type=jnp.float32) + b_ref[...]


def _softmax2(x0, x1):
    # 2-class softmax via the sigmoid identity: p0 = sigmoid(x0 - x1).
    w0 = pl.reciprocal(1.0 + jnp.exp(x1 - x0), approx=True)
    return w0, 1.0 - w0


# --------------------------------- kernel ----------------------------------

def soft_module_kernel(
    x_ref,                          # (TB, 19)  = [mlp_x | emb_x]
    wfused, bfused,                 # fused base-fc0 / em-fc: (19,1024),(1,1024)
    wb1, bb1,                       # base fc1: 400 -> 400
    wg0, bg0, wg1, bg1,             # gating fcs: 400 -> 256 -> 256
    wgw0, bgw0,                     # gating_weight_fc_0: 256 -> 4
    wgcl, bgcl,                     # gating_weight_cond_last: 4 -> 256 (VPU)
    wgl, bgl,                       # gating_weight_last: 256 -> 2
    wm0, bm0,                       # fused layer-0 modules: 400 -> 512
    wm10, bm10, wm11, bm11,         # layer-1 modules: 256 -> 256 (x2)
    wlast, blast,                   # head: 256 -> 8
    out_ref,                        # (TB, 8)
):
    x = x_ref[...]

    # Fused first layer: base fc0 result in lanes [0:400], em fc in [512:912].
    fused = _lin(x, wfused, bfused)                 # (TB, 1024)
    h = _relu(fused[:, 0:HID])                      # relu(base.fc0(mlp_x))
    em_out = fused[:, EM_OFF:EM_OFF + HID]          # em_base(emb_x), null act
    base_out = _lin(h, wb1, bb1)                    # base output (TB, 400)

    # cond_ob=True: embedding = embedding * out
    embedding = em_out * base_out
    out = _relu(base_out)

    # gating fcs: relu -> fc0 -> relu -> fc1 (no activation after last)
    embedding = _relu(embedding)
    embedding = _relu(_lin(embedding, wg0, bg0))
    embedding = _lin(embedding, wg1, bg1)           # (TB, 256)

    # raw_weight = gating_weight_fc_0(relu(embedding)) -> (TB, 2*2)
    raw_w = _lin(_relu(embedding), wgw0, bgw0)
    w00, w01 = _softmax2(raw_w[:, 0:1], raw_w[:, 1:2])   # weights[0][...,0,:]
    w10, w11 = _softmax2(raw_w[:, 2:3], raw_w[:, 3:4])   # weights[0][...,1,:]

    # num_layers - 2 == 0 => no intermediate gating_weight_(cond_)fcs.

    # gating_weight_cond_last on flattened softmax weights: K=4 dot done as
    # VPU broadcast-FMAs instead of an almost-empty MXU push.
    wc = wgcl[...]
    cond = (w00 * wc[0:1, :] + w01 * wc[1:2, :]
            + w10 * wc[2:3, :] + w11 * wc[3:4, :] + bgcl[...])
    cond = _relu(cond * embedding)
    raw_last = _lin(cond, wgl, bgl)                 # (TB, 2)
    lw0, lw1 = _softmax2(raw_last[:, 0:1], raw_last[:, 1:2])

    # layer-0 modules fused into one (400, 512) matmul; slice 128-aligned halves
    m01 = _lin(out, wm0, bm0)                       # (TB, 512)
    m0 = m01[:, 0:MOD_HID]
    m1 = m01[:, MOD_HID:2 * MOD_HID]

    # layer-1 modules: gated mixtures of layer-0 outputs
    in0 = _relu(m0 * w00 + m1 * w01)
    in1 = _relu(m0 * w10 + m1 * w11)
    o0 = _lin(in0, wm10, bm10)
    o1 = _lin(in1, wm11, bm11)

    # final gated sum + last linear head
    final = _relu(o0 * lw0 + o1 * lw1)
    out_ref[...] = _lin(final, wlast, blast)        # (TB, 8)


# ------------------------------ params / init -------------------------------

PARAM_SHAPES = {
    "wb0": (9, 400),    "bb0": (1, 400),
    "wb1": (400, 400),  "bb1": (1, 400),
    "we0": (10, 400),   "be0": (1, 400),
    "wg0": (400, 256),  "bg0": (1, 256),
    "wg1": (256, 256),  "bg1": (1, 256),
    "wgw0": (256, 4),   "bgw0": (1, 4),
    "wgcl": (4, 256),   "bgcl": (1, 256),
    "wgl": (256, 2),    "bgl": (1, 2),
    "wm00": (400, 256), "bm00": (1, 256),
    "wm01": (400, 256), "bm01": (1, 256),
    "wm10": (256, 256), "bm10": (1, 256),
    "wm11": (256, 256), "bm11": (1, 256),
    "wlast": (256, 8),  "blast": (1, 8),
}
PARAM_ORDER = list(PARAM_SHAPES.keys())


def init_params(key):
    params = {}
    keys = jax.random.split(key, len(PARAM_ORDER))
    for name, k in zip(PARAM_ORDER, keys):
        params[name] = (0.05 * jax.random.normal(k, PARAM_SHAPES[name])).astype(jnp.float32)
    return params


def _prep_kernel_weights(params):
    """Build the fused / dtype-cast weight set the kernel consumes."""
    f32, bf16 = jnp.float32, jnp.bfloat16

    # Block-diagonal fusion of base.fc0 (9->400) and em_base.fc0 (10->400),
    # halves placed at 128-aligned lane offsets 0 and 512.
    wfused = jnp.zeros((IN_CAT, FUSED_W), f32)
    wfused = wfused.at[0:MLP_IN, 0:HID].set(params["wb0"])
    wfused = wfused.at[MLP_IN:IN_CAT, EM_OFF:EM_OFF + HID].set(params["we0"])
    bfused = jnp.zeros((1, FUSED_W), f32)
    bfused = bfused.at[:, 0:HID].set(params["bb0"])
    bfused = bfused.at[:, EM_OFF:EM_OFF + HID].set(params["be0"])

    # Fuse the two layer-0 module matmuls into a single (400, 512) weight.
    wm0 = jnp.concatenate([params["wm00"], params["wm01"]], axis=-1)
    bm0 = jnp.concatenate([params["bm00"], params["bm01"]], axis=-1)

    return [
        wfused.astype(bf16), bfused,
        params["wb1"].astype(bf16), params["bb1"],
        params["wg0"].astype(bf16), params["bg0"],
        params["wg1"].astype(bf16), params["bg1"],
        params["wgw0"].astype(bf16), params["bgw0"],
        params["wgcl"].astype(f32), params["bgcl"],   # stays on the VPU -> f32
        params["wgl"].astype(bf16), params["bgl"],
        wm0.astype(bf16), bm0,
        params["wm10"].astype(bf16), params["bm10"],
        params["wm11"].astype(bf16), params["bm11"],
        params["wlast"].astype(bf16), params["blast"],
    ]


def _round_up(x, m):
    return (x + m - 1) // m * m


# --------------------------------- wrapper ----------------------------------

def soft_module_forward(emb_x, mlp_x, params, *, block_b=128):
    """emb_x: (B, 10) hypernet input (x); mlp_x: (B, 9) mlp input."""
    B = emb_x.shape[0]
    TB = min(block_b, _round_up(max(B, 1), 8))   # batch tile (multiple of 8)
    Bp = _round_up(B, TB)

    x_cat = jnp.concatenate(
        [mlp_x.astype(jnp.float32), emb_x.astype(jnp.float32)], axis=-1)
    if Bp != B:
        x_cat = jnp.pad(x_cat, ((0, Bp - B), (0, 0)))

    weights = _prep_kernel_weights(params)

    in_specs = [pl.BlockSpec((TB, IN_CAT), lambda i: (i, 0))]
    # Weights: full-shape blocks with a constant index_map -> resident in VMEM,
    # only the activation tiles are re-DMA'd per grid step.
    in_specs += [pl.BlockSpec(w.shape, lambda i: (0, 0)) for w in weights]

    out = pl.pallas_call(
        soft_module_kernel,
        out_shape=jax.ShapeDtypeStruct((Bp, OUT_DIM), jnp.float32),
        grid=(Bp // TB,),
        in_specs=in_specs,
        out_specs=pl.BlockSpec((TB, OUT_DIM), lambda i: (i, 0)),
        compiler_params=pltpu.CompilerParams(
            dimension_semantics=("parallel",),   # shard batch across TCs
            vmem_limit_bytes=48 << 20,
        ),
    )(x_cat, *weights)
    return out[:B]


# ------------------------- plain-JAX reference check ------------------------

def reference_forward(emb_x, mlp_x, p):
    dot = lambda a, b: jnp.dot(a, b, precision=jax.lax.Precision.HIGHEST)
    lin = lambda x, w, b: dot(x, p[w]) + p[b]
    relu = lambda v: jnp.maximum(v, 0.0)

    h = relu(lin(mlp_x, "wb0", "bb0"))
    base_out = lin(h, "wb1", "bb1")
    em_out = lin(emb_x, "we0", "be0")
    embedding = em_out * base_out
    out = relu(base_out)
    embedding = relu(embedding)
    embedding = relu(lin(embedding, "wg0", "bg0"))
    embedding = lin(embedding, "wg1", "bg1")

    raw_weight = lin(relu(embedding), "wgw0", "bgw0")
    sw = jax.nn.softmax(raw_weight.reshape(-1, 2, 2), axis=-1)
    flat = sw.reshape(-1, 4)
    cond = dot(flat, p["wgcl"]) + p["bgcl"]
    cond = relu(cond * embedding)
    last_w = jax.nn.softmax(dot(cond, p["wgl"]) + p["bgl"], axis=-1)

    m0 = lin(out, "wm00", "bm00")
    m1 = lin(out, "wm01", "bm01")
    mods = jnp.stack([m0, m1], axis=-2)                       # (B, 2, 256)
    new_mods = []
    for j, (wk, bk) in enumerate([("wm10", "bm10"), ("wm11", "bm11")]):
        mi = relu(jnp.sum(mods * sw[:, j, :, None], axis=-2))
        new_mods.append(dot(mi, p[wk]) + p[bk])
    mods = jnp.stack(new_mods, axis=-2)                       # (B, 2, 256)
    final = relu(jnp.sum(mods * last_w[..., None], axis=-2))
    return dot(final, p["wlast"]) + p["blast"]


# ----------------------------------- main -----------------------------------

if __name__ == "__main__":
    key = jax.random.PRNGKey(0)
    k_p, k_emb, k_mlp = jax.random.split(key, 3)

    params = init_params(k_p)

    # Small latency-bound case (B=2) and a multi-tile case exercising the grid
    # and tail padding. Tolerance covers bf16 MXU operands (f32 accumulation).
    for B in (2, 300):
        ke, km = jax.random.split(jax.random.fold_in(key, B), 2)
        emb_x = jax.random.normal(ke, (B, EMB_IN), jnp.float32)   # x
        mlp_x = jax.random.normal(km, (B, MLP_IN), jnp.float32)   # mlp_x

        out = jax.block_until_ready(soft_module_forward(emb_x, mlp_x, params))
        ref = jax.block_until_ready(reference_forward(emb_x, mlp_x, params))

        assert out.shape == (B, OUT_DIM)
        assert bool(jnp.all(jnp.isfinite(out)))
        max_diff = float(jnp.max(jnp.abs(out - ref)))
        assert bool(jnp.allclose(out, ref, rtol=5e-2, atol=5e-3)), (
            f"B={B}: max abs diff {max_diff}"
        )

    print("KERNEL_OK")
</pallas_src>

<mosaic_0001>
module attributes {stable_mosaic.version = 11 : i64} {
  func.func @soft_module_kernel(%arg0: i32, %arg1: memref<8x19xf32, #tpu.memory_space<vmem>>, %arg2: memref<19x1024xbf16, #tpu.memory_space<vmem>>, %arg3: memref<1x1024xf32, #tpu.memory_space<vmem>>, %arg4: memref<400x400xbf16, #tpu.memory_space<vmem>>, %arg5: memref<1x400xf32, #tpu.memory_space<vmem>>, %arg6: memref<400x256xbf16, #tpu.memory_space<vmem>>, %arg7: memref<1x256xf32, #tpu.memory_space<vmem>>, %arg8: memref<256x256xbf16, #tpu.memory_space<vmem>>, %arg9: memref<1x256xf32, #tpu.memory_space<vmem>>, %arg10: memref<256x4xbf16, #tpu.memory_space<vmem>>, %arg11: memref<1x4xf32, #tpu.memory_space<vmem>>, %arg12: memref<4x256xf32, #tpu.memory_space<vmem>>, %arg13: memref<1x256xf32, #tpu.memory_space<vmem>>, %arg14: memref<256x2xbf16, #tpu.memory_space<vmem>>, %arg15: memref<1x2xf32, #tpu.memory_space<vmem>>, %arg16: memref<400x512xbf16, #tpu.memory_space<vmem>>, %arg17: memref<1x512xf32, #tpu.memory_space<vmem>>, %arg18: memref<256x256xbf16, #tpu.memory_space<vmem>>, %arg19: memref<1x256xf32, #tpu.memory_space<vmem>>, %arg20: memref<256x256xbf16, #tpu.memory_space<vmem>>, %arg21: memref<1x256xf32, #tpu.memory_space<vmem>>, %arg22: memref<256x8xbf16, #tpu.memory_space<vmem>>, %arg23: memref<1x8xf32, #tpu.memory_space<vmem>>, %arg24: memref<8x8xf32, #tpu.memory_space<vmem>>) attributes {dimension_semantics = [#tpu.dimension_semantics<parallel>], iteration_bounds = array<i64: 1>, scalar_prefetch = 0 : i64, scratch_operands = 0 : i64, tpu.core_type = #tpu.core_type<tc>, window_params = [{transform_indices = @transform_0, window_bounds = array<i64: 8, 19>}, {pipeline_mode = #tpu.pipeline_mode<synchronous>, transform_indices = @transform_1, window_bounds = array<i64: 19, 1024>}, {pipeline_mode = #tpu.pipeline_mode<synchronous>, transform_indices = @transform_2, window_bounds = array<i64: 1, 1024>}, {pipeline_mode = #tpu.pipeline_mode<synchronous>, transform_indices = @transform_3, window_bounds = array<i64: 400, 400>}, {pipeline_mode = #tpu.pipeline_mode<synchronous>, transform_indices = @transform_4, window_bounds = array<i64: 1, 400>}, {pipeline_mode = #tpu.pipeline_mode<synchronous>, transform_indices = @transform_5, window_bounds = array<i64: 400, 256>}, {pipeline_mode = #tpu.pipeline_mode<synchronous>, transform_indices = @transform_6, window_bounds = array<i64: 1, 256>}, {pipeline_mode = #tpu.pipeline_mode<synchronous>, transform_indices = @transform_7, window_bounds = array<i64: 256, 256>}, {pipeline_mode = #tpu.pipeline_mode<synchronous>, transform_indices = @transform_8, window_bounds = array<i64: 1, 256>}, {pipeline_mode = #tpu.pipeline_mode<synchronous>, transform_indices = @transform_9, window_bounds = array<i64: 256, 4>}, {pipeline_mode = #tpu.pipeline_mode<synchronous>, transform_indices = @transform_10, window_bounds = array<i64: 1, 4>}, {pipeline_mode = #tpu.pipeline_mode<synchronous>, transform_indices = @transform_11, window_bounds = array<i64: 4, 256>}, {pipeline_mode = #tpu.pipeline_mode<synchronous>, transform_indices = @transform_12, window_bounds = array<i64: 1, 256>}, {pipeline_mode = #tpu.pipeline_mode<synchronous>, transform_indices = @transform_13, window_bounds = array<i64: 256, 2>}, {pipeline_mode = #tpu.pipeline_mode<synchronous>, transform_indices = @transform_14, window_bounds = array<i64: 1, 2>}, {pipeline_mode = #tpu.pipeline_mode<synchronous>, transform_indices = @transform_15, window_bounds = array<i64: 400, 512>}, {pipeline_mode = #tpu.pipeline_mode<synchronous>, transform_indices = @transform_16, window_bounds = array<i64: 1, 512>}, {pipeline_mode = #tpu.pipeline_mode<synchronous>, transform_indices = @transform_17, window_bounds = array<i64: 256, 256>}, {pipeline_mode = #tpu.pipeline_mode<synchronous>, transform_indices = @transform_18, window_bounds = array<i64: 1, 256>}, {pipeline_mode = #tpu.pipeline_mode<synchronous>, transform_indices = @transform_19, window_bounds = array<i64: 256, 256>}, {pipeline_mode = #tpu.pipeline_mode<synchronous>, transform_indices = @transform_20, window_bounds = array<i64: 1, 256>}, {pipeline_mode = #tpu.pipeline_mode<synchronous>, transform_indices = @transform_21, window_bounds = array<i64: 256, 8>}, {pipeline_mode = #tpu.pipeline_mode<synchronous>, transform_indices = @transform_22, window_bounds = array<i64: 1, 8>}, {transform_indices = @transform_23, window_bounds = array<i64: 8, 8>}]} {
    %c0 = arith.constant 0 : index
    %c0_0 = arith.constant 0 : index
    %0 = vector.load %arg1[%c0, %c0_0] : memref<8x19xf32, #tpu.memory_space<vmem>>, vector<8x19xf32>
    %1 = arith.truncf %0 : vector<8x19xf32> to vector<8x19xbf16>
    %c0_1 = arith.constant 0 : index
    %c0_2 = arith.constant 0 : index
    %2 = vector.load %arg2[%c0_1, %c0_2] : memref<19x1024xbf16, #tpu.memory_space<vmem>>, vector<19x1024xbf16>
    %cst = arith.constant dense<0.000000e+00> : vector<8x1024xf32>
    %3 = tpu.matmul %1, %2, %cst {dimension_numbers = #tpu.dot_dimension_numbers<[1], [0], [0], [1], [0, 0, 1, 1], [], []>} : vector<8x19xbf16>, vector<19x1024xbf16>, vector<8x1024xf32> -> vector<8x1024xf32>
    %c0_3 = arith.constant 0 : index
    %c0_4 = arith.constant 0 : index
    %4 = vector.load %arg3[%c0_3, %c0_4] : memref<1x1024xf32, #tpu.memory_space<vmem>>, vector<1x1024xf32>
    %5 = vector.broadcast %4 : vector<1x1024xf32> to vector<8x1024xf32>
    %6 = arith.addf %3, %5 : vector<8x1024xf32>
    %7 = vector.extract_strided_slice %6 {offsets = [0, 0], sizes = [8, 400], strides = [1, 1]} : vector<8x1024xf32> to vector<8x400xf32>
    %cst_5 = arith.constant 0.000000e+00 : f32
    %8 = vector.broadcast %cst_5 : f32 to vector<8x400xf32>
    %9 = arith.maximumf %7, %8 : vector<8x400xf32>
    %10 = vector.extract_strided_slice %6 {offsets = [0, 512], sizes = [8, 400], strides = [1, 1]} : vector<8x1024xf32> to vector<8x400xf32>
    %11 = arith.truncf %9 : vector<8x400xf32> to vector<8x400xbf16>
    %c0_6 = arith.constant 0 : index
    %c0_7 = arith.constant 0 : index
    %12 = vector.load %arg4[%c0_6, %c0_7] : memref<400x400xbf16, #tpu.memory_space<vmem>>, vector<400x400xbf16>
    %cst_8 = arith.constant dense<0.000000e+00> : vector<8x400xf32>
    %13 = tpu.matmul %11, %12, %cst_8 {dimension_numbers = #tpu.dot_dimension_numbers<[1], [0], [0], [1], [0, 0, 1, 1], [], []>} : vector<8x400xbf16>, vector<400x400xbf16>, vector<8x400xf32> -> vector<8x400xf32>
    %c0_9 = arith.constant 0 : index
    %c0_10 = arith.constant 0 : index
    %14 = vector.load %arg5[%c0_9, %c0_10] : memref<1x400xf32, #tpu.memory_space<vmem>>, vector<1x400xf32>
    %15 = vector.broadcast %14 : vector<1x400xf32> to vector<8x400xf32>
    %16 = arith.addf %13, %15 : vector<8x400xf32>
    %17 = arith.mulf %10, %16 : vector<8x400xf32>
    %cst_11 = arith.constant 0.000000e+00 : f32
    %18 = vector.broadcast %cst_11 : f32 to vector<8x400xf32>
    %19 = arith.maximumf %16, %18 : vector<8x400xf32>
    %cst_12 = arith.constant 0.000000e+00 : f32
    %20 = vector.broadcast %cst_12 : f32 to vector<8x400xf32>
    %21 = arith.maximumf %17, %20 : vector<8x400xf32>
    %22 = arith.truncf %21 : vector<8x400xf32> to vector<8x400xbf16>
    %c0_13 = arith.constant 0 : index
    %c0_14 = arith.constant 0 : index
    %23 = vector.load %arg6[%c0_13, %c0_14] : memref<400x256xbf16, #tpu.memory_space<vmem>>, vector<400x256xbf16>
    %cst_15 = arith.constant dense<0.000000e+00> : vector<8x256xf32>
    %24 = tpu.matmul %22, %23, %cst_15 {dimension_numbers = #tpu.dot_dimension_numbers<[1], [0], [0], [1], [0, 0, 1, 1], [], []>} : vector<8x400xbf16>, vector<400x256xbf16>, vector<8x256xf32> -> vector<8x256xf32>
    %c0_16 = arith.constant 0 : index
    %c0_17 = arith.constant 0 : index
    %25 = vector.load %arg7[%c0_16, %c0_17] : memref<1x256xf32, #tpu.memory_space<vmem>>, vector<1x256xf32>
    %26 = vector.broadcast %25 : vector<1x256xf32> to vector<8x256xf32>
    %27 = arith.addf %24, %26 : vector<8x256xf32>
    %cst_18 = arith.constant 0.000000e+00 : f32
    %28 = vector.broadcast %cst_18 : f32 to vector<8x256xf32>
    %29 = arith.maximumf %27, %28 : vector<8x256xf32>
    %30 = arith.truncf %29 : vector<8x256xf32> to vector<8x256xbf16>
    %c0_19 = arith.constant 0 : index
    %c0_20 = arith.constant 0 : index
    %31 = vector.load %arg8[%c0_19, %c0_20] : memref<256x256xbf16, #tpu.memory_space<vmem>>, vector<256x256xbf16>
    %cst_21 = arith.constant dense<0.000000e+00> : vector<8x256xf32>
    %32 = tpu.matmul %30, %31, %cst_21 {dimension_numbers = #tpu.dot_dimension_numbers<[1], [0], [0], [1], [0, 0, 1, 1], [], []>} : vector<8x256xbf16>, vector<256x256xbf16>, vector<8x256xf32> -> vector<8x256xf32>
    %c0_22 = arith.constant 0 : index
    %c0_23 = arith.constant 0 : index
    %33 = vector.load %arg9[%c0_22, %c0_23] : memref<1x256xf32, #tpu.memory_space<vmem>>, vector<1x256xf32>
    %34 = vector.broadcast %33 : vector<1x256xf32> to vector<8x256xf32>
    %35 = arith.addf %32, %34 : vector<8x256xf32>
    %cst_24 = arith.constant 0.000000e+00 : f32
    %36 = vector.broadcast %cst_24 : f32 to vector<8x256xf32>
    %37 = arith.maximumf %35, %36 : vector<8x256xf32>
    %38 = arith.truncf %37 : vector<8x256xf32> to vector<8x256xbf16>
    %c0_25 = arith.constant 0 : index
    %c0_26 = arith.constant 0 : index
    %39 = vector.load %arg10[%c0_25, %c0_26] : memref<256x4xbf16, #tpu.memory_space<vmem>>, vector<256x4xbf16>
    %cst_27 = arith.constant dense<0.000000e+00> : vector<8x4xf32>
    %40 = tpu.matmul %38, %39, %cst_27 {dimension_numbers = #tpu.dot_dimension_numbers<[1], [0], [0], [1], [0, 0, 1, 1], [], []>} : vector<8x256xbf16>, vector<256x4xbf16>, vector<8x4xf32> -> vector<8x4xf32>
    %c0_28 = arith.constant 0 : index
    %c0_29 = arith.constant 0 : index
    %41 = vector.load %arg11[%c0_28, %c0_29] : memref<1x4xf32, #tpu.memory_space<vmem>>, vector<1x4xf32>
    %42 = vector.broadcast %41 : vector<1x4xf32> to vector<8x4xf32>
    %43 = arith.addf %40, %42 : vector<8x4xf32>
    %44 = vector.extract_strided_slice %43 {offsets = [0, 0], sizes = [8, 1], strides = [1, 1]} : vector<8x4xf32> to vector<8x1xf32>
    %45 = vector.extract_strided_slice %43 {offsets = [0, 1], sizes = [8, 1], strides = [1, 1]} : vector<8x4xf32> to vector<8x1xf32>
    %46 = arith.subf %45, %44 : vector<8x1xf32>
    %47 = math.exp %46 : vector<8x1xf32>
    %cst_30 = arith.constant 1.000000e+00 : f32
    %48 = vector.broadcast %cst_30 : f32 to vector<8x1xf32>
    %49 = arith.addf %48, %47 : vector<8x1xf32>
    %50 = tpu.reciprocal %49 {approx = true} : vector<8x1xf32> -> vector<8x1xf32>
    %cst_31 = arith.constant 1.000000e+00 : f32
    %51 = vector.broadcast %cst_31 : f32 to vector<8x1xf32>
    %52 = arith.subf %51, %50 : vector<8x1xf32>
    %53 = vector.extract_strided_slice %43 {offsets = [0, 2], sizes = [8, 1], strides = [1, 1]} : vector<8x4xf32> to vector<8x1xf32>
    %54 = vector.extract_strided_slice %43 {offsets = [0, 3], sizes = [8, 1], strides = [1, 1]} : vector<8x4xf32> to vector<8x1xf32>
    %55 = arith.subf %54, %53 : vector<8x1xf32>
    %56 = math.exp %55 : vector<8x1xf32>
    %cst_32 = arith.constant 1.000000e+00 : f32
    %57 = vector.broadcast %cst_32 : f32 to vector<8x1xf32>
    %58 = arith.addf %57, %56 : vector<8x1xf32>
    %59 = tpu.reciprocal %58 {approx = true} : vector<8x1xf32> -> vector<8x1xf32>
    %cst_33 = arith.constant 1.000000e+00 : f32
    %60 = vector.broadcast %cst_33 : f32 to vector<8x1xf32>
    %61 = arith.subf %60, %59 : vector<8x1xf32>
    %c0_34 = arith.constant 0 : index
    %c0_35 = arith.constant 0 : index
    %62 = vector.load %arg12[%c0_34, %c0_35] : memref<4x256xf32, #tpu.memory_space<vmem>>, vector<4x256xf32>
    %63 = vector.extract_strided_slice %62 {offsets = [0, 0], sizes = [1, 256], strides = [1, 1]} : vector<4x256xf32> to vector<1x256xf32>
    %64 = vector.broadcast %50 : vector<8x1xf32> to vector<8x256xf32>
    %65 = vector.broadcast %63 : vector<1x256xf32> to vector<8x256xf32>
    %66 = arith.mulf %64, %65 : vector<8x256xf32>
    %67 = vector.extract_strided_slice %62 {offsets = [1, 0], sizes = [1, 256], strides = [1, 1]} : vector<4x256xf32> to vector<1x256xf32>
    %68 = vector.broadcast %52 : vector<8x1xf32> to vector<8x256xf32>
    %69 = vector.broadcast %67 : vector<1x256xf32> to vector<8x256xf32>
    %70 = arith.mulf %68, %69 : vector<8x256xf32>
    %71 = arith.addf %66, %70 : vector<8x256xf32>
    %72 = vector.extract_strided_slice %62 {offsets = [2, 0], sizes = [1, 256], strides = [1, 1]} : vector<4x256xf32> to vector<1x256xf32>
    %73 = vector.broadcast %59 : vector<8x1xf32> to vector<8x256xf32>
    %74 = vector.broadcast %72 : vector<1x256xf32> to vector<8x256xf32>
    %75 = arith.mulf %73, %74 : vector<8x256xf32>
    %76 = arith.addf %71, %75 : vector<8x256xf32>
    %77 = vector.extract_strided_slice %62 {offsets = [3, 0], sizes = [1, 256], strides = [1, 1]} : vector<4x256xf32> to vector<1x256xf32>
    %78 = vector.broadcast %61 : vector<8x1xf32> to vector<8x256xf32>
    %79 = vector.broadcast %77 : vector<1x256xf32> to vector<8x256xf32>
    %80 = arith.mulf %78, %79 : vector<8x256xf32>
    %81 = arith.addf %76, %80 : vector<8x256xf32>
    %c0_36 = arith.constant 0 : index
    %c0_37 = arith.constant 0 : index
    %82 = vector.load %arg13[%c0_36, %c0_37] : memref<1x256xf32, #tpu.memory_space<vmem>>, vector<1x256xf32>
    %83 = vector.broadcast %82 : vector<1x256xf32> to vector<8x256xf32>
    %84 = arith.addf %81, %83 : vector<8x256xf32>
    %85 = arith.mulf %84, %35 : vector<8x256xf32>
    %cst_38 = arith.constant 0.000000e+00 : f32
    %86 = vector.broadcast %cst_38 : f32 to vector<8x256xf32>
    %87 = arith.maximumf %85, %86 : vector<8x256xf32>
    %88 = arith.truncf %87 : vector<8x256xf32> to vector<8x256xbf16>
    %c0_39 = arith.constant 0 : index
    %c0_40 = arith.constant 0 : index
    %89 = vector.load %arg14[%c0_39, %c0_40] : memref<256x2xbf16, #tpu.memory_space<vmem>>, vector<256x2xbf16>
    %cst_41 = arith.constant dense<0.000000e+00> : vector<8x2xf32>
    %90 = tpu.matmul %88, %89, %cst_41 {dimension_numbers = #tpu.dot_dimension_numbers<[1], [0], [0], [1], [0, 0, 1, 1], [], []>} : vector<8x256xbf16>, vector<256x2xbf16>, vector<8x2xf32> -> vector<8x2xf32>
    %c0_42 = arith.constant 0 : index
    %c0_43 = arith.constant 0 : index
    %91 = vector.load %arg15[%c0_42, %c0_43] : memref<1x2xf32, #tpu.memory_space<vmem>>, vector<1x2xf32>
    %92 = vector.broadcast %91 : vector<1x2xf32> to vector<8x2xf32>
    %93 = arith.addf %90, %92 : vector<8x2xf32>
    %94 = vector.extract_strided_slice %93 {offsets = [0, 0], sizes = [8, 1], strides = [1, 1]} : vector<8x2xf32> to vector<8x1xf32>
    %95 = vector.extract_strided_slice %93 {offsets = [0, 1], sizes = [8, 1], strides = [1, 1]} : vector<8x2xf32> to vector<8x1xf32>
    %96 = arith.subf %95, %94 : vector<8x1xf32>
    %97 = math.exp %96 : vector<8x1xf32>
    %cst_44 = arith.constant 1.000000e+00 : f32
    %98 = vector.broadcast %cst_44 : f32 to vector<8x1xf32>
    %99 = arith.addf %98, %97 : vector<8x1xf32>
    %100 = tpu.reciprocal %99 {approx = true} : vector<8x1xf32> -> vector<8x1xf32>
    %cst_45 = arith.constant 1.000000e+00 : f32
    %101 = vector.broadcast %cst_45 : f32 to vector<8x1xf32>
    %102 = arith.subf %101, %100 : vector<8x1xf32>
    %103 = arith.truncf %19 : vector<8x400xf32> to vector<8x400xbf16>
    %c0_46 = arith.constant 0 : index
    %c0_47 = arith.constant 0 : index
    %104 = vector.load %arg16[%c0_46, %c0_47] : memref<400x512xbf16, #tpu.memory_space<vmem>>, vector<400x512xbf16>
    %cst_48 = arith.constant dense<0.000000e+00> : vector<8x512xf32>
    %105 = tpu.matmul %103, %104, %cst_48 {dimension_numbers = #tpu.dot_dimension_numbers<[1], [0], [0], [1], [0, 0, 1, 1], [], []>} : vector<8x400xbf16>, vector<400x512xbf16>, vector<8x512xf32> -> vector<8x512xf32>
    %c0_49 = arith.constant 0 : index
    %c0_50 = arith.constant 0 : index
    %106 = vector.load %arg17[%c0_49, %c0_50] : memref<1x512xf32, #tpu.memory_space<vmem>>, vector<1x512xf32>
    %107 = vector.broadcast %106 : vector<1x512xf32> to vector<8x512xf32>
    %108 = arith.addf %105, %107 : vector<8x512xf32>
    %109 = vector.extract_strided_slice %108 {offsets = [0, 0], sizes = [8, 256], strides = [1, 1]} : vector<8x512xf32> to vector<8x256xf32>
    %110 = vector.extract_strided_slice %108 {offsets = [0, 256], sizes = [8, 256], strides = [1, 1]} : vector<8x512xf32> to vector<8x256xf32>
    %111 = vector.broadcast %50 : vector<8x1xf32> to vector<8x256xf32>
    %112 = arith.mulf %109, %111 : vector<8x256xf32>
    %113 = vector.broadcast %52 : vector<8x1xf32> to vector<8x256xf32>
    %114 = arith.mulf %110, %113 : vector<8x256xf32>
    %115 = arith.addf %112, %114 : vector<8x256xf32>
    %cst_51 = arith.constant 0.000000e+00 : f32
    %116 = vector.broadcast %cst_51 : f32 to vector<8x256xf32>
    %117 = arith.maximumf %115, %116 : vector<8x256xf32>
    %118 = vector.broadcast %59 : vector<8x1xf32> to vector<8x256xf32>
    %119 = arith.mulf %109, %118 : vector<8x256xf32>
    %120 = vector.broadcast %61 : vector<8x1xf32> to vector<8x256xf32>
    %121 = arith.mulf %110, %120 : vector<8x256xf32>
    %122 = arith.addf %119, %121 : vector<8x256xf32>
    %cst_52 = arith.constant 0.000000e+00 : f32
    %123 = vector.broadcast %cst_52 : f32 to vector<8x256xf32>
    %124 = arith.maximumf %122, %123 : vector<8x256xf32>
    %125 = arith.truncf %117 : vector<8x256xf32> to vector<8x256xbf16>
    %c0_53 = arith.constant 0 : index
    %c0_54 = arith.constant 0 : index
    %126 = vector.load %arg18[%c0_53, %c0_54] : memref<256x256xbf16, #tpu.memory_space<vmem>>, vector<256x256xbf16>
    %cst_55 = arith.constant dense<0.000000e+00> : vector<8x256xf32>
    %127 = tpu.matmul %125, %126, %cst_55 {dimension_numbers = #tpu.dot_dimension_numbers<[1], [0], [0], [1], [0, 0, 1, 1], [], []>} : vector<8x256xbf16>, vector<256x256xbf16>, vector<8x256xf32> -> vector<8x256xf32>
    %c0_56 = arith.constant 0 : index
    %c0_57 = arith.constant 0 : index
    %128 = vector.load %arg19[%c0_56, %c0_57] : memref<1x256xf32, #tpu.memory_space<vmem>>, vector<1x256xf32>
    %129 = vector.broadcast %128 : vector<1x256xf32> to vector<8x256xf32>
    %130 = arith.addf %127, %129 : vector<8x256xf32>
    %131 = arith.truncf %124 : vector<8x256xf32> to vector<8x256xbf16>
    %c0_58 = arith.constant 0 : index
    %c0_59 = arith.constant 0 : index
    %132 = vector.load %arg20[%c0_58, %c0_59] : memref<256x256xbf16, #tpu.memory_space<vmem>>, vector<256x256xbf16>
    %cst_60 = arith.constant dense<0.000000e+00> : vector<8x256xf32>
    %133 = tpu.matmul %131, %132, %cst_60 {dimension_numbers = #tpu.dot_dimension_numbers<[1], [0], [0], [1], [0, 0, 1, 1], [], []>} : vector<8x256xbf16>, vector<256x256xbf16>, vector<8x256xf32> -> vector<8x256xf32>
    %c0_61 = arith.constant 0 : index
    %c0_62 = arith.constant 0 : index
    %134 = vector.load %arg21[%c0_61, %c0_62] : memref<1x256xf32, #tpu.memory_space<vmem>>, vector<1x256xf32>
    %135 = vector.broadcast %134 : vector<1x256xf32> to vector<8x256xf32>
    %136 = arith.addf %133, %135 : vector<8x256xf32>
    %137 = vector.broadcast %100 : vector<8x1xf32> to vector<8x256xf32>
    %138 = arith.mulf %130, %137 : vector<8x256xf32>
    %139 = vector.broadcast %102 : vector<8x1xf32> to vector<8x256xf32>
    %140 = arith.mulf %136, %139 : vector<8x256xf32>
    %141 = arith.addf %138, %140 : vector<8x256xf32>
    %cst_63 = arith.constant 0.000000e+00 : f32
    %142 = vector.broadcast %cst_63 : f32 to vector<8x256xf32>
    %143 = arith.maximumf %141, %142 : vector<8x256xf32>
    %144 = arith.truncf %143 : vector<8x256xf32> to vector<8x256xbf16>
    %c0_64 = arith.constant 0 : index
    %c0_65 = arith.constant 0 : index
    %145 = vector.load %arg22[%c0_64, %c0_65] : memref<256x8xbf16, #tpu.memory_space<vmem>>, vector<256x8xbf16>
    %cst_66 = arith.constant dense<0.000000e+00> : vector<8x8xf32>
    %146 = tpu.matmul %144, %145, %cst_66 {dimension_numbers = #tpu.dot_dimension_numbers<[1], [0], [0], [1], [0, 0, 1, 1], [], []>} : vector<8x256xbf16>, vector<256x8xbf16>, vector<8x8xf32> -> vector<8x8xf32>
    %c0_67 = arith.constant 0 : index
    %c0_68 = arith.constant 0 : index
    %147 = vector.load %arg23[%c0_67, %c0_68] : memref<1x8xf32, #tpu.memory_space<vmem>>, vector<1x8xf32>
    %148 = vector.broadcast %147 : vector<1x8xf32> to vector<8x8xf32>
    %149 = arith.addf %146, %148 : vector<8x8xf32>
    %c0_69 = arith.constant 0 : index
    %c0_70 = arith.constant 0 : index
    %150 = vector.load %arg24[%c0_69, %c0_70] : memref<8x8xf32, #tpu.memory_space<vmem>>, vector<8x8xf32>
    tpu.vector_store %arg24[%c0_69, %c0_70], %149 {strides = array<i32>} : memref<8x8xf32, #tpu.memory_space<vmem>>, vector<8x8xf32>,
    return
  }
  func.func @transform_0(%arg0: i32) -> (i32, i32) {
    %c0_i32 = arith.constant 0 : i32
    %c0_i32_0 = arith.constant 0 : i32
    return %arg0, %c0_i32 : i32, i32
  }
  func.func @transform_1(%arg0: i32) -> (i32, i32) {
    %c0_i32 = arith.constant 0 : i32
    %c0_i32_0 = arith.constant 0 : i32
    %c0_i32_1 = arith.constant 0 : i32
    return %c0_i32, %c0_i32_0 : i32, i32
  }
  func.func @transform_2(%arg0: i32) -> (i32, i32) {
    %c0_i32 = arith.constant 0 : i32
    %c0_i32_0 = arith.constant 0 : i32
    %c0_i32_1 = arith.constant 0 : i32
    return %c0_i32, %c0_i32_0 : i32, i32
  }
  func.func @transform_3(%arg0: i32) -> (i32, i32) {
    %c0_i32 = arith.constant 0 : i32
    %c0_i32_0 = arith.constant 0 : i32
    %c0_i32_1 = arith.constant 0 : i32
    return %c0_i32, %c0_i32_0 : i32, i32
  }
  func.func @transform_4(%arg0: i32) -> (i32, i32) {
    %c0_i32 = arith.constant 0 : i32
    %c0_i32_0 = arith.constant 0 : i32
    %c0_i32_1 = arith.constant 0 : i32
    return %c0_i32, %c0_i32_0 : i32, i32
  }
  func.func @transform_5(%arg0: i32) -> (i32, i32) {
    %c0_i32 = arith.constant 0 : i32
    %c0_i32_0 = arith.constant 0 : i32
    %c0_i32_1 = arith.constant 0 : i32
    return %c0_i32, %c0_i32_0 : i32, i32
  }
  func.func @transform_6(%arg0: i32) -> (i32, i32) {
    %c0_i32 = arith.constant 0 : i32
    %c0_i32_0 = arith.constant 0 : i32
    %c0_i32_1 = arith.constant 0 : i32
    return %c0_i32, %c0_i32_0 : i32, i32
  }
  func.func @transform_7(%arg0: i32) -> (i32, i32) {
    %c0_i32 = arith.constant 0 : i32
    %c0_i32_0 = arith.constant 0 : i32
    %c0_i32_1 = arith.constant 0 : i32
    return %c0_i32, %c0_i32_0 : i32, i32
  }
  func.func @transform_8(%arg0: i32) -> (i32, i32) {
    %c0_i32 = arith.constant 0 : i32
    %c0_i32_0 = arith.constant 0 : i32
    %c0_i32_1 = arith.constant 0 : i32
    return %c0_i32, %c0_i32_0 : i32, i32
  }
  func.func @transform_9(%arg0: i32) -> (i32, i32) {
    %c0_i32 = arith.constant 0 : i32
    %c0_i32_0 = arith.constant 0 : i32
    %c0_i32_1 = arith.constant 0 : i32
    return %c0_i32, %c0_i32_0 : i32, i32
  }
  func.func @transform_10(%arg0: i32) -> (i32, i32) {
    %c0_i32 = arith.constant 0 : i32
    %c0_i32_0 = arith.constant 0 : i32
    %c0_i32_1 = arith.constant 0 : i32
    return %c0_i32, %c0_i32_0 : i32, i32
  }
  func.func @transform_11(%arg0: i32) -> (i32, i32) {
    %c0_i32 = arith.constant 0 : i32
    %c0_i32_0 = arith.constant 0 : i32
    %c0_i32_1 = arith.constant 0 : i32
    return %c0_i32, %c0_i32_0 : i32, i32
  }
  func.func @transform_12(%arg0: i32) -> (i32, i32) {
    %c0_i32 = arith.constant 0 : i32
    %c0_i32_0 = arith.constant 0 : i32
    %c0_i32_1 = arith.constant 0 : i32
    return %c0_i32, %c0_i32_0 : i32, i32
  }
  func.func @transform_13(%arg0: i32) -> (i32, i32) {
    %c0_i32 = arith.constant 0 : i32
    %c0_i32_0 = arith.constant 0 : i32
    %c0_i32_1 = arith.constant 0 : i32
    return %c0_i32, %c0_i32_0 : i32, i32
  }
  func.func @transform_14(%arg0: i32) -> (i32, i32) {
    %c0_i32 = arith.constant 0 : i32
    %c0_i32_0 = arith.constant 0 : i32
    %c0_i32_1 = arith.constant 0 : i32
    return %c0_i32, %c0_i32_0 : i32, i32
  }
  func.func @transform_15(%arg0: i32) -> (i32, i32) {
    %c0_i32 = arith.constant 0 : i32
    %c0_i32_0 = arith.constant 0 : i32
    %c0_i32_1 = arith.constant 0 : i32
    return %c0_i32, %c0_i32_0 : i32, i32
  }
  func.func @transform_16(%arg0: i32) -> (i32, i32) {
    %c0_i32 = arith.constant 0 : i32
    %c0_i32_0 = arith.constant 0 : i32
    %c0_i32_1 = arith.constant 0 : i32
    return %c0_i32, %c0_i32_0 : i32, i32
  }
  func.func @transform_17(%arg0: i32) -> (i32, i32) {
    %c0_i32 = arith.constant 0 : i32
    %c0_i32_0 = arith.constant 0 : i32
    %c0_i32_1 = arith.constant 0 : i32
    return %c0_i32, %c0_i32_0 : i32, i32
  }
  func.func @transform_18(%arg0: i32) -> (i32, i32) {
    %c0_i32 = arith.constant 0 : i32
    %c0_i32_0 = arith.constant 0 : i32
    %c0_i32_1 = arith.constant 0 : i32
    return %c0_i32, %c0_i32_0 : i32, i32
  }
  func.func @transform_19(%arg0: i32) -> (i32, i32) {
    %c0_i32 = arith.constant 0 : i32
    %c0_i32_0 = arith.constant 0 : i32
    %c0_i32_1 = arith.constant 0 : i32
    return %c0_i32, %c0_i32_0 : i32, i32
  }
  func.func @transform_20(%arg0: i32) -> (i32, i32) {
    %c0_i32 = arith.constant 0 : i32
    %c0_i32_0 = arith.constant 0 : i32
    %c0_i32_1 = arith.constant 0 : i32
    return %c0_i32, %c0_i32_0 : i32, i32
  }
  func.func @transform_21(%arg0: i32) -> (i32, i32) {
    %c0_i32 = arith.constant 0 : i32
    %c0_i32_0 = arith.constant 0 : i32
    %c0_i32_1 = arith.constant 0 : i32
    return %c0_i32, %c0_i32_0 : i32, i32
  }
  func.func @transform_22(%arg0: i32) -> (i32, i32) {
    %c0_i32 = arith.constant 0 : i32
    %c0_i32_0 = arith.constant 0 : i32
    %c0_i32_1 = arith.constant 0 : i32
    return %c0_i32, %c0_i32_0 : i32, i32
  }
  func.func @transform_23(%arg0: i32) -> (i32, i32) {
    %c0_i32 = arith.constant 0 : i32
    %c0_i32_0 = arith.constant 0 : i32
    return %arg0, %c0_i32 : i32, i32
  }
}

</mosaic_0001>

<bundles_post_ra>
// kernel: tpu_custom_call.1
= control target key start
LH: loop header
LB: loop body
LE: loop exit
PB: predicated region body
PF: predicated region fallthrough
CT: control target
= control target key end

     0   :  { %s6930_s0 = inlined_call_operand.vmem [shape: f32[8,19], index: 0, kind: input, shape index: {}]   ;;  %s6931_s1 = inlined_call_operand.vmem [shape: bf16[19,1024], index: 1, kind: input, shape index: {}]   ;;  %s6932_s2 = inlined_call_operand.vmem [shape: f32[1,1024], index: 2, kind: input, shape index: {}]   ;;  %s6933_s3 = inlined_call_operand.hbm [shape: bf16[400,400], index: 3, kind: input, shape index: {}]   ;;  %s6934_s4 = inlined_call_operand.vmem [shape: f32[1,400], index: 4, kind: input, shape index: {}]   ;;  %s6935_s5 = inlined_call_operand.hbm [shape: bf16[400,256], index: 5, kind: input, shape index: {}]   ;;  %s6936_s6 = inlined_call_operand.vmem [shape: f32[1,256], index: 6, kind: input, shape index: {}]   ;;  %s6937_s7 = inlined_call_operand.vmem [shape: bf16[256,256], index: 7, kind: input, shape index: {}]   ;;  %s6938_s8 = inlined_call_operand.vmem [shape: f32[1,256], index: 8, kind: input, shape index: {}]   ;;  %s6939_s9 = inlined_call_operand.vmem [shape: bf16[256,4], index: 9, kind: input, shape index: {}]   ;;  %s6940_s10 = inlined_call_operand.vmem [shape: f32[1,4], index: 10, kind: input, shape index: {}]   ;;  %s6941_s11 = inlined_call_operand.vmem [shape: f32[4,256], index: 11, kind: input, shape index: {}]   ;;  %s6942_s12 = inlined_call_operand.vmem [shape: f32[1,256], index: 12, kind: input, shape index: {}]   ;;  %s6943_s13 = inlined_call_operand.vmem [shape: bf16[256,2], index: 13, kind: input, shape index: {}]   ;;  %s6944_s14 = inlined_call_operand.hbm [shape: f32[1,2], index: 14, kind: input, shape index: {}]   ;;  %s6945_s15 = inlined_call_operand.hbm [shape: bf16[400,512], index: 15, kind: input, shape index: {}]   ;;  %s6946_s16 = inlined_call_operand.vmem [shape: f32[1,512], index: 16, kind: input, shape index: {}]   ;;  %s6947_s17 = inlined_call_operand.hbm [shape: bf16[256,256], index: 17, kind: input, shape index: {}]   ;;  %s6948_s18 = inlined_call_operand.vmem [shape: f32[1,256], index: 18, kind: input, shape index: {}]   ;;  %s6949_s19 = inlined_call_operand.hbm [shape: bf16[256,256], index: 19, kind: input, shape index: {}]   ;;  %s6950_s20 = inlined_call_operand.vmem [shape: f32[1,256], index: 20, kind: input, shape index: {}]   ;;  %s6951_s21 = inlined_call_operand.vmem [shape: bf16[256,8], index: 21, kind: input, shape index: {}]   ;;  %s6952_s22 = inlined_call_operand.vmem [shape: f32[1,8], index: 22, kind: input, shape index: {}]   ;;  %s6953_s23 = inlined_call_operand.hbm [shape: f32[8,8], index: 23, kind: output, shape index: {}]  }
   0x1   :  { %6959 = sst [smem:[#allocation19_spill]] %s6930_s0 }
   0x2   :  { %6960 = sst [smem:[#allocation20_spill]] %s6931_s1 }
   0x3   :  { %6961 = sst [smem:[#allocation21_spill]] %s6932_s2 }
   0x4   :  { %6962 = sst [smem:[#allocation22_spill]] %s6933_s3 }
   0x5   :  { %6963 = sst [smem:[#allocation23_spill]] %s6934_s4 }
   0x6   :  { %6964 = sst [smem:[#allocation24_spill]] %s6935_s5 }
   0x7   :  { %6965 = sst [smem:[#allocation25_spill]] %s6936_s6 }
   0x8   :  { %6966 = sst [smem:[#allocation26_spill]] %s6937_s7 }
   0x9   :  { %6967 = sst [smem:[#allocation27_spill]] %s6952_s22 }
   0xa   :  { %6968 = sst [smem:[#allocation28_spill]] %s6953_s23 }
   0xb   :  { %28 = vsyncpa [#allocation3], 0 }
   0xc   :  { %29 = vsyncpa [#allocation6], 0 }
   0xd   :  { %30 = vsyncpa [#allocation9], 0 }
   0xe   :  { %31 = vsyncpa [#allocation12], 0  ;;  %s6969_s24 = sld [smem:[#allocation24_spill]] }
  0x14   :  { %s58_s25 = sshll.u32 %s6969_s24, 4  ;;  %s59_s25 = int_to_ptr.hbm [resolvable:$true] %s58_s25 }
  0x15   :  { %32 = vsyncpa [#allocation4], 0  ;;  %s6106_s5 = smov [#allocation5]   ;;  %s6957_s26 = smov 128  }
  0x16   :  { %s60_s1 = sshll.u32 %s6106_s5, 4  ;;  %s6108_s2 = smov 8   ;;  %s61_s1 = int_to_ptr.vmem [resolvable:$true] %s60_s1 }
  0x17   :  { %66 = dma.hbm_to_vmem [thread:$0]  %s59_s25, 6400, %s61_s1, [#allocation6], %s6957_s26, %s6957_s26, %s6108_s2  }
  0x18   :  { %s98_s7 = sshll.u32 %s6945_s15, 4  ;;  %s6109_s28 = smov [#allocation8]   ;;  %s99_s7 = int_to_ptr.hbm [resolvable:$true] %s98_s7 }
  0x19   :  { %s100_s29 = sshll.u32 %s6109_s28, 4  ;;  %s6970_s4 = sld [smem:[#allocation22_spill]]  ;;  %s101_s29 = int_to_ptr.vmem [resolvable:$true] %s100_s29 }
  0x1a   :  { %s6110_s24 = smov 256   ;;  %s6111_s5 = smov 16  }
  0x1b   :  { %106 = dma.hbm_to_vmem [thread:$0]  %s99_s7, 12800, %s101_s29, [#allocation9], %s6110_s24, %s6110_s24, %s6111_s5  }
  0x1c   :  { %s88_s25 = sshll.u32 %s6944_s14, 4  ;;  %s6112_s1 = smov [#allocation2]   ;;  %s89_s25 = int_to_ptr.hbm [resolvable:$true] %s88_s25 }
  0x1d   :  { %s45_s26 = sshll.u32 %s6112_s1, 4  ;;  %s6113_s15 = smov [#allocation7]   ;;  %s46_s26 = int_to_ptr.vmem [resolvable:$true] %s45_s26 }
  0x1e   :  { %s90_s6 = sshll.u32 %s6113_s15, 4  ;;  %s113_s3 = sshll.u32 %s6947_s17, 4  ;;  %s91_s6 = int_to_ptr.vmem [resolvable:$true] %s90_s6  ;;  %s114_s3 = int_to_ptr.hbm [resolvable:$true] %s113_s3 }
  0x1f   :  { %s43_s30 = sshll.u32 %s6970_s4, 4  ;;  %s128_s29 = sshll.u32 %s6949_s19, 4  ;;  %s44_s30 = int_to_ptr.hbm [resolvable:$true] %s43_s30  ;;  %s129_s29 = int_to_ptr.hbm [resolvable:$true] %s128_s29 }
  0x20   :  { %51 = dma.hbm_to_vmem [thread:$0]  %s44_s30, 12800, %s46_s26, [#allocation3], %s6110_s24, %s6110_s24, %s6111_s5  }
  0x21   :  { %93 = dma.hbm_to_vmem [thread:$0]  %s89_s25, 16, %s91_s6, [#allocation6]  }
  0x22   :  { %s6114_s22 = smov [#allocation10]   ;;  %s6971_s23 = smov 128  }
  0x23   :  { %s115_s14 = sshll.u32 %s6114_s22, 4  ;;  %s6115_s26 = smov [#allocation11]   ;;  %s116_s14 = int_to_ptr.vmem [resolvable:$true] %s115_s14 }
  0x24   :  { %121 = dma.hbm_to_vmem [thread:$0]  %s114_s3, 4096, %s116_s14, [#allocation9], %s6971_s23, %s6971_s23, %s6108_s2  }
  0x25   :  { %s130_s4 = sshll.u32 %s6115_s26, 4  ;;  %s131_s4 = int_to_ptr.vmem [resolvable:$true] %s130_s4 }
  0x26   :  { %136 = dma.hbm_to_vmem [thread:$0]  %s129_s29, 4096, %s131_s4, [#allocation12], %s6971_s23, %s6971_s23, %s6108_s2  }
  0x27   :  { %6096 = dma.done.wait [#allocation3], 12800  }
  0x28   :  { %6097 = vsyncadd [#allocation3], 4294954496 }
  0x29   :  { %6098 = dma.done.wait [#allocation6], 6416  }
  0x2a   :  { %6099 = vsyncadd [#allocation6], 4294960880 }
  0x2b   :  { %6100 = dma.done.wait [#allocation9], 16896  }
  0x2c   :  { %6101 = vsyncadd [#allocation9], 4294950400 }
  0x2d   :  { %6102 = dma.done.wait [#allocation12], 4096  }
  0x2e   :  { %6103 = vsyncadd [#allocation12], 4294963200  ;;  %vm264_vm0 = vcmask 1040384   ;;  %vm265_vm1 = vcmask 1041408   ;;  %v6116_v0 = vmov 65535   ;;  %s6972_s30 = sld [smem:[#allocation20_spill]] }
  0x2f   :  { %v266_v1 = vsel %vm264_vm0, 4294967295, %v6116_v0  ;;  %s6973_s2 = sld [smem:[#allocation19_spill]]  ;;  %vm260_vm2 = vcmask 154624   ;;  %v4020_v37 = vld [vmem:[#allocation2 + $0xe0] sm:$0xf]  ;;  %vm1014_vm3 = vcmask 130048  }
  0x30   :  { %v6274_v8 = vsel %vm265_vm1, %v266_v1, 0  ;;  %v5530_v43 = vld [vmem:[#allocation2 + $0xec] sm:$0xf0]  ;;  %v4148_v45 = vld [vmem:[#allocation2 + $0x1e0] sm:$0xf]  ;;  %s6975_s15 = sld [smem:[#allocation23_spill]] }
  0x31   :  { %v5562_v46 = vld [vmem:[#allocation2 + $0x1ec] sm:$0xf0]  ;;  %v4021_v52 = vor.u32 %v5530_v43, %v4020_v37  ;;  %v4004_v53 = vld [vmem:[#allocation2 + $0xc0] sm:$0xf]  ;;  %s6976_s0 = sld [smem:[#allocation26_spill]]  ;;  %s6117_s29 = smov 1  }
  0x32   :  { %v5526_v54 = vld [vmem:[#allocation2 + $0xcc] sm:$0xf0]  ;;  %v4149_v55 = vor.u32 %v5562_v46, %v4148_v45  ;;  %v4132_v57 = vld [vmem:[#allocation2 + $0x1c0] sm:$0xf]  ;;  %s6120_s3 = smov [#allocation13]   ;;  %s6979_s14 = sld [smem:[#allocation28_spill]] }
  0x33   :  { %v5558_v58 = vld [vmem:[#allocation2 + $0x1cc] sm:$0xf0]  ;;  %v4276_v1 = vld [vmem:[#allocation2 + $0x2e0] sm:$0xf]  ;;  %vm3844_vm4 = vcmask 64512  }
  0x34   :  { %v178_v2 = vld [vmem:[%s6972_s30 + $0x40] sm:$0x33]  ;;  %v179_v3 = vld [vmem:[%s6972_s30 + $0x48] sm:$0x33]  ;;  %v180_v15 = vld [vmem:[%s6972_s30 + $0x50] sm:$0x33] }
  0x35   :  { %v228_v4 = vunpack.c.l.b16 %v178_v2  ;;  %v229_v5 = vunpack.c.h.b16 %v178_v2  ;;  %v230_v6 = vunpack.c.l.b16 %v179_v3  ;;  %v231_v7 = vunpack.c.h.b16 %v179_v3  ;;  %v3868_v13 = vld [vmem:[%s6972_s30] sm:$0xf]  ;;  %v5492_v16 = vld [vmem:[%s6972_s30 + $0x4] sm:$0xf]  ;;  %v3876_v18 = vld [vmem:[%s6972_s30 + $0x8] sm:$0xf] }
  0x36   :  { %v5496_v14 = vld [vmem:[%s6972_s30 + $0x1c] sm:$0xf0]  ;;  %v3870_v17 = vld [vmem:[%s6972_s30 + $0x20] sm:$0xf0]  ;;  %v232_v19 = vunpack.c.l.b16 %v180_v15  ;;  %v5497_v24 = vld [vmem:[%s6972_s30 + $0x24] sm:$0xf0]  ;;  %v233_v31 = vunpack.c.h.b16 %v180_v15 }
  0x37   :  { %v244_v9 = vpack.c.b16 %v228_v4, %v228_v4  ;;  %v245_v10 = vpack.c.b16 %v229_v5, %v229_v5  ;;  %v246_v11 = vpack.c.b16 %v230_v6, %v230_v6  ;;  %v247_v12 = vpack.c.b16 %v231_v7, %v231_v7  ;;  %v5493_v25 = vld [vmem:[%s6972_s30 + $0xc] sm:$0xf]  ;;  %v168_v30 = vld [vmem:[%s6973_s2] sm:$0xff]  ;;  %v3884_v35 = vld [vmem:[%s6972_s30 + $0x10] sm:$0xf]  ;;  %s6974_s2 = sld [smem:[#allocation21_spill]] }
  0x38   :  { %v3878_v26 = vld [vmem:[%s6972_s30 + $0x28] sm:$0xf0]  ;;  %v248_v27 = vpack.c.b16 %v232_v19, %v232_v19  ;;  %v3869_v28 = vor.u32 %v5496_v14, %v3868_v13  ;;  %v3873_v29 = vor.u32 %v5492_v16, %v3870_v17  ;;  %v3877_v32 = vor.u32 %v5497_v24, %v3876_v18  ;;  %v5498_v36 = vld [vmem:[%s6972_s30 + $0x2c] sm:$0xf0]  ;;  %v5494_v40 = vld [vmem:[%s6972_s30 + $0x14] sm:$0xf] }
  0x39   :  { %v269_v20 = vand.u32 %v6274_v8, %v244_v9  ;;  %v272_v21 = vand.u32 %v6274_v8, %v245_v10  ;;  %v275_v22 = vand.u32 %v6274_v8, %v246_v11  ;;  %v278_v23 = vand.u32 %v6274_v8, %v247_v12  ;;  %v3886_v41 = vld [vmem:[%s6972_s30 + $0x30] sm:$0xf0]  ;;  %v181_v42 = vld [vmem:[%s6972_s30 + $0x58] sm:$0x33]  ;;  %v5594_v2 = vld [vmem:[#allocation2 + $0x2ec] sm:$0xf0] }
  0x3a   :  { %v3881_v33 = vor.u32 %v5493_v25, %v3878_v26  ;;  %v281_v34 = vand.u32 %v6274_v8, %v248_v27  ;;  %v249_v38 = vpack.c.b16 %v233_v31, %v233_v31  ;;  %v6317_v39 = vpack.c.bf16 %v168_v30, %v168_v30  ;;  %v5495_v60 = vld [vmem:[%s6972_s30 + $0x1c] sm:$0xf]  ;;  %v3892_v63 = vld [vmem:[%s6972_s30 + $0x18] sm:$0xf]  ;;  %v4292_v3 = vld [vmem:[#allocation2 + $0x300] sm:$0xf] }
  0x3b   :  { %298 = vmatpush.bf16.msra.mxu0 %v269_v20  ;;  %311 = vmatpush.bf16.msra.mxu1 %v272_v21  ;;  %v235_v47 = vunpack.c.h.b16 %v181_v42  ;;  %v234_v48 = vunpack.c.l.b16 %v181_v42  ;;  %v3885_v49 = vor.u32 %v5498_v36, %v3884_v35  ;;  %v3889_v50 = vor.u32 %v5494_v40, %v3886_v41  ;;  %v3894_v61 = vld [vmem:[%s6972_s30 + $0x38] sm:$0xf0]  ;;  %v5499_v0 = vld [vmem:[%s6972_s30 + $0x34] sm:$0xf0]  ;;  %v3988_v5 = vld [vmem:[#allocation2 + $0xa0] sm:$0xf] }
  0x3c   :  { %324 = vmatpush.bf16.msra.mxu2 %v275_v22  ;;  %337 = vmatpush.bf16.msra.mxu3 %v278_v23  ;;  %v284_v44 = vand.u32 %v6274_v8, %v249_v38  ;;  %v4005_v4 = vor.u32 %v5526_v54, %v4004_v53  ;;  %v4133_v6 = vor.u32 %v5558_v58, %v4132_v57  ;;  %v5598_v7 = vld [vmem:[#allocation2 + $0x30c] sm:$0xf0]  ;;  %v4116_v9 = vld [vmem:[#allocation2 + $0x1a0] sm:$0xf]  ;;  %v5528_v24 = vld [vmem:[#allocation2 + $0xe4] sm:$0xf] }
  0x3d   :  { %v251_v51 = vpack.c.b16 %v235_v47, %v235_v47  ;;  %v250_v56 = vpack.c.b16 %v234_v48, %v234_v48  ;;  %v5554_v10 = vld [vmem:[#allocation2 + $0x1ac] sm:$0xf0]  ;;  %v3897_v11 = vor.u32 %v5495_v60, %v3894_v61  ;;  %v3893_v12 = vor.u32 %v5499_v0, %v3892_v63  ;;  %v4260_v15 = vld [vmem:[#allocation2 + $0x2c0] sm:$0xf]  ;;  %v4022_v25 = vld [vmem:[#allocation2 + $0xf0] sm:$0xf0] }
  0x3e   :  { %v4277_v13 = vor.u32 %v5594_v2, %v4276_v1  ;;  %v4293_v14 = vor.u32 %v5598_v7, %v4292_v3  ;;  %v5590_v16 = vld [vmem:[#allocation2 + $0x2cc] sm:$0xf0]  ;;  %v3972_v18 = vld [vmem:[#allocation2 + $0x80] sm:$0xf]  ;;  %v4117_v19 = vor.u32 %v5554_v10, %v4116_v9  ;;  %v5524_v35 = vld [vmem:[#allocation2 + $0xc4] sm:$0xf] }
  0x3f   :  { %299 = vmatpush.bf16.msra.mxu0 %v3869_v28  ;;  %312 = vmatpush.bf16.msra.mxu1 %v3873_v29  ;;  %v290_v59 = vand.u32 %v6274_v8, %v251_v51  ;;  %v287_v62 = vand.u32 %v6274_v8, %v250_v56  ;;  %v5522_v8 = vld [vmem:[#allocation2 + $0xac] sm:$0xf0]  ;;  %v4100_v21 = vld [vmem:[#allocation2 + $0x180] sm:$0xf]  ;;  %v4261_v23 = vor.u32 %v5590_v16, %v4260_v15  ;;  %v4006_v36 = vld [vmem:[#allocation2 + $0xd0] sm:$0xf0] }
  0x40   :  { %325 = vmatpush.bf16.msra.mxu2 %v3877_v32  ;;  %338 = vmatpush.bf16.msra.mxu3 %v3881_v33  ;;  %v3989_v17 = vor.u32 %v5522_v8, %v3988_v5  ;;  %v5518_v20 = vld [vmem:[#allocation2 + $0x8c] sm:$0xf0]  ;;  %v3956_v27 = vld [vmem:[#allocation2 + $0x60] sm:$0xf]  ;;  %v4009_v47 = vor.u32 %v5524_v35, %v4006_v36  ;;  %v5520_v48 = vld [vmem:[#allocation2 + $0xa4] sm:$0xf] }
  0x41   :  { %v5550_v22 = vld [vmem:[#allocation2 + $0x18c] sm:$0xf0]  ;;  %v3973_v26 = vor.u32 %v5518_v20, %v3972_v18  ;;  %v4244_v29 = vld [vmem:[#allocation2 + $0x2a0] sm:$0xf]  ;;  %v5516_v60 = vld [vmem:[#allocation2 + $0x84] sm:$0xf] }
  0x42   :  { %3898 = vmatmul.msk.bf16.vlgmr.msra.gmra.mxu0 %vm260_vm2, %v6317_v39  ;;  %3899 = vmatmul.msk.bf16.vlgmr.msra.gmra.mxu1 %vm260_vm2, %v6317_v39  ;;  %v4101_v28 = vor.u32 %v5550_v22, %v4100_v21  ;;  %v5586_v30 = vld [vmem:[#allocation2 + $0x2ac] sm:$0xf0]  ;;  %v4084_v32 = vld [vmem:[#allocation2 + $0x160] sm:$0xf]  ;;  %v3974_v61 = vld [vmem:[#allocation2 + $0x90] sm:$0xf0] }
  0x43   :  { %350 = vmatpush.bf16.msrb.mxu0 %v281_v34  ;;  %363 = vmatpush.bf16.msrb.mxu1 %v284_v44  ;;  %v5514_v31 = vld [vmem:[#allocation2 + $0x6c] sm:$0xf0]  ;;  %v4025_v34 = vor.u32 %v5528_v24, %v4022_v25  ;;  %v4245_v37 = vor.u32 %v5586_v30, %v4244_v29  ;;  %v3940_v40 = vld [vmem:[#allocation2 + $0x40] sm:$0xf]  ;;  %v5560_v2 = vld [vmem:[#allocation2 + $0x1e4] sm:$0xf]  ;;  %v3977_v8 = vor.u32 %v5516_v60, %v3974_v61 }
  0x44   :  { %3900 = vmatmul.msk.bf16.vlgmr.msra.gmra.mxu2 %vm260_vm2, %v6317_v39  ;;  %3901 = vmatmul.msk.bf16.vlgmr.msra.gmra.mxu3 %vm260_vm2, %v6317_v39  ;;  %v5546_v33 = vld [vmem:[#allocation2 + $0x16c] sm:$0xf0]  ;;  %v3957_v38 = vor.u32 %v5514_v31, %v3956_v27  ;;  %v4228_v42 = vld [vmem:[#allocation2 + $0x280] sm:$0xf]  ;;  %v4150_v5 = vld [vmem:[#allocation2 + $0x1f0] sm:$0xf0] }
  0x45   :  { %389 = vmatpush.bf16.msrb.mxu3 %v290_v59  ;;  %376 = vmatpush.bf16.msrb.mxu2 %v287_v62  ;;  %v4085_v41 = vor.u32 %v5546_v33, %v4084_v32  ;;  %v5582_v43 = vld [vmem:[#allocation2 + $0x28c] sm:$0xf0]  ;;  %v4068_v45 = vld [vmem:[#allocation2 + $0x140] sm:$0xf]  ;;  %v4278_v7 = vld [vmem:[#allocation2 + $0x2f0] sm:$0xf0] }
  0x46   :  { %v5510_v44 = vld [vmem:[#allocation2 + $0x4c] sm:$0xf0]  ;;  %v4212_v54 = vld [vmem:[#allocation2 + $0x260] sm:$0xf]  ;;  %v5588_v15 = vld [vmem:[#allocation2 + $0x2c4] sm:$0xf] }
  0x47   :  { %351 = vmatpush.bf16.msrb.mxu0 %v3885_v49  ;;  %364 = vmatpush.bf16.msrb.mxu1 %v3889_v50  ;;  %v5542_v46 = vld [vmem:[#allocation2 + $0x14c] sm:$0xf0]  ;;  %v3990_v49 = vld [vmem:[#allocation2 + $0xb0] sm:$0xf0]  ;;  %v4229_v50 = vor.u32 %v5582_v43, %v4228_v42  ;;  %v3941_v51 = vor.u32 %v5510_v44, %v3940_v40  ;;  %v4052_v57 = vld [vmem:[#allocation2 + $0x120] sm:$0xf] }
  0x48   :  { %v4069_v53 = vor.u32 %v5542_v46, %v4068_v45  ;;  %v5506_v56 = vld [vmem:[#allocation2 + $0x2c] sm:$0xf0]  ;;  %v3993_v59 = vor.u32 %v5520_v48, %v3990_v49  ;;  %v3908_v63 = vld [vmem:[#allocation2] sm:$0xf]  ;;  %v4262_v16 = vld [vmem:[#allocation2 + $0x2d0] sm:$0xf0] }
  0x49   :  { %390 = vmatpush.bf16.msrb.mxu3 %v3897_v11  ;;  %377 = vmatpush.bf16.msrb.mxu2 %v3893_v12  ;;  %v5538_v58 = vld [vmem:[#allocation2 + $0x12c] sm:$0xf0]  ;;  %v4036_v3 = vld [vmem:[#allocation2 + $0x100] sm:$0xf]  ;;  %v4153_v11 = vor.u32 %v5560_v2, %v4150_v5  ;;  %v5556_v12 = vld [vmem:[#allocation2 + $0x1c4] sm:$0xf]  ;;  %v4265_v18 = vor.u32 %v5588_v15, %v4262_v16 }
  0x4a   :  { %v5502_v0 = vld [vmem:[#allocation2 + $0xc] sm:$0xf0]  ;;  %v4053_v1 = vor.u32 %v5538_v58, %v4052_v57  ;;  %v4118_v20 = vld [vmem:[#allocation2 + $0x1b0] sm:$0xf0]  ;;  %v5548_v22 = vld [vmem:[#allocation2 + $0x184] sm:$0xf] }
  0x4b   :  { %1018 = vmatpush.bf16.msra.mxu0 %v4021_v52  ;;  %1031 = vmatpush.bf16.msra.mxu1 %v4149_v55  ;;  %v3924_v52 = vld [vmem:[#allocation2 + $0x20] sm:$0xf]  ;;  %v5578_v55 = vld [vmem:[#allocation2 + $0x26c] sm:$0xf0]  ;;  %v3909_v9 = vor.u32 %v5502_v0, %v3908_v63  ;;  %v5544_v25 = vld [vmem:[#allocation2 + $0x164] sm:$0xf] }
  0x4c   :  { %v4213_v62 = vor.u32 %v5578_v55, %v4212_v54  ;;  %v4070_v29 = vld [vmem:[#allocation2 + $0x150] sm:$0xf0]  ;;  %v5512_v31 = vld [vmem:[#allocation2 + $0x64] sm:$0xf]  ;;  %v4196_v36 = vld [vmem:[#allocation2 + $0x240] sm:$0xf] }
  0x4d   :  { %1044 = vmatpush.bf16.msra.mxu2 %v4277_v13  ;;  %1064 = vmatpush.bf16.msra.mxu3 %v4293_v14  ;;  %v4134_v14 = vld [vmem:[#allocation2 + $0x1d0] sm:$0xf0]  ;;  %v5584_v33 = vld [vmem:[#allocation2 + $0x2a4] sm:$0xf]  ;;  %v4180_v49 = vld [vmem:[#allocation2 + $0x220] sm:$0xf] }
  0x4e   :  { %v3958_v32 = vld [vmem:[#allocation2 + $0x70] sm:$0xf0]  ;;  %v5508_v44 = vld [vmem:[#allocation2 + $0x44] sm:$0xf] }
  0x4f   :  { %1019 = vmatpush.bf16.msra.mxu0 %v4005_v4  ;;  %1032 = vmatpush.bf16.msra.mxu1 %v4133_v6  ;;  %v5534_v4 = vld [vmem:[#allocation2 + $0x10c] sm:$0xf0]  ;;  %v5592_v6 = vld [vmem:[#allocation2 + $0x2e4] sm:$0xf]  ;;  %v4246_v35 = vld [vmem:[#allocation2 + $0x2b0] sm:$0xf0] }
  0x50   :  { %v4037_v10 = vor.u32 %v5534_v4, %v4036_v3  ;;  %v4281_v13 = vor.u32 %v5592_v6, %v4278_v7  ;;  %v4054_v42 = vld [vmem:[#allocation2 + $0x130] sm:$0xf0]  ;;  %v5580_v46 = vld [vmem:[#allocation2 + $0x284] sm:$0xf] }
  0x51   :  { %1045 = vmatpush.bf16.msra.mxu2 %v4261_v23  ;;  %v4102_v23 = vld [vmem:[#allocation2 + $0x190] sm:$0xf0]  ;;  %v5500_v0 = vld [vmem:[#allocation2 + $0x4] sm:$0xf] }
  0x52   :  { %3902 = vmatmul.msk.bf16.vlgmr.msrb.gmra.mxu0 %vm260_vm2, %v6317_v39  ;;  %3903 = vmatmul.msk.bf16.vlgmr.msrb.gmra.mxu1 %vm260_vm2, %v6317_v39  ;;  %v4105_v24 = vor.u32 %v5548_v22, %v4102_v23  ;;  %v3942_v45 = vld [vmem:[#allocation2 + $0x50] sm:$0xf0]  ;;  %v5572_v2 = vld [vmem:[#allocation2 + $0x244] sm:$0xf]  ;;  %v5595_v23 = vld [vmem:[#allocation2 + $0x2f4] sm:$0xf0] }
  0x53   :  { %1020 = vmatpush.bf16.msra.mxu0 %v3989_v17  ;;  %1033 = vmatpush.bf16.msra.mxu1 %v4117_v19  ;;  %v4137_v17 = vor.u32 %v5556_v12, %v4134_v14  ;;  %v5552_v19 = vld [vmem:[#allocation2 + $0x1a4] sm:$0xf]  ;;  %v4230_v48 = vld [vmem:[#allocation2 + $0x290] sm:$0xf0] }
  0x54   :  { %3905 = vmatmul.msk.bf16.vlgmr.msrb.gmra.mxu3 %vm260_vm2, %v6317_v39  ;;  %3904 = vmatmul.msk.bf16.vlgmr.msrb.gmra.mxu2 %vm260_vm2, %v6317_v39  ;;  %v3925_v39 = vor.u32 %v5506_v56, %v3924_v52  ;;  %v4121_v21 = vor.u32 %v5552_v19, %v4118_v20  ;;  %v4038_v54 = vld [vmem:[#allocation2 + $0x110] sm:$0xf0]  ;;  %v5504_v56 = vld [vmem:[#allocation2 + $0x24] sm:$0xf]  ;;  %v4284_v20 = vld [vmem:[#allocation2 + $0x2e8] sm:$0xf] }
  0x55   :  { %1070 = vmatpush.bf16.msrb.mxu3 %v4025_v34  ;;  %1046 = vmatpush.bf16.msra.mxu2 %v4245_v37  ;;  %v3961_v34 = vor.u32 %v5512_v31, %v3958_v32  ;;  %v5574_v37 = vld [vmem:[#allocation2 + $0x24c] sm:$0xf0]  ;;  %v3926_v57 = vld [vmem:[#allocation2 + $0x30] sm:$0xf0]  ;;  %v5596_v5 = vld [vmem:[#allocation2 + $0x304] sm:$0xf] }
  0x56   :  { %v4197_v40 = vor.u32 %v5574_v37, %v4196_v36  ;;  %v3929_v58 = vor.u32 %v5504_v56, %v3926_v57  ;;  %v4214_v60 = vld [vmem:[#allocation2 + $0x270] sm:$0xf0]  ;;  %v5564_v12 = vld [vmem:[#allocation2 + $0x204] sm:$0xf] }
  0x57   :  { %1021 = vmatpush.bf16.msra.mxu0 %v3973_v26  ;;  %1034 = vmatpush.bf16.msra.mxu1 %v4101_v28  ;;  %v4086_v26 = vld [vmem:[#allocation2 + $0x170] sm:$0xf0]  ;;  %v5540_v28 = vld [vmem:[#allocation2 + $0x144] sm:$0xf] }
  0x58   :  { %v4089_v27 = vor.u32 %v5544_v25, %v4086_v26  ;;  %v4073_v30 = vor.u32 %v5540_v28, %v4070_v29  ;;  %v4198_v4 = vld [vmem:[#allocation2 + $0x250] sm:$0xf0]  ;;  %v6362_v15 = vld [vmem:[%s6974_s2] sm:$0xff]  ;;  %v5599_v25 = vld [vmem:[#allocation2 + $0x314] sm:$0xf0] }
  0x59   :  { %1071 = vmatpush.bf16.msrb.mxu3 %v4009_v47  ;;  %1047 = vmatpush.bf16.msra.mxu2 %v4229_v50  ;;  %v3945_v47 = vor.u32 %v5508_v44, %v3942_v45  ;;  %v5570_v50 = vld [vmem:[#allocation2 + $0x22c] sm:$0xf0]  ;;  %v4294_v6 = vld [vmem:[#allocation2 + $0x310] sm:$0xf0]  ;;  %v4201_v7 = vor.u32 %v5572_v2, %v4198_v4  ;;  %v184_v16 = vperm.slane %v6362_v15, 0  ;;  %v186_v28 = vperm.slane %v6362_v15, 2 }
  0x5a   :  { %v4181_v52 = vor.u32 %v5570_v50, %v4180_v49  ;;  %v187_v29 = vperm.slane %v6362_v15, 3  ;;  %v4156_v44 = vld [vmem:[#allocation2 + $0x1e8] sm:$0xf]  ;;  %v5563_v45 = vld [vmem:[#allocation2 + $0x1f4] sm:$0xf0] }
  0x5b   :  { %1022 = vmatpush.bf16.msra.mxu0 %v3957_v38  ;;  %1035 = vmatpush.bf16.msra.mxu1 %v4085_v41  ;;  %v4249_v38 = vor.u32 %v5584_v33, %v4246_v35  ;;  %v5536_v41 = vld [vmem:[#allocation2 + $0x124] sm:$0xf]  ;;  %v5591_v35 = vld [vmem:[#allocation2 + $0x2d4] sm:$0xf0]  ;;  %v3996_v2 = vld [vmem:[#allocation2 + $0xa8] sm:$0xf] }
  0x5c   :  { %v4057_v43 = vor.u32 %v5536_v41, %v4054_v42  ;;  %v5587_v49 = vld [vmem:[#allocation2 + $0x2b4] sm:$0xf0] }
  0x5d   :  { %1072 = vmatpush.bf16.msrb.mxu3 %v3993_v59  ;;  %1048 = vmatpush.bf16.msra.mxu2 %v4213_v62  ;;  %v5576_v59 = vld [vmem:[#allocation2 + $0x264] sm:$0xf]  ;;  %v4164_v62 = vld [vmem:[#allocation2 + $0x200] sm:$0xf]  ;;  %v5523_v4 = vld [vmem:[#allocation2 + $0xb4] sm:$0xf0] }
  0x5e   :  { %v4217_v61 = vor.u32 %v5576_v59, %v4214_v60  ;;  %v4140_v59 = vld [vmem:[#allocation2 + $0x1c8] sm:$0xf]  ;;  %v5559_v60 = vld [vmem:[#allocation2 + $0x1d4] sm:$0xf0] }
  0x5f   :  { %1023 = vmatpush.bf16.msra.mxu0 %v3941_v51  ;;  %1036 = vmatpush.bf16.msra.mxu1 %v4069_v53  ;;  %v4233_v51 = vor.u32 %v5580_v46, %v4230_v48  ;;  %v5532_v53 = vld [vmem:[#allocation2 + $0x104] sm:$0xf]  ;;  %v4252_v48 = vld [vmem:[#allocation2 + $0x2a8] sm:$0xf] }
  0x60   :  { %v4041_v55 = vor.u32 %v5532_v53, %v4038_v54  ;;  %v4157_v53 = vor.u32 %v5563_v45, %v4156_v44  ;;  %v4012_v54 = vld [vmem:[#allocation2 + $0xc8] sm:$0xf]  ;;  %v4253_v57 = vor.u32 %v5587_v49, %v4252_v48  ;;  %v5543_v44 = vld [vmem:[#allocation2 + $0x154] sm:$0xf0]  ;;  %v5517_v49 = vld [vmem:[#allocation2 + $0x8c] sm:$0xf] }
  0x61   :  { %1073 = vmatpush.bf16.msrb.mxu3 %v3977_v8  ;;  %1049 = vmatpush.bf16.msra.mxu2 %v4197_v40  ;;  %v4297_v8 = vor.u32 %v5596_v5, %v4294_v6  ;;  %v4124_v5 = vld [vmem:[#allocation2 + $0x1a8] sm:$0xf]  ;;  %v5555_v6 = vld [vmem:[#allocation2 + $0x1b4] sm:$0xf0] }
  0x62   :  { %v5567_v48 = vld [vmem:[#allocation2 + $0x214] sm:$0xf0] }
  0x63   :  { %1024 = vmatpush.bf16.msra.mxu0 %v3925_v39  ;;  %1037 = vmatpush.bf16.msra.mxu1 %v4053_v1  ;;  %v5566_v39 = vld [vmem:[#allocation2 + $0x20c] sm:$0xf0]  ;;  %v3910_v1 = vld [vmem:[#allocation2 + $0x10] sm:$0xf0] }
  0x64   :  { %v4165_v63 = vor.u32 %v5566_v39, %v4164_v62  ;;  %v3913_v3 = vor.u32 %v5500_v0, %v3910_v1  ;;  %v5583_v62 = vld [vmem:[#allocation2 + $0x294] sm:$0xf0]  ;;  %v4141_v1 = vor.u32 %v5559_v60, %v4140_v59  ;;  %v4060_v59 = vld [vmem:[#allocation2 + $0x128] sm:$0xf] }
  0x65   :  { %1074 = vmatpush.bf16.msrb.mxu3 %v3961_v34  ;;  %1050 = vmatpush.bf16.msra.mxu2 %v4181_v52  ;;  %v4268_v34 = vld [vmem:[#allocation2 + $0x2c8] sm:$0xf]  ;;  %v5539_v60 = vld [vmem:[#allocation2 + $0x134] sm:$0xf0] }
  0x66   :  { %v4269_v42 = vor.u32 %v5591_v35, %v4268_v34  ;;  %v4188_v34 = vld [vmem:[#allocation2 + $0x228] sm:$0xf]  ;;  %v5571_v35 = vld [vmem:[#allocation2 + $0x234] sm:$0xf0] }
  0x67   :  { %1025 = vmatpush.bf16.msra.mxu0 %v3909_v9  ;;  %1038 = vmatpush.bf16.msra.mxu1 %v4037_v10  ;;  %v5568_v9 = vld [vmem:[#allocation2 + $0x224] sm:$0xf]  ;;  %v4182_v10 = vld [vmem:[#allocation2 + $0x230] sm:$0xf0]  ;;  %v4189_v45 = vor.u32 %v5571_v35, %v4188_v34  ;;  %v5553_v34 = vld [vmem:[#allocation2 + $0x1ac] sm:$0xf] }
  0x69   :  { %1075 = vmatpush.bf16.msrb.mxu3 %v3945_v47  ;;  %1051 = vmatpush.bf16.msra.mxu2 %v4165_v63 }
  0x6b   :  { %1083 = vmatpush.bf16.msrb.mxu0 %v4153_v11  ;;  %1096 = vmatpush.bf16.msrb.mxu1 %v4281_v13  ;;  %v4185_v11 = vor.u32 %v5568_v9, %v4182_v10  ;;  %v4166_v13 = vld [vmem:[#allocation2 + $0x210] sm:$0xf0]  ;;  %v5529_v9 = vld [vmem:[#allocation2 + $0xec] sm:$0xf]  ;;  %v4030_v10 = vld [vmem:[#allocation2 + $0xf8] sm:$0xf0] }
  0x6c   :  { %v4169_v14 = vor.u32 %v5564_v12, %v4166_v13  ;;  %v4125_v12 = vor.u32 %v5555_v6, %v4124_v5  ;;  %v3980_v13 = vld [vmem:[#allocation2 + $0x88] sm:$0xf]  ;;  %v5535_v6 = vld [vmem:[#allocation2 + $0x114] sm:$0xf0] }
  0x6d   :  { %1076 = vmatpush.bf16.msrb.mxu3 %v3929_v58  ;;  %1116 = vmatpush.bf16.msrb.mxu2 %v4297_v8  ;;  %v5527_v58 = vld [vmem:[#allocation2 + $0xd4] sm:$0xf0]  ;;  %v4044_v5 = vld [vmem:[#allocation2 + $0x108] sm:$0xf] }
  0x6e   :  { %v4013_v0 = vor.u32 %v5527_v58, %v4012_v54  ;;  %v5579_v8 = vld [vmem:[#allocation2 + $0x274] sm:$0xf0]  ;;  %v5597_v54 = vld [vmem:[#allocation2 + $0x30c] sm:$0xf] }
  0x6f   :  { %1084 = vmatpush.bf16.msrb.mxu0 %v4137_v17  ;;  %1097 = vmatpush.bf16.msrb.mxu1 %v4265_v18  ;;  %v185_v17 = vperm.slane %v6362_v15, 1  ;;  %v5507_v58 = vld [vmem:[#allocation2 + $0x34] sm:$0xf0] }
  0x71   :  { %1077 = vmatpush.bf16.msrb.mxu3 %v3913_v3 }
  0x73   :  { %1085 = vmatpush.bf16.msrb.mxu0 %v4121_v21  ;;  %1098 = vmatpush.bf16.msrb.mxu1 %v4249_v38  ;;  %v4028_v38 = vld [vmem:[#allocation2 + $0xe8] sm:$0xf] }
  0x77   :  { %1086 = vmatpush.bf16.msrb.mxu0 %v4105_v24  ;;  %1099 = vmatpush.bf16.msrb.mxu1 %v4233_v51  ;;  %v4300_v24 = vld [vmem:[#allocation2 + $0x308] sm:$0xf] }
  0x78   :  { %v4301_v31 = vor.u32 %v5599_v25, %v4300_v24 }
  0x7b   :  { %1087 = vmatpush.bf16.msrb.mxu0 %v4089_v27  ;;  %1100 = vmatpush.bf16.msrb.mxu1 %v4217_v61  ;;  %v4236_v61 = vld [vmem:[#allocation2 + $0x288] sm:$0xf] }
  0x7c   :  { %v4237_v3 = vor.u32 %v5583_v62, %v4236_v61 }
  0x7f   :  { %1088 = vmatpush.bf16.msrb.mxu0 %v4073_v30  ;;  %1101 = vmatpush.bf16.msrb.mxu1 %v4201_v7  ;;  %v4285_v30 = vor.u32 %v5595_v23, %v4284_v20  ;;  %v4220_v7 = vld [vmem:[#allocation2 + $0x268] sm:$0xf]  ;;  %v4014_v23 = vld [vmem:[#allocation2 + $0xd8] sm:$0xf0] }
  0x80   :  { %v4204_v20 = vld [vmem:[#allocation2 + $0x248] sm:$0xf] }
  0x83   :  { %1089 = vmatpush.bf16.msrb.mxu0 %v4057_v43  ;;  %1102 = vmatpush.bf16.msrb.mxu1 %v4185_v11  ;;  %v5531_v43 = vld [vmem:[#allocation2 + $0xf4] sm:$0xf0]  ;;  %v3997_v11 = vor.u32 %v5523_v4, %v3996_v2  ;;  %v4061_v2 = vor.u32 %v5539_v60, %v4060_v59  ;;  %v5581_v59 = vld [vmem:[#allocation2 + $0x28c] sm:$0xf]  ;;  %v4238_v60 = vld [vmem:[#allocation2 + $0x298] sm:$0xf0] }
  0x84   :  { %v4029_v52 = vor.u32 %v5531_v43, %v4028_v38  ;;  %v4076_v43 = vld [vmem:[#allocation2 + $0x148] sm:$0xf]  ;;  %v5503_v4 = vld [vmem:[#allocation2 + $0x14] sm:$0xf0] }
  0x87   :  { %1090 = vmatpush.bf16.msrb.mxu0 %v4041_v55  ;;  %1103 = vmatpush.bf16.msrb.mxu1 %v4169_v14  ;;  %v5519_v14 = vld [vmem:[#allocation2 + $0x94] sm:$0xf0] }
  0x88   :  { %v3981_v24 = vor.u32 %v5519_v14, %v3980_v13  ;;  %v3950_v13 = vld [vmem:[#allocation2 + $0x58] sm:$0xf0] }
  0xbf   :  { %v301_v18 = vpop.f32.mrf.mxu0  ;;  %v314_v19 = vpop.f32.mrf.mxu1 }
  0xc0   :  { %v302_v21 = vadd.f32 %v301_v18, %v184_v16  ;;  %v315_v22 = vadd.f32 %v314_v19, %v185_v17  ;;  %v4108_v16 = vld [vmem:[#allocation2 + $0x188] sm:$0xf]  ;;  %v5551_v17 = vld [vmem:[#allocation2 + $0x194] sm:$0xf0]  ;;  %v4221_v18 = vor.u32 %v5579_v8, %v4220_v7  ;;  %v4033_v19 = vor.u32 %v5529_v9, %v4030_v10  ;;  %v5561_v7 = vld [vmem:[#allocation2 + $0x1ec] sm:$0xf] }
  0xc1   :  { %v4109_v25 = vor.u32 %v5551_v17, %v4108_v16  ;;  %v4158_v9 = vld [vmem:[#allocation2 + $0x1f8] sm:$0xf0]  ;;  %v5593_v10 = vld [vmem:[#allocation2 + $0x2ec] sm:$0xf]  ;;  %v4045_v16 = vor.u32 %v5535_v6, %v4044_v5  ;;  %v5609_v5 = vld [vmem:[#allocation5 + $0x44] sm:$0xf0] }
  0xc2   :  { %v396_v26 = vmax.f32 %v302_v21, 0.0  ;;  %v397_v27 = vmax.f32 %v315_v22, 0.0  ;;  %v5575_v21 = vld [vmem:[#allocation2 + $0x254] sm:$0xf0]  ;;  %v5525_v22 = vld [vmem:[#allocation2 + $0xcc] sm:$0xf]  ;;  %v4161_v17 = vor.u32 %v5561_v7, %v4158_v9 }
  0xc3   :  { %v4094_v7 = vld [vmem:[#allocation2 + $0x178] sm:$0xf0] }
  0xc4   :  { %v6368_v32 = vpack.c.bf16 %v396_v26, %v396_v26  ;;  %v6370_v33 = vpack.c.bf16 %v397_v27, %v397_v27  ;;  %v3964_v26 = vld [vmem:[#allocation2 + $0x68] sm:$0xf]  ;;  %v5515_v27 = vld [vmem:[#allocation2 + $0x74] sm:$0xf0]  ;;  %v4222_v9 = vld [vmem:[#allocation2 + $0x278] sm:$0xf0] }
  0xc5   :  { %v3965_v38 = vor.u32 %v5515_v27, %v3964_v26  ;;  %v4368_v27 = vld [vmem:[#allocation5 + $0x70] sm:$0xf] }
  0xc6   :  { %1026 = vmatmul.bf16.vlgmr.msra.gmra.mxu0 %v6368_v32  ;;  %1039 = vmatmul.bf16.vlgmr.msra.gmra.mxu1 %v6370_v33 }
  0xc7   :  { %v327_v36 = vpop.f32.mrf.mxu2  ;;  %v340_v37 = vpop.f32.mrf.mxu3  ;;  %1148 = vmatpush.bf16.msra.mxu0 %v4285_v30  ;;  %1168 = vmatpush.bf16.msra.mxu1 %v4301_v31  ;;  %v4205_v30 = vor.u32 %v5575_v21, %v4204_v20  ;;  %v4017_v31 = vor.u32 %v5525_v22, %v4014_v23  ;;  %v4142_v21 = vld [vmem:[#allocation2 + $0x1d8] sm:$0xf0]  ;;  %v5589_v22 = vld [vmem:[#allocation2 + $0x2cc] sm:$0xf] }
  0xc8   :  { %v328_v40 = vadd.f32 %v327_v36, %v186_v28  ;;  %v341_v41 = vadd.f32 %v340_v37, %v187_v29  ;;  %v316_v46 = vpop.f32.mrf.mxu1  ;;  %v303_v47 = vpop.f32.mrf.mxu0  ;;  %v4092_v28 = vld [vmem:[#allocation2 + $0x168] sm:$0xf]  ;;  %v5547_v29 = vld [vmem:[#allocation2 + $0x174] sm:$0xf0]  ;;  %v5521_v36 = vld [vmem:[#allocation2 + $0xac] sm:$0xf] }
  0xc9   :  { %v3998_v37 = vld [vmem:[#allocation2 + $0xb8] sm:$0xf0]  ;;  %v4172_v47 = vld [vmem:[#allocation2 + $0x208] sm:$0xf] }
  0xca   :  { %v398_v50 = vmax.f32 %v328_v40, 0.0  ;;  %v399_v51 = vmax.f32 %v341_v41, 0.0  ;;  %v4093_v40 = vor.u32 %v5547_v29, %v4092_v28  ;;  %v3948_v41 = vld [vmem:[#allocation2 + $0x48] sm:$0xf]  ;;  %v4001_v46 = vor.u32 %v5521_v36, %v3998_v37  ;;  %v4270_v23 = vld [vmem:[#allocation2 + $0x2d8] sm:$0xf0] }
  0xcb   :  { %1149 = vmatpush.bf16.msra.mxu0 %v4269_v42  ;;  %v5511_v42 = vld [vmem:[#allocation2 + $0x54] sm:$0xf0]  ;;  %v4173_v61 = vor.u32 %v5567_v48, %v4172_v47  ;;  %v4360_v37 = vld [vmem:[#allocation5 + $0x60] sm:$0xf]  ;;  %v4432_v48 = vld [vmem:[#allocation5 + $0xf0] sm:$0xf] }
  0xcc   :  { %v6374_v55 = vpack.c.bf16 %v398_v50, %v398_v50  ;;  %v6376_v56 = vpack.c.bf16 %v399_v51, %v399_v51  ;;  %v3982_v50 = vld [vmem:[#allocation2 + $0x98] sm:$0xf0]  ;;  %v3949_v51 = vor.u32 %v5511_v42, %v3948_v41  ;;  %v5615_v28 = vld [vmem:[#allocation5 + $0x74] sm:$0xf0] }
  0xcd   :  { %v3985_v62 = vor.u32 %v5517_v49, %v3982_v50  ;;  %v4369_v35 = vor.u32 %v5615_v28, %v4368_v27  ;;  %v4126_v42 = vld [vmem:[#allocation2 + $0x1b8] sm:$0xf0]  ;;  %v5631_v49 = vld [vmem:[#allocation5 + $0xf4] sm:$0xf0] }
  0xce   :  { %1052 = vmatmul.bf16.vlgmr.msra.gmra.mxu2 %v6374_v55  ;;  %4306 = vmatmul.msk.bf16.vlgmr.msra.gmra.mxu3 %vm1014_vm3, %v6376_v56  ;;  %v4129_v50 = vor.u32 %v5553_v34, %v4126_v42  ;;  %v4190_v27 = vld [vmem:[#allocation2 + $0x238] sm:$0xf0]  ;;  %v4424_v42 = vld [vmem:[#allocation5 + $0xe0] sm:$0xf] }
  0xcf   :  { %1122 = vmatpush.bf16.msra.mxu2 %v4029_v52  ;;  %1135 = vmatpush.bf16.msra.mxu3 %v4157_v53  ;;  %v329_v39 = vpop.f32.mrf.mxu2  ;;  %v342_v63 = vpop.f32.mrf.mxu3  ;;  %v4077_v52 = vor.u32 %v5543_v44, %v4076_v43  ;;  %v3932_v53 = vld [vmem:[#allocation2 + $0x28] sm:$0xf]  ;;  %v5585_v43 = vld [vmem:[#allocation2 + $0x2ac] sm:$0xf]  ;;  %v4254_v44 = vld [vmem:[#allocation2 + $0x2b8] sm:$0xf0] }
  0xd0   :  { %1150 = vmatpush.bf16.msra.mxu0 %v4253_v57  ;;  %v4302_v57 = vld [vmem:[#allocation2 + $0x318] sm:$0xf0]  ;;  %v5513_v39 = vld [vmem:[#allocation2 + $0x6c] sm:$0xf]  ;;  %v6391_v29 = vpop.f32.mrf.mxu0  ;;  %v6393_v36 = vpop.f32.mrf.mxu1 }
  0xd1   :  { %v3966_v63 = vld [vmem:[#allocation2 + $0x78] sm:$0xf0] }
  0xd2   :  { %v3969_v8 = vor.u32 %v5513_v39, %v3966_v63  ;;  %v4174_v34 = vld [vmem:[#allocation2 + $0x218] sm:$0xf0] }
  0xd3   :  { %1123 = vmatpush.bf16.msra.mxu2 %v4013_v0  ;;  %1136 = vmatpush.bf16.msra.mxu3 %v4141_v1  ;;  %v4305_v0 = vor.u32 %v5597_v54, %v4302_v57  ;;  %v3933_v1 = vor.u32 %v5507_v58, %v3932_v53  ;;  %v4352_v53 = vld [vmem:[#allocation5 + $0x50] sm:$0xf]  ;;  %v5611_v54 = vld [vmem:[#allocation5 + $0x54] sm:$0xf0]  ;;  %v4110_v58 = vld [vmem:[#allocation2 + $0x198] sm:$0xf0] }
  0xd4   :  { %1151 = vmatpush.bf16.msra.mxu0 %v4237_v3  ;;  %v3916_v3 = vld [vmem:[#allocation2 + $0x8] sm:$0xf]  ;;  %v4353_v39 = vor.u32 %v5611_v54, %v4352_v53  ;;  %v4408_v54 = vld [vmem:[#allocation5 + $0xc0] sm:$0xf] }
  0xd5   :  { %v3917_v14 = vor.u32 %v5503_v4, %v3916_v3  ;;  %v4344_v4 = vld [vmem:[#allocation5 + $0x40] sm:$0xf]  ;;  %v5601_v53 = vld [vmem:[#allocation5 + $0x4] sm:$0xf0] }
  0xd6   :  { %1091 = vmatmul.bf16.vlgmr.msrb.gmra.mxu0 %v6370_v33  ;;  %1104 = vmatmul.bf16.vlgmr.msrb.gmra.mxu1 %v6374_v55 }
  0xd7   :  { %1124 = vmatpush.bf16.msra.mxu2 %v3997_v11  ;;  %1137 = vmatpush.bf16.msra.mxu3 %v4125_v12  ;;  %v4286_v11 = vld [vmem:[#allocation2 + $0x2f8] sm:$0xf0]  ;;  %v5509_v12 = vld [vmem:[#allocation2 + $0x4c] sm:$0xf]  ;;  %v6389_v26 = vpop.f32.mrf.mxu3 }
  0xd8   :  { %1152 = vmatpush.bf16.msra.mxu0 %v4221_v18  ;;  %1174 = vmatpush.bf16.msrb.mxu1 %v4033_v19  ;;  %v4289_v18 = vor.u32 %v5593_v10, %v4286_v11  ;;  %v5557_v19 = vld [vmem:[#allocation2 + $0x1cc] sm:$0xf]  ;;  %v3953_v20 = vor.u32 %v5509_v12, %v3950_v13  ;;  %v355_v63 = vpop.f32.mrf.mxu0  ;;  %v368_v3 = vpop.f32.mrf.mxu1  ;;  %v4345_v10 = vor.u32 %v5609_v5, %v4344_v4  ;;  %v5626_v5 = vld [vmem:[#allocation5 + $0xd4] sm:$0xf] }
  0xd9   :  { %v5541_v13 = vld [vmem:[#allocation2 + $0x14c] sm:$0xf]  ;;  %v5628_v63 = vld [vmem:[#allocation5 + $0xe4] sm:$0xf]  ;;  %v5621_v3 = vld [vmem:[#allocation5 + $0xa4] sm:$0xf0] }
  0xdb   :  { %1125 = vmatpush.bf16.msra.mxu2 %v3981_v24  ;;  %1138 = vmatpush.bf16.msra.mxu3 %v4109_v25  ;;  %v5505_v24 = vld [vmem:[#allocation2 + $0x2c] sm:$0xf]  ;;  %v3934_v25 = vld [vmem:[#allocation2 + $0x38] sm:$0xf0] }
  0xdc   :  { %1153 = vmatpush.bf16.msra.mxu0 %v4205_v30  ;;  %1175 = vmatpush.bf16.msrb.mxu1 %v4017_v31  ;;  %v4145_v30 = vor.u32 %v5557_v19, %v4142_v21  ;;  %v4273_v31 = vor.u32 %v5589_v22, %v4270_v23  ;;  %v3937_v41 = vor.u32 %v5505_v24, %v3934_v25  ;;  %v4206_v19 = vld [vmem:[#allocation2 + $0x258] sm:$0xf0]  ;;  %v5537_v23 = vld [vmem:[#allocation2 + $0x12c] sm:$0xf] }
  0xdd   :  { %v4062_v24 = vld [vmem:[#allocation2 + $0x138] sm:$0xf0]  ;;  %v5569_v25 = vld [vmem:[#allocation2 + $0x22c] sm:$0xf] }
  0xde   :  { %1078 = vmatmul.bf16.vlgmr.msrb.gmra.mxu3 %v6368_v32  ;;  %4307 = vmatmul.msk.bf16.vlgmr.msrb.gmra.mxu2 %vm1014_vm3, %v6376_v56  ;;  %v4193_v28 = vor.u32 %v5569_v25, %v4190_v27 }
  0xdf   :  { %1126 = vmatpush.bf16.msra.mxu2 %v3965_v38  ;;  %1139 = vmatpush.bf16.msra.mxu3 %v4093_v40  ;;  %v5613_v38 = vld [vmem:[#allocation5 + $0x64] sm:$0xf0]  ;;  %v6395_v40 = vpop.f32.mrf.mxu2 }
  0xe0   :  { %1154 = vmatpush.bf16.msra.mxu0 %v4189_v45  ;;  %1176 = vmatpush.bf16.msrb.mxu1 %v4001_v46  ;;  %v5501_v45 = vld [vmem:[#allocation2 + $0xc] sm:$0xf]  ;;  %v3918_v46 = vld [vmem:[#allocation2 + $0x18] sm:$0xf0]  ;;  %v4361_v47 = vor.u32 %v5613_v38, %v4360_v37  ;;  %v4328_v38 = vld [vmem:[#allocation5 + $0x20] sm:$0xf] }
  0xe1   :  { %v3921_v57 = vor.u32 %v5501_v45, %v3918_v46  ;;  %v4320_v45 = vld [vmem:[#allocation5 + $0x10] sm:$0xf]  ;;  %v5603_v46 = vld [vmem:[#allocation5 + $0x14] sm:$0xf0] }
  0xe3   :  { %1127 = vmatpush.bf16.msra.mxu2 %v3949_v51  ;;  %1140 = vmatpush.bf16.msra.mxu3 %v4077_v52  ;;  %v4257_v51 = vor.u32 %v5585_v43, %v4254_v44  ;;  %v5549_v52 = vld [vmem:[#allocation2 + $0x18c] sm:$0xf]  ;;  %v5629_v44 = vld [vmem:[#allocation5 + $0xe4] sm:$0xf0] }
  0xe4   :  { %1155 = vmatpush.bf16.msra.mxu0 %v4173_v61  ;;  %1177 = vmatpush.bf16.msrb.mxu1 %v3985_v62  ;;  %v4433_v61 = vor.u32 %v5631_v49, %v4432_v48  ;;  %v394_v62 = vpop.f32.mrf.mxu3  ;;  %v4416_v48 = vld [vmem:[#allocation5 + $0xd0] sm:$0xf]  ;;  %v5627_v49 = vld [vmem:[#allocation5 + $0xd4] sm:$0xf0] }
  0xe5   :  { %v5623_v62 = vld [vmem:[#allocation5 + $0xb4] sm:$0xf0] }
  0xe6   :  { %4308 = vmatmul.msk.bf16.vlgmr.msra.gmra.mxu1 %vm1014_vm3, %v6376_v56 }
  0xe7   :  { %1128 = vmatpush.bf16.msra.mxu2 %v3933_v1  ;;  %1141 = vmatpush.bf16.msra.mxu3 %v4061_v2  ;;  %v4241_v1 = vor.u32 %v5581_v59, %v4238_v60  ;;  %v5545_v2 = vld [vmem:[#allocation2 + $0x16c] sm:$0xf]  ;;  %v381_v6 = vpop.f32.mrf.mxu2  ;;  %v4434_v59 = vld [vmem:[#allocation5 + $0xf8] sm:$0xf0] }
  0xe8   :  { %1220 = vmatpush.bf16.msrb.mxu0 %v4305_v0  ;;  %1178 = vmatpush.bf16.msrb.mxu1 %v3969_v8  ;;  %v4113_v0 = vor.u32 %v5549_v52, %v4110_v58  ;;  %v5577_v8 = vld [vmem:[#allocation2 + $0x26c] sm:$0xf]  ;;  %v4097_v11 = vor.u32 %v5545_v2, %v4094_v7  ;;  %v4312_v52 = vld [vmem:[#allocation5] sm:$0xf]  ;;  %v5630_v58 = vld [vmem:[#allocation5 + $0xf4] sm:$0xf] }
  0xe9   :  { %1156 = vmatmul.bf16.vlgmr.msra.gmra.mxu0 %v6374_v55  ;;  %v4225_v12 = vor.u32 %v5577_v8, %v4222_v9  ;;  %v4437_v60 = vor.u32 %v5630_v58, %v4434_v59  ;;  %v4392_v2 = vld [vmem:[#allocation5 + $0xa0] sm:$0xf]  ;;  %v4418_v6 = vld [vmem:[#allocation5 + $0xd8] sm:$0xf0]  ;;  %v4384_v8 = vld [vmem:[#allocation5 + $0x90] sm:$0xf] }
  0xea   :  { %v4393_v4 = vor.u32 %v5621_v3, %v4392_v2  ;;  %v4421_v7 = vor.u32 %v5626_v5, %v4418_v6  ;;  %v5619_v9 = vld [vmem:[#allocation5 + $0x94] sm:$0xf0]  ;;  %v4464_v2 = vld [vmem:[#allocation5 + $0x130] sm:$0xf]  ;;  %v188_v5 = vperm.slane %v6362_v15, 4 }
  0xeb   :  { %1129 = vmatpush.bf16.msra.mxu2 %v3917_v14  ;;  %1142 = vmatpush.bf16.msra.mxu3 %v4045_v16  ;;  %v4336_v14 = vld [vmem:[#allocation5 + $0x30] sm:$0xf]  ;;  %v5607_v16 = vld [vmem:[#allocation5 + $0x34] sm:$0xf0] }
  0xec   :  { %1179 = vmatpush.bf16.msrb.mxu1 %v3953_v20  ;;  %1551 = vmatpush.bf16.msra.mxu0 %v4369_v35  ;;  %v4337_v20 = vor.u32 %v5607_v16, %v4336_v14  ;;  %v4376_v14 = vld [vmem:[#allocation5 + $0x80] sm:$0xf]  ;;  %v5617_v16 = vld [vmem:[#allocation5 + $0x84] sm:$0xf0]  ;;  %v5639_v3 = vld [vmem:[#allocation5 + $0x134] sm:$0xf0] }
  0xed   :  { %v4465_v6 = vor.u32 %v5639_v3, %v4464_v2 }
  0xee   :  { %1130 = vmatmul.bf16.vlgmr.msra.gmra.mxu2 %v6368_v32  ;;  %1143 = vmatmul.bf16.vlgmr.msra.gmra.mxu3 %v6370_v33 }
  0xef   :  { %1187 = vmatpush.bf16.msrb.mxu2 %v4161_v17  ;;  %1200 = vmatpush.bf16.msrb.mxu3 %v4289_v18  ;;  %v4078_v17 = vld [vmem:[#allocation2 + $0x158] sm:$0xf0]  ;;  %v5573_v18 = vld [vmem:[#allocation2 + $0x24c] sm:$0xf] }
  0xf0   :  { %1180 = vmatpush.bf16.msrb.mxu1 %v3937_v41  ;;  %1552 = vmatpush.bf16.msra.mxu0 %v4361_v47  ;;  %v4081_v21 = vor.u32 %v5541_v13, %v4078_v17  ;;  %v4209_v22 = vor.u32 %v5573_v18, %v4206_v19  ;;  %v5605_v41 = vld [vmem:[#allocation5 + $0x24] sm:$0xf0]  ;;  %v4425_v47 = vor.u32 %v5629_v44, %v4424_v42  ;;  %v4496_v18 = vld [vmem:[#allocation5 + $0x170] sm:$0xf]  ;;  %v5647_v19 = vld [vmem:[#allocation5 + $0x174] sm:$0xf0] }
  0xf1   :  { %v4329_v43 = vor.u32 %v5605_v41, %v4328_v38  ;;  %v4377_v17 = vor.u32 %v5617_v16, %v4376_v14  ;;  %v5644_v38 = vld [vmem:[#allocation5 + $0x164] sm:$0xf]  ;;  %v4490_v41 = vld [vmem:[#allocation5 + $0x168] sm:$0xf0]  ;;  %v354_v16 = vadd.f32 %v6391_v29, %v188_v5 }
  0xf2   :  { %v5636_v14 = vld [vmem:[#allocation5 + $0x124] sm:$0xf] }
  0xf3   :  { %1188 = vmatpush.bf16.msrb.mxu2 %v4145_v30  ;;  %1201 = vmatpush.bf16.msrb.mxu3 %v4273_v31  ;;  %v5533_v30 = vld [vmem:[#allocation2 + $0x10c] sm:$0xf]  ;;  %v5612_v5 = vld [vmem:[#allocation5 + $0x64] sm:$0xf] }
  0xf4   :  { %1181 = vmatpush.bf16.msrb.mxu1 %v3921_v57  ;;  %1553 = vmatpush.bf16.msra.mxu0 %v4353_v39  ;;  %v5565_v31 = vld [vmem:[#allocation2 + $0x20c] sm:$0xf] }
  0xf5   :  { %v4177_v37 = vor.u32 %v5565_v31, %v4174_v34 }
  0xf7   :  { %1189 = vmatpush.bf16.msrb.mxu2 %v4129_v50  ;;  %1202 = vmatpush.bf16.msrb.mxu3 %v4257_v51  ;;  %v4321_v50 = vor.u32 %v5603_v46, %v4320_v45  ;;  %v4417_v51 = vor.u32 %v5627_v49, %v4416_v48  ;;  %v4480_v45 = vld [vmem:[#allocation5 + $0x150] sm:$0xf]  ;;  %v5643_v46 = vld [vmem:[#allocation5 + $0x154] sm:$0xf0]  ;;  %v4386_v49 = vld [vmem:[#allocation5 + $0x98] sm:$0xf0] }
  0xf8   :  { %1564 = vmatpush.bf16.msra.mxu1 %v4433_v61  ;;  %1554 = vmatpush.bf16.msra.mxu0 %v4345_v10  ;;  %v4400_v61 = vld [vmem:[#allocation5 + $0xb0] sm:$0xf]  ;;  %v4385_v10 = vor.u32 %v5619_v9, %v4384_v8  ;;  %v4481_v48 = vor.u32 %v5643_v46, %v4480_v45 }
  0xf9   :  { %1182 = vmatmul.bf16.vlgmr.msrb.gmra.mxu1 %v6368_v32  ;;  %4309 = vmatmul.msk.bf16.vlgmr.msrb.gmra.mxu0 %vm1014_vm3, %v6376_v56  ;;  %v4065_v32 = vor.u32 %v5537_v23, %v4062_v24  ;;  %v4046_v56 = vld [vmem:[#allocation2 + $0x118] sm:$0xf0]  ;;  %v4401_v39 = vor.u32 %v5623_v62, %v4400_v61  ;;  %v5646_v23 = vld [vmem:[#allocation5 + $0x174] sm:$0xf]  ;;  %v4378_v61 = vld [vmem:[#allocation5 + $0x88] sm:$0xf0] }
  0xfa   :  { %v4049_v35 = vor.u32 %v5533_v30, %v4046_v56  ;;  %v4498_v24 = vld [vmem:[#allocation5 + $0x178] sm:$0xf0]  ;;  %v5645_v30 = vld [vmem:[#allocation5 + $0x164] sm:$0xf0]  ;;  %v5620_v56 = vld [vmem:[#allocation5 + $0xa4] sm:$0xf] }
  0xfb   :  { %1190 = vmatpush.bf16.msrb.mxu2 %v4113_v0  ;;  %1203 = vmatpush.bf16.msrb.mxu3 %v4241_v1  ;;  %v4426_v0 = vld [vmem:[#allocation5 + $0xe8] sm:$0xf0]  ;;  %v4501_v27 = vor.u32 %v5646_v23, %v4498_v24  ;;  %v5640_v62 = vld [vmem:[#allocation5 + $0x144] sm:$0xf]  ;;  %v4448_v24 = vld [vmem:[#allocation5 + $0x110] sm:$0xf] }
  0xfc   :  { %1555 = vmatpush.bf16.msra.mxu0 %v4337_v20  ;;  %1565 = vmatpush.bf16.msra.mxu1 %v4425_v47  ;;  %v4429_v1 = vor.u32 %v5628_v63, %v4426_v0  ;;  %v5622_v20 = vld [vmem:[#allocation5 + $0xb4] sm:$0xf] }
  0xfd   :  { %v5618_v47 = vld [vmem:[#allocation5 + $0x94] sm:$0xf] }
  0xff   :  { %1191 = vmatpush.bf16.msrb.mxu2 %v4097_v11  ;;  %1204 = vmatpush.bf16.msrb.mxu3 %v4225_v12  ;;  %v5624_v11 = vld [vmem:[#allocation5 + $0xc4] sm:$0xf]  ;;  %v4410_v12 = vld [vmem:[#allocation5 + $0xc8] sm:$0xf0] }
 0x100   :  { %1556 = vmatpush.bf16.msra.mxu0 %v4329_v43  ;;  %1566 = vmatpush.bf16.msra.mxu1 %v4417_v51  ;;  %v4413_v13 = vor.u32 %v5624_v11, %v4410_v12  ;;  %v4493_v43 = vor.u32 %v5644_v38, %v4490_v41  ;;  %v4482_v51 = vld [vmem:[#allocation5 + $0x158] sm:$0xf0]  ;;  %v4456_v12 = vld [vmem:[#allocation5 + $0x120] sm:$0xf]  ;;  %v5633_v38 = vld [vmem:[#allocation5 + $0x104] sm:$0xf0] }
 0x101   :  { %v5632_v41 = vld [vmem:[#allocation5 + $0x104] sm:$0xf] }
 0x103   :  { %1192 = vmatpush.bf16.msrb.mxu2 %v4081_v21  ;;  %1205 = vmatpush.bf16.msrb.mxu3 %v4209_v22  ;;  %v4497_v21 = vor.u32 %v5647_v19, %v4496_v18  ;;  %v4402_v22 = vld [vmem:[#allocation5 + $0xb8] sm:$0xf0]  ;;  %v4458_v19 = vld [vmem:[#allocation5 + $0x128] sm:$0xf0] }
 0x104   :  { %1557 = vmatpush.bf16.msra.mxu0 %v4321_v50  ;;  %v4405_v25 = vor.u32 %v5622_v20, %v4402_v22  ;;  %v5642_v50 = vld [vmem:[#allocation5 + $0x154] sm:$0xf]  ;;  %v4461_v22 = vor.u32 %v5636_v14, %v4458_v19  ;;  %v5608_v19 = vld [vmem:[#allocation5 + $0x44] sm:$0xf] }
 0x107   :  { %1193 = vmatpush.bf16.msrb.mxu2 %v4065_v32  ;;  %1206 = vmatpush.bf16.msrb.mxu3 %v4193_v28  ;;  %v6407_v32 = vld [vmem:[%s6975_s15] sm:$0xf] }
 0x108   :  { %v4488_v28 = vld [vmem:[#allocation5 + $0x160] sm:$0xf]  ;;  %v506_v44 = vperm.slane %v6407_v32, 0 }
 0x10b   :  { %1194 = vmatpush.bf16.msrb.mxu2 %v4049_v35  ;;  %1207 = vmatpush.bf16.msrb.mxu3 %v4177_v37  ;;  %v4489_v35 = vor.u32 %v5645_v30, %v4488_v28  ;;  %v4394_v37 = vld [vmem:[#allocation5 + $0xa8] sm:$0xf0] }
 0x10c   :  { %v4397_v42 = vor.u32 %v5620_v56, %v4394_v37  ;;  %v4450_v56 = vld [vmem:[#allocation5 + $0x118] sm:$0xf0]  ;;  %v4440_v37 = vld [vmem:[#allocation5 + $0x100] sm:$0xf] }
 0x10e   :  { %1195 = vmatmul.bf16.vlgmr.msrb.gmra.mxu2 %v6370_v33  ;;  %1208 = vmatmul.bf16.vlgmr.msrb.gmra.mxu3 %v6374_v55  ;;  %v4313_v33 = vor.u32 %v5601_v53, %v4312_v52  ;;  %v5625_v55 = vld [vmem:[#allocation5 + $0xc4] sm:$0xf0]  ;;  %v4389_v52 = vor.u32 %v5618_v47, %v4386_v49  ;;  %v4485_v53 = vor.u32 %v5642_v50, %v4482_v51  ;;  %v507_v47 = vperm.slane %v6407_v32, 1  ;;  %v5614_v50 = vld [vmem:[#allocation5 + $0x74] sm:$0xf] }
 0x10f   :  { %v4409_v57 = vor.u32 %v5625_v55, %v4408_v54  ;;  %1577 = vmatpush.bf16.msra.mxu2 %v4497_v21  ;;  %v5641_v55 = vld [vmem:[#allocation5 + $0x144] sm:$0xf0] }
 0x110   :  { %1558 = vmatpush.bf16.msra.mxu0 %v4313_v33  ;;  %v4472_v33 = vld [vmem:[#allocation5 + $0x140] sm:$0xf]  ;;  %v5649_v49 = vld [vmem:[#allocation5 + $0x184] sm:$0xf0] }
 0x111   :  { %1567 = vmatpush.bf16.msra.mxu1 %v4409_v57  ;;  %v5616_v57 = vld [vmem:[#allocation5 + $0x84] sm:$0xf] }
 0x112   :  { %v4381_v63 = vor.u32 %v5616_v57, %v4378_v61  ;;  %v189_v57 = vperm.slane %v6362_v15, 5 }
 0x113   :  { %1578 = vmatpush.bf16.msra.mxu2 %v4489_v35 }
 0x114   :  { %1616 = vmatpush.bf16.msrb.mxu0 %v4437_v60  ;;  %v4473_v60 = vor.u32 %v5641_v55, %v4472_v33 }
 0x115   :  { %1568 = vmatpush.bf16.msra.mxu1 %v4401_v39  ;;  %v4474_v39 = vld [vmem:[#allocation5 + $0x148] sm:$0xf0] }
 0x116   :  { %v4477_v0 = vor.u32 %v5640_v62, %v4474_v39  ;;  %v367_v62 = vadd.f32 %v6393_v36, %v189_v57  ;;  %v5610_v36 = vld [vmem:[#allocation5 + $0x54] sm:$0xf]  ;;  %v5926_v57 = vld [vmem:[%s6974_s2] sm:$0xff]  ;;  %s6977_s2 = sld [smem:[#allocation25_spill]] }
 0x117   :  { %1579 = vmatpush.bf16.msra.mxu2 %v4481_v48  ;;  %v4504_v48 = vld [vmem:[#allocation5 + $0x180] sm:$0xf] }
 0x118   :  { %1617 = vmatpush.bf16.msrb.mxu0 %v4429_v1 }
 0x119   :  { %1569 = vmatpush.bf16.msra.mxu1 %v4393_v4  ;;  %v5638_v4 = vld [vmem:[#allocation5 + $0x134] sm:$0xf] }
 0x11b   :  { %1580 = vmatpush.bf16.msra.mxu2 %v4473_v60 }
 0x11c   :  { %1618 = vmatpush.bf16.msrb.mxu0 %v4421_v7  ;;  %v4466_v7 = vld [vmem:[#allocation5 + $0x138] sm:$0xf0] }
 0x11d   :  { %1570 = vmatpush.bf16.msra.mxu1 %v4385_v10  ;;  %v4469_v10 = vor.u32 %v5638_v4, %v4466_v7 }
 0x11f   :  { %1581 = vmatpush.bf16.msra.mxu2 %v4465_v6  ;;  %v4362_v6 = vld [vmem:[#allocation5 + $0x68] sm:$0xf0] }
 0x120   :  { %1619 = vmatpush.bf16.msrb.mxu0 %v4413_v13  ;;  %v5637_v13 = vld [vmem:[#allocation5 + $0x124] sm:$0xf0] }
 0x121   :  { %1571 = vmatpush.bf16.msra.mxu1 %v4377_v17  ;;  %v4457_v18 = vor.u32 %v5637_v13, %v4456_v12  ;;  %v4354_v12 = vld [vmem:[#allocation5 + $0x58] sm:$0xf0] }
 0x122   :  { %v4357_v14 = vor.u32 %v5610_v36, %v4354_v12  ;;  %v4564_v12 = vld [vmem:[%s6976_s0 + $0x68] sm:$0xf0] }
 0x123   :  { %1582 = vmatpush.bf16.msra.mxu2 %v4457_v18 }
 0x124   :  { %1620 = vmatpush.bf16.msrb.mxu0 %v4405_v25  ;;  %v5635_v25 = vld [vmem:[#allocation5 + $0x114] sm:$0xf0] }
 0x125   :  { %1629 = vmatpush.bf16.msrb.mxu1 %v4501_v27  ;;  %v5634_v27 = vld [vmem:[#allocation5 + $0x114] sm:$0xf]  ;;  %v4449_v30 = vor.u32 %v5635_v25, %v4448_v24 }
 0x126   :  { %v4453_v29 = vor.u32 %v5634_v27, %v4450_v56  ;;  %v4506_v27 = vld [vmem:[#allocation5 + $0x188] sm:$0xf0] }
 0x127   :  { %1583 = vmatpush.bf16.msra.mxu2 %v4449_v30 }
 0x128   :  { %1621 = vmatpush.bf16.msrb.mxu0 %v4397_v42  ;;  %v4441_v42 = vor.u32 %v5633_v38, %v4440_v37 }
 0x129   :  { %1630 = vmatpush.bf16.msrb.mxu1 %v4493_v43  ;;  %v4442_v43 = vld [vmem:[#allocation5 + $0x108] sm:$0xf0] }
 0x12a   :  { %v4445_v46 = vor.u32 %v5632_v41, %v4442_v43  ;;  %v5604_v41 = vld [vmem:[#allocation5 + $0x24] sm:$0xf] }
 0x12b   :  { %1584 = vmatpush.bf16.msra.mxu2 %v4441_v42  ;;  %v4330_v42 = vld [vmem:[#allocation5 + $0x28] sm:$0xf0] }
 0x12c   :  { %1622 = vmatpush.bf16.msrb.mxu0 %v4389_v52 }
 0x12d   :  { %1631 = vmatpush.bf16.msrb.mxu1 %v4485_v53  ;;  %v4505_v53 = vor.u32 %v5649_v49, %v4504_v48  ;;  %v4322_v48 = vld [vmem:[#allocation5 + $0x18] sm:$0xf0] }
 0x12f   :  { %1597 = vmatpush.bf16.msra.mxu3 %v4505_v53  ;;  %v509_v53 = vperm.slane %v6407_v32, 3 }
 0x130   :  { %1623 = vmatpush.bf16.msrb.mxu0 %v4381_v63 }
 0x131   :  { %1632 = vmatpush.bf16.msrb.mxu1 %v4477_v0 }
 0x135   :  { %1633 = vmatpush.bf16.msrb.mxu1 %v4469_v10 }
 0x139   :  { %1634 = vmatpush.bf16.msrb.mxu1 %v4461_v22 }
 0x13d   :  { %1635 = vmatpush.bf16.msrb.mxu1 %v4453_v29  ;;  %v4338_v29 = vld [vmem:[#allocation5 + $0x38] sm:$0xf0] }
 0x141   :  { %1636 = vmatpush.bf16.msrb.mxu1 %v4445_v46 }
 0x143   :  { %v1027_v31 = vpop.f32.mrf.mxu0  ;;  %v1040_v34 = vpop.f32.mrf.mxu1 }
 0x144   :  { %v1028_v54 = vadd.f32 %v1027_v31, %v506_v44 }
 0x146   :  { %v1041_v1 = vadd.f32 %v1040_v34, %v1028_v54  ;;  %v4370_v54 = vld [vmem:[#allocation5 + $0x78] sm:$0xf0] }
 0x147   :  { %v4373_v55 = vor.u32 %v5614_v50, %v4370_v54  ;;  %v5600_v50 = vld [vmem:[#allocation5 + $0x4] sm:$0xf] }
 0x149   :  { %1603 = vmatpush.bf16.msrb.mxu3 %v4373_v55 }
 0x14b   :  { %v1029_v58 = vpop.f32.mrf.mxu0  ;;  %v1042_v59 = vpop.f32.mrf.mxu1 }
 0x151   :  { %v1053_v8 = vpop.f32.mrf.mxu2  ;;  %v1066_v9 = vpop.f32.mrf.mxu3 }
 0x152   :  { %v1054_v11 = vadd.f32 %v1053_v8, %v1041_v1  ;;  %v508_v8 = vperm.slane %v6407_v32, 2 }
 0x153   :  { %v1092_v20 = vpop.f32.mrf.mxu0  ;;  %v1105_v21 = vpop.f32.mrf.mxu1 }
 0x154   :  { %v6412_v17 = vadd.f32 %v1066_v9, %v1054_v11  ;;  %v4365_v9 = vor.u32 %v5612_v5, %v4362_v6  ;;  %v5665_v5 = vld [vmem:[%s6976_s0 + $0x74] sm:$0xf0]  ;;  %v5664_v6 = vld [vmem:[%s6976_s0 + $0x74] sm:$0xf] }
 0x156   :  { %v1226_v23 = vmul.f32 %v6412_v17, %v354_v16  ;;  %1604 = vmatpush.bf16.msrb.mxu3 %v4365_v9  ;;  %v190_v16 = vperm.slane %v6362_v15, 6  ;;  %v5606_v15 = vld [vmem:[#allocation5 + $0x34] sm:$0xf]  ;;  %v4562_v9 = vld [vmem:[%s6976_s0 + $0x60] sm:$0xf] }
 0x157   :  { %v4341_v38 = vor.u32 %v5606_v15, %v4338_v29  ;;  %v5657_v15 = vld [vmem:[%s6976_s0 + $0x34] sm:$0xf0]  ;;  %v5656_v29 = vld [vmem:[%s6976_s0 + $0x34] sm:$0xf] }
 0x158   :  { %v1234_v28 = vmax.f32 %v1226_v23, 0.0  ;;  %v380_v30 = vadd.f32 %v6395_v40, %v190_v16  ;;  %v5602_v40 = vld [vmem:[#allocation5 + $0x14] sm:$0xf]  ;;  %v5661_v16 = vld [vmem:[%s6976_s0 + $0x54] sm:$0xf0] }
 0x159   :  { %v1055_v31 = vpop.f32.mrf.mxu2  ;;  %v1068_v34 = vpop.f32.mrf.mxu3  ;;  %v4325_v49 = vor.u32 %v5602_v40, %v4322_v48  ;;  %v4530_v40 = vld [vmem:[%s6976_s0 + $0x20] sm:$0xf]  ;;  %v5655_v48 = vld [vmem:[%s6976_s0 + $0x24] sm:$0xf0] }
 0x15a   :  { %v6415_v35 = vpack.c.bf16 %v1234_v28, %v1234_v28  ;;  %1605 = vmatpush.bf16.msrb.mxu3 %v4357_v14  ;;  %v4554_v14 = vld [vmem:[%s6976_s0 + $0x50] sm:$0xf] }
 0x15b   :  { %v1094_v44 = vpop.f32.mrf.mxu0  ;;  %v1107_v45 = vpop.f32.mrf.mxu1 }
 0x15c   :  { %1559 = vmatmul.bf16.vlgmr.msra.gmra.mxu0 %v6415_v35  ;;  %v4333_v44 = vor.u32 %v5604_v41, %v4330_v42  ;;  %v5681_v41 = vld [vmem:[%s6976_s0 + $0xf4] sm:$0xf0] }
 0x161   :  { %v1079_v51 = vpop.f32.mrf.mxu3  ;;  %v1118_v52 = vpop.f32.mrf.mxu2 }
 0x162   :  { %v1080_v33 = vadd.f32 %v1079_v51, %v507_v47  ;;  %v4314_v51 = vld [vmem:[#allocation5 + $0x8] sm:$0xf0] }
 0x163   :  { %v1170_v60 = vpop.f32.mrf.mxu1 }
 0x164   :  { %v1093_v58 = vadd.f32 %v1092_v20, %v1080_v33  ;;  %v4346_v20 = vld [vmem:[#allocation5 + $0x48] sm:$0xf0] }
 0x165   :  { %v4349_v25 = vor.u32 %v5608_v19, %v4346_v20  ;;  %v4555_v19 = vor.u32 %v5661_v16, %v4554_v14  ;;  %v4556_v20 = vld [vmem:[%s6976_s0 + $0x58] sm:$0xf0] }
 0x166   :  { %v1157_v59 = vpop.f32.mrf.mxu0  ;;  %v1106_v61 = vadd.f32 %v1105_v21, %v1093_v58  ;;  %v5648_v21 = vld [vmem:[#allocation5 + $0x184] sm:$0xf]  ;;  %v191_v58 = vperm.slane %v5926_v57, 7  ;;  %v5652_v57 = vld [vmem:[%s6976_s0 + $0x14] sm:$0xf] }
 0x167   :  { %v4509_v28 = vor.u32 %v5648_v21, %v4506_v27  ;;  %1606 = vmatpush.bf16.msrb.mxu3 %v4349_v25  ;;  %v4546_v21 = vld [vmem:[%s6976_s0 + $0x40] sm:$0xf]  ;;  %v5658_v27 = vld [vmem:[%s6976_s0 + $0x44] sm:$0xf] }
 0x168   :  { %v6421_v39 = vadd.f32 %v1118_v52, %v1106_v61  ;;  %v4317_v52 = vor.u32 %v5600_v50, %v4314_v51  ;;  %v393_v61 = vadd.f32 %v6389_v26, %v191_v58  ;;  %v4570_v26 = vld [vmem:[%s6976_s0 + $0x70] sm:$0xf]  ;;  %v4532_v50 = vld [vmem:[%s6976_s0 + $0x28] sm:$0xf0] }
 0x169   :  { %v1081_v63 = vpop.f32.mrf.mxu3  ;;  %v1120_v0 = vpop.f32.mrf.mxu2  ;;  %1649 = vmatpush.bf16.msrb.mxu2 %v4509_v28  ;;  %v4548_v28 = vld [vmem:[%s6976_s0 + $0x48] sm:$0xf0] }
 0x16a   :  { %v1227_v1 = vmul.f32 %v6421_v39, %v367_v62 }
 0x16b   :  { %v1172_v4 = vpop.f32.mrf.mxu1  ;;  %1607 = vmatpush.bf16.msrb.mxu3 %v4341_v38  ;;  %v4634_v38 = vld [vmem:[%s6976_s0 + $0xf0] sm:$0xf] }
 0x16c   :  { %v1235_v2 = vmax.f32 %v1227_v1, 0.0  ;;  %v4635_v42 = vor.u32 %v5681_v41, %v4634_v38  ;;  %v5671_v38 = vld [vmem:[%s6976_s0 + $0xa4] sm:$0xf0]  ;;  %v5670_v41 = vld [vmem:[%s6976_s0 + $0xa4] sm:$0xf] }
 0x16e   :  { %v1159_v3 = vpop.f32.mrf.mxu0  ;;  %v1239_v7 = vpack.c.bf16 %v1235_v2, %v1235_v2 }
 0x16f   :  { %1608 = vmatpush.bf16.msrb.mxu3 %v4333_v44  ;;  %v4636_v44 = vld [vmem:[%s6976_s0 + $0xf8] sm:$0xf0] }
 0x170   :  { %1572 = vmatmul.bf16.vlgmr.msra.gmra.mxu1 %v1239_v7  ;;  %1624 = vmatmul.bf16.vlgmr.msrb.gmra.mxu0 %v1239_v7  ;;  %v4571_v7 = vor.u32 %v5665_v5, %v4570_v26  ;;  %v4514_v26 = vld [vmem:[%s6976_s0] sm:$0xf]  ;;  %v5651_v5 = vld [vmem:[%s6976_s0 + $0x4] sm:$0xf0] }
 0x171   :  { %v1131_v10 = vpop.f32.mrf.mxu2  ;;  %v1144_v11 = vpop.f32.mrf.mxu3 }
 0x172   :  { %v1132_v13 = vadd.f32 %v1131_v10, %v508_v8  ;;  %v5663_v10 = vld [vmem:[%s6976_s0 + $0x64] sm:$0xf0] }
 0x173   :  { %1609 = vmatpush.bf16.msrb.mxu3 %v4325_v49  ;;  %v4563_v36 = vor.u32 %v5663_v10, %v4562_v9  ;;  %v5654_v49 = vld [vmem:[%s6976_s0 + $0x24] sm:$0xf]  ;;  %v4618_v9 = vld [vmem:[%s6976_s0 + $0xd0] sm:$0xf]  ;;  %v5677_v10 = vld [vmem:[%s6976_s0 + $0xd4] sm:$0xf0] }
 0x174   :  { %v1145_v18 = vadd.f32 %v1144_v11, %v1132_v13  ;;  %v5662_v11 = vld [vmem:[%s6976_s0 + $0x64] sm:$0xf] }
 0x175   :  { %v4567_v13 = vor.u32 %v5662_v11, %v4564_v12  ;;  %v5676_v11 = vld [vmem:[%s6976_s0 + $0xd4] sm:$0xf]  ;;  %v4620_v12 = vld [vmem:[%s6976_s0 + $0xd8] sm:$0xf0] }
 0x176   :  { %v1158_v22 = vadd.f32 %v1157_v59, %v1145_v18  ;;  %v1183_v23 = vpop.f32.mrf.mxu1  ;;  %v1222_v24 = vpop.f32.mrf.mxu0  ;;  %v5660_v18 = vld [vmem:[%s6976_s0 + $0x54] sm:$0xf]  ;;  %v4623_v14 = vor.u32 %v5676_v11, %v4620_v12  ;;  %v5685_v11 = vld [vmem:[%s6939_s9 + $0x18] sm:$0xff] }
 0x177   :  { %1610 = vmatpush.bf16.msrb.mxu3 %v4317_v52  ;;  %v1184_v54 = vadd.f32 %v1183_v23, %v509_v53  ;;  %v4559_v25 = vor.u32 %v5660_v18, %v4556_v20  ;;  %v4531_v53 = vor.u32 %v5655_v48, %v4530_v40  ;;  %v4610_v18 = vld [vmem:[%s6976_s0 + $0xc0] sm:$0xf]  ;;  %v5674_v20 = vld [vmem:[%s6976_s0 + $0xc4] sm:$0xf]  ;;  %v5668_v40 = vld [vmem:[%s6976_s0 + $0x94] sm:$0xf] }
 0x178   :  { %v6427_v56 = vadd.f32 %v1170_v60, %v1158_v22  ;;  %v5659_v22 = vld [vmem:[%s6976_s0 + $0x44] sm:$0xf0] }
 0x179   :  { %v1133_v31 = vpop.f32.mrf.mxu2  ;;  %v1146_v34 = vpop.f32.mrf.mxu3 }
 0x17a   :  { %v1228_v37 = vmul.f32 %v6427_v56, %v380_v30  ;;  %v4547_v30 = vor.u32 %v5659_v22, %v4546_v21  ;;  %v4551_v31 = vor.u32 %v5658_v27, %v4548_v28  ;;  %v4538_v34 = vld [vmem:[%s6976_s0 + $0x30] sm:$0xf]  ;;  %v4612_v22 = vld [vmem:[%s6976_s0 + $0xc8] sm:$0xf0]  ;;  %v5673_v27 = vld [vmem:[%s6976_s0 + $0xb4] sm:$0xf0] }
 0x17b   :  { %v4615_v28 = vor.u32 %v5674_v20, %v4612_v22 }
 0x17c   :  { %v1236_v43 = vmax.f32 %v1228_v37, 0.0  ;;  %v4540_v37 = vld [vmem:[%s6976_s0 + $0x38] sm:$0xf0] }
 0x17e   :  { %v1185_v45 = vpop.f32.mrf.mxu1  ;;  %v1224_v46 = vpop.f32.mrf.mxu0  ;;  %v1240_v47 = vpack.c.bf16 %v1236_v43, %v1236_v43  ;;  %v5680_v43 = vld [vmem:[%s6976_s0 + $0xf4] sm:$0xf] }
 0x17f   :  { %v4539_v45 = vor.u32 %v5657_v15, %v4538_v34  ;;  %v4639_v46 = vor.u32 %v5680_v43, %v4636_v44  ;;  %v4596_v43 = vld [vmem:[%s6976_s0 + $0xa8] sm:$0xf0] }
 0x180   :  { %1585 = vmatmul.bf16.vlgmr.msra.gmra.mxu2 %v1240_v47  ;;  %1637 = vmatmul.bf16.vlgmr.msrb.gmra.mxu1 %v1240_v47  ;;  %v4543_v47 = vor.u32 %v5656_v29, %v4540_v37  ;;  %v4594_v37 = vld [vmem:[%s6976_s0 + $0xa0] sm:$0xf]  ;;  %v4599_v44 = vor.u32 %v5670_v41, %v4596_v43  ;;  %v4978_v43 = vld [vmem:[#allocation8 + $0x1a0] sm:$0xf] }
 0x181   :  { %1857 = vmatpush.bf16.msra.mxu2 %v4571_v7  ;;  %1896 = vmatpush.bf16.msra.mxu1 %v4639_v46  ;;  %v4515_v7 = vor.u32 %v5651_v5, %v4514_v26  ;;  %v4586_v46 = vld [vmem:[%s6976_s0 + $0x90] sm:$0xf]  ;;  %v5695_v26 = vld [vmem:[%s6939_s9 + $0x68] sm:$0xff]  ;;  %v5744_v41 = vld [vmem:[#allocation8 + $0xec] sm:$0xf0] }
 0x182   :  { %v5687_v5 = vld [vmem:[%s6939_s9 + $0x28] sm:$0xff] }
 0x185   :  { %1858 = vmatpush.bf16.msra.mxu2 %v4563_v36  ;;  %v4619_v36 = vor.u32 %v5677_v10, %v4618_v9  ;;  %v5686_v9 = vld [vmem:[%s6939_s9 + $0x20] sm:$0xff]  ;;  %v5693_v10 = vld [vmem:[%s6939_s9 + $0x58] sm:$0xff] }
 0x189   :  { %1859 = vmatpush.bf16.msra.mxu2 %v4555_v19  ;;  %v5675_v19 = vld [vmem:[%s6976_s0 + $0xc4] sm:$0xf0] }
 0x18a   :  { %v4611_v21 = vor.u32 %v5675_v19, %v4610_v18  ;;  %v5691_v19 = vld [vmem:[%s6939_s9 + $0x48] sm:$0xff] }
 0x18d   :  { %1860 = vmatpush.bf16.msra.mxu2 %v4547_v30  ;;  %v5672_v30 = vld [vmem:[%s6976_s0 + $0xb4] sm:$0xf] }
 0x191   :  { %v1196_v33 = vpop.f32.mrf.mxu2  ;;  %v1209_v55 = vpop.f32.mrf.mxu3  ;;  %1861 = vmatpush.bf16.msra.mxu2 %v4539_v45  ;;  %v1292_v45 = vld [vmem:[%s6977_s2] sm:$0x3] }
 0x192   :  { %v1197_v59 = vadd.f32 %v1196_v33, %v1184_v54  ;;  %v4535_v54 = vor.u32 %v5654_v49, %v4532_v50  ;;  %v4522_v33 = vld [vmem:[%s6976_s0 + $0x10] sm:$0xf]  ;;  %v4588_v49 = vld [vmem:[%s6976_s0 + $0x98] sm:$0xf0] }
 0x193   :  { %v4591_v50 = vor.u32 %v5668_v40, %v4588_v49  ;;  %v5764_v49 = vld [vmem:[#allocation8 + $0x18c] sm:$0xf0] }
 0x194   :  { %v1210_v60 = vadd.f32 %v1209_v55, %v1197_v59  ;;  %v5653_v55 = vld [vmem:[%s6976_s0 + $0x14] sm:$0xf0]  ;;  %v4524_v59 = vld [vmem:[%s6976_s0 + $0x18] sm:$0xf0] }
 0x195   :  { %1862 = vmatpush.bf16.msra.mxu2 %v4531_v53  ;;  %v4523_v58 = vor.u32 %v5653_v55, %v4522_v33  ;;  %v5667_v53 = vld [vmem:[%s6976_s0 + $0x84] sm:$0xf0]  ;;  %v4580_v55 = vld [vmem:[%s6976_s0 + $0x88] sm:$0xf0] }
 0x196   :  { %v6435_v62 = vadd.f32 %v1222_v24, %v1210_v60 }
 0x198   :  { %v1229_v63 = vmul.f32 %v6435_v62, %v393_v61  ;;  %v4527_v61 = vor.u32 %v5652_v57, %v4524_v59 }
 0x199   :  { %v1198_v0 = vpop.f32.mrf.mxu2  ;;  %v1211_v1 = vpop.f32.mrf.mxu3  ;;  %1863 = vmatpush.bf16.msra.mxu2 %v4523_v58 }
 0x19a   :  { %v1237_v32 = vmax.f32 %v1229_v63, 0.0  ;;  %v4626_v63 = vld [vmem:[%s6976_s0 + $0xe0] sm:$0xf]  ;;  %v5679_v0 = vld [vmem:[%s6976_s0 + $0xe4] sm:$0xf0] }
 0x19b   :  { %v5678_v1 = vld [vmem:[%s6976_s0 + $0xe4] sm:$0xf] }
 0x19c   :  { %v1241_v2 = vpack.c.bf16 %v1237_v32, %v1237_v32  ;;  %v4627_v32 = vor.u32 %v5679_v0, %v4626_v63  ;;  %v5689_v63 = vld [vmem:[%s6939_s9 + $0x38] sm:$0xff] }
 0x19d   :  { %1864 = vmatpush.bf16.msra.mxu2 %v4515_v7 }
 0x19e   :  { %4510 = vmatmul.msk.bf16.vlgmr.msra.gmra.mxu3 %vm1014_vm3, %v1241_v2  ;;  %4511 = vmatmul.msk.bf16.vlgmr.msrb.gmra.mxu2 %vm1014_vm3, %v1241_v2  ;;  %v4628_v2 = vld [vmem:[%s6976_s0 + $0xe8] sm:$0xf0] }
 0x19f   :  { %1870 = vmatpush.bf16.msra.mxu3 %v4635_v42  ;;  %v4595_v42 = vor.u32 %v5671_v38, %v4594_v37  ;;  %v4882_v38 = vld [vmem:[#allocation8 + $0xe0] sm:$0xf] }
 0x1a1   :  { %2045 = vmatpush.bf16.msrb.mxu2 %v5689_v63 }
 0x1a3   :  { %1871 = vmatpush.bf16.msra.mxu3 %v4627_v32 }
 0x1a7   :  { %1872 = vmatpush.bf16.msra.mxu3 %v4619_v36  ;;  %v1295_v36 = vperm.slane %v1292_v45, 1 }
 0x1ab   :  { %1873 = vmatpush.bf16.msra.mxu3 %v4611_v21 }
 0x1ae   :  { %1611 = vmatmul.bf16.vlgmr.msrb.gmra.mxu3 %v6415_v35  ;;  %v4572_v35 = vld [vmem:[%s6976_s0 + $0x78] sm:$0xf0] }
 0x1af   :  { %v4575_v8 = vor.u32 %v5664_v6, %v4572_v35  ;;  %v5650_v6 = vld [vmem:[%s6976_s0 + $0x4] sm:$0xf]  ;;  %v4516_v35 = vld [vmem:[%s6976_s0 + $0x8] sm:$0xf0] }
 0x1b1   :  { %1883 = vmatpush.bf16.msra.mxu0 %v4575_v8  ;;  %v4519_v8 = vor.u32 %v5650_v6, %v4516_v35 }
 0x1b5   :  { %1884 = vmatpush.bf16.msra.mxu0 %v4567_v13 }
 0x1b9   :  { %1885 = vmatpush.bf16.msra.mxu0 %v4559_v25  ;;  %v4602_v25 = vld [vmem:[%s6976_s0 + $0xb0] sm:$0xf] }
 0x1ba   :  { %v4603_v34 = vor.u32 %v5673_v27, %v4602_v25 }
 0x1bc   :  { %1874 = vmatpush.bf16.msra.mxu3 %v4603_v34 }
 0x1bd   :  { %1886 = vmatpush.bf16.msra.mxu0 %v4551_v31  ;;  %v4604_v31 = vld [vmem:[%s6976_s0 + $0xb8] sm:$0xf0] }
 0x1be   :  { %v4607_v15 = vor.u32 %v5672_v30, %v4604_v31  ;;  %v5776_v30 = vld [vmem:[#allocation8 + $0x1ec] sm:$0xf0]  ;;  %v5683_v31 = vld [vmem:[%s6939_s9 + $0x8] sm:$0xff] }
 0x1c0   :  { %1875 = vmatpush.bf16.msra.mxu3 %v4595_v42  ;;  %v4883_v42 = vor.u32 %v5744_v41, %v4882_v38 }
 0x1c1   :  { %1887 = vmatpush.bf16.msra.mxu0 %v4543_v47  ;;  %v5669_v47 = vld [vmem:[%s6976_s0 + $0x94] sm:$0xf0] }
 0x1c2   :  { %v4587_v48 = vor.u32 %v5669_v47, %v4586_v46  ;;  %v4866_v46 = vld [vmem:[#allocation8 + $0xc0] sm:$0xf]  ;;  %v5740_v47 = vld [vmem:[#allocation8 + $0xcc] sm:$0xf0] }
 0x1c3   :  { %v4867_v40 = vor.u32 %v5740_v47, %v4866_v46  ;;  %v5798_v47 = vld [vmem:[#allocation8 + $0x2a4] sm:$0xf] }
 0x1c4   :  { %1876 = vmatpush.bf16.msra.mxu3 %v4587_v48  ;;  %v4962_v48 = vld [vmem:[#allocation8 + $0x180] sm:$0xf] }
 0x1c5   :  { %1888 = vmatpush.bf16.msra.mxu0 %v4535_v54  ;;  %v5666_v54 = vld [vmem:[%s6976_s0 + $0x84] sm:$0xf] }
 0x1c6   :  { %v4583_v57 = vor.u32 %v5666_v54, %v4580_v55  ;;  %v4946_v54 = vld [vmem:[#allocation8 + $0x160] sm:$0xf] }
 0x1c7   :  { %v4834_v55 = vld [vmem:[#allocation8 + $0x80] sm:$0xf] }
 0x1c9   :  { %1889 = vmatpush.bf16.msra.mxu0 %v4527_v61  ;;  %v5697_v61 = vld [vmem:[%s6939_s9 + $0x78] sm:$0xff] }
 0x1cd   :  { %1890 = vmatpush.bf16.msra.mxu0 %v4519_v8  ;;  %v5694_v8 = vld [vmem:[%s6939_s9 + $0x60] sm:$0xff] }
 0x1d9   :  { %v6441_v3 = vpop.f32.mrf.mxu0 }
 0x1e1   :  { %v1562_v4 = vpop.f32.mrf.mxu0 }
 0x1e2   :  { %v4631_v4 = vor.u32 %v5678_v1, %v4628_v2  ;;  %v5696_v1 = vld [vmem:[%s6939_s9 + $0x70] sm:$0xff] }
 0x1e4   :  { %1897 = vmatpush.bf16.msra.mxu1 %v4631_v4 }
 0x1e8   :  { %1898 = vmatpush.bf16.msra.mxu1 %v4623_v14  ;;  %v5684_v14 = vld [vmem:[%s6939_s9 + $0x10] sm:$0xff] }
 0x1ec   :  { %1899 = vmatpush.bf16.msra.mxu1 %v4615_v28  ;;  %v5690_v28 = vld [vmem:[%s6939_s9 + $0x40] sm:$0xff] }
 0x1ed   :  { %v6485_v23 = vpop.f32.mrf.mxu1  ;;  %v6487_v24 = vpop.f32.mrf.mxu0 }
 0x1f0   :  { %1900 = vmatpush.bf16.msra.mxu1 %v4607_v15  ;;  %v4994_v15 = vld [vmem:[#allocation8 + $0x1c0] sm:$0xf] }
 0x1f4   :  { %1901 = vmatpush.bf16.msra.mxu1 %v4599_v44  ;;  %v5768_v44 = vld [vmem:[#allocation8 + $0x1ac] sm:$0xf0] }
 0x1f5   :  { %v1575_v51 = vpop.f32.mrf.mxu1  ;;  %v1627_v52 = vpop.f32.mrf.mxu0 }
 0x1f6   :  { %v1294_v51 = vperm.slane %v1292_v45, 0  ;;  %v4578_v52 = vld [vmem:[%s6976_s0 + $0x80] sm:$0xf]  ;;  %v4979_v45 = vor.u32 %v5768_v44, %v4978_v43  ;;  %v5012_v43 = vld [vmem:[#allocation8 + $0x1f0] sm:$0xf0] }
 0x1f7   :  { %v4579_v33 = vor.u32 %v5667_v53, %v4578_v52  ;;  %v5736_v52 = vld [vmem:[#allocation8 + $0xac] sm:$0xf0] }
 0x1f8   :  { %1902 = vmatpush.bf16.msra.mxu1 %v4591_v50  ;;  %v1561_v58 = vadd.f32 %v6441_v3, %v1294_v51  ;;  %v5688_v3 = vld [vmem:[%s6939_s9 + $0x30] sm:$0xff]  ;;  %v4963_v50 = vor.u32 %v5764_v49, %v4962_v48 }
 0x1f9   :  { %1877 = vmatpush.bf16.msra.mxu3 %v4579_v33  ;;  %2046 = vmatpush.bf16.msrb.mxu2 %v5688_v3  ;;  %v4850_v51 = vld [vmem:[#allocation8 + $0xa0] sm:$0xf]  ;;  %v5760_v33 = vld [vmem:[#allocation8 + $0x16c] sm:$0xf0] }
 0x1fa   :  { %v1574_v59 = vadd.f32 %v6485_v23, %v1561_v58  ;;  %v4851_v53 = vor.u32 %v5736_v52, %v4850_v51  ;;  %v5732_v58 = vld [vmem:[#allocation8 + $0x8c] sm:$0xf0]  ;;  %v4996_v51 = vld [vmem:[#allocation8 + $0x1d0] sm:$0xf0] }
 0x1fb   :  { %v4835_v63 = vor.u32 %v5732_v58, %v4834_v55  ;;  %v5728_v3 = vld [vmem:[#allocation8 + $0x6c] sm:$0xf0]  ;;  %v4980_v58 = vld [vmem:[#allocation8 + $0x1b0] sm:$0xf0] }
 0x1fc   :  { %1903 = vmatpush.bf16.msra.mxu1 %v4583_v57  ;;  %v4947_v57 = vor.u32 %v5760_v33, %v4946_v54  ;;  %v5092_v54 = vld [vmem:[#allocation8 + $0x290] sm:$0xf0] }
 0x1fd   :  { %v6543_v60 = vpop.f32.mrf.mxu1  ;;  %2058 = vmatpush.bf16.msrb.mxu3 %v5697_v61  ;;  %2047 = vmatpush.bf16.msrb.mxu2 %v5687_v5  ;;  %v5756_v61 = vld [vmem:[#allocation8 + $0x14c] sm:$0xf0] }
 0x1fe   :  { %v5724_v5 = vld [vmem:[#allocation8 + $0x4c] sm:$0xf0] }
 0x201   :  { %2059 = vmatpush.bf16.msrb.mxu3 %v5696_v1  ;;  %2048 = vmatpush.bf16.msrb.mxu2 %v5686_v9  ;;  %v4818_v1 = vld [vmem:[#allocation8 + $0x60] sm:$0xf] }
 0x202   :  { %v4786_v9 = vld [vmem:[#allocation8 + $0x20] sm:$0xf] }
 0x203   :  { %v1586_v13 = vpop.f32.mrf.mxu2 }
 0x204   :  { %v1587_v0 = vadd.f32 %v1586_v13, %v1574_v59  ;;  %v5692_v13 = vld [vmem:[%s6939_s9 + $0x50] sm:$0xff] }
 0x205   :  { %v1640_v16 = vpop.f32.mrf.mxu1  ;;  %2060 = vmatpush.bf16.msrb.mxu3 %v5695_v26  ;;  %2049 = vmatpush.bf16.msrb.mxu2 %v5685_v11  ;;  %v4930_v59 = vld [vmem:[#allocation8 + $0x140] sm:$0xf] }
 0x206   :  { %v4802_v26 = vld [vmem:[#allocation8 + $0x40] sm:$0xf] }
 0x209   :  { %2061 = vmatpush.bf16.msrb.mxu3 %v5694_v8  ;;  %2050 = vmatpush.bf16.msrb.mxu2 %v5684_v14 }
 0x20b   :  { %v1588_v29 = vpop.f32.mrf.mxu2 }
 0x20c   :  { %v5772_v29 = vld [vmem:[#allocation8 + $0x1cc] sm:$0xf0] }
 0x20d   :  { %2062 = vmatpush.bf16.msrb.mxu3 %v5693_v10  ;;  %2051 = vmatpush.bf16.msrb.mxu2 %v5683_v31  ;;  %v4995_v37 = vor.u32 %v5772_v29, %v4994_v15  ;;  %v5720_v10 = vld [vmem:[#allocation8 + $0x2c] sm:$0xf0]  ;;  %v5802_v29 = vld [vmem:[#allocation8 + $0x2c4] sm:$0xf] }
 0x20e   :  { %v4787_v11 = vor.u32 %v5720_v10, %v4786_v9  ;;  %v5044_v9 = vld [vmem:[#allocation8 + $0x230] sm:$0xf0] }
 0x211   :  { %2063 = vmatpush.bf16.msrb.mxu3 %v5692_v13 }
 0x215   :  { %2064 = vmatpush.bf16.msrb.mxu3 %v5691_v19  ;;  %v1691_v19 = vld [vmem:[%s6938_s8] sm:$0x3]  ;;  %s3851_s8 = sshll.u32 %s6120_s3, 4  ;;  %s3852_s8 = int_to_ptr.vmem [resolvable:$true] %s3851_s8 }
 0x219   :  { %2065 = vmatpush.bf16.msrb.mxu3 %v5690_v28 }
 0x221   :  { %v1599_v23 = vpop.f32.mrf.mxu3  ;;  %v1651_v32 = vpop.f32.mrf.mxu2 }
 0x222   :  { %v1600_v2 = vadd.f32 %v1599_v23, %v1587_v0  ;;  %v4931_v0 = vor.u32 %v5756_v61, %v4930_v59  ;;  %v4819_v23 = vor.u32 %v5728_v3, %v4818_v1  ;;  %v1231_v61 = vmax.f32 %v6421_v39, 0.0  ;;  %v5762_v3 = vld [vmem:[#allocation8 + $0x184] sm:$0xf]  ;;  %v4948_v39 = vld [vmem:[#allocation8 + $0x170] sm:$0xf0] }
 0x224   :  { %v1655_v4 = vmax.f32 %v1600_v2, 0.0  ;;  %v5752_v2 = vld [vmem:[#allocation8 + $0x12c] sm:$0xf0] }
 0x226   :  { %v1657_v6 = vpack.c.bf16 %v1655_v4, %v1655_v4 }
 0x228   :  { %1865 = vmatmul.bf16.vlgmr.msra.gmra.mxu2 %v1657_v6  ;;  %1891 = vmatmul.bf16.vlgmr.msra.gmra.mxu0 %v1657_v6  ;;  %v4803_v6 = vor.u32 %v5724_v5, %v4802_v26  ;;  %v5060_v26 = vld [vmem:[#allocation8 + $0x250] sm:$0xf0] }
 0x229   :  { %v1601_v7 = vpop.f32.mrf.mxu3  ;;  %v1653_v35 = vpop.f32.mrf.mxu2 }
 0x22a   :  { %v4898_v7 = vld [vmem:[#allocation8 + $0x100] sm:$0xf]  ;;  %v5748_v35 = vld [vmem:[#allocation8 + $0x10c] sm:$0xf0] }
 0x22b   :  { %v4899_v8 = vor.u32 %v5748_v35, %v4898_v7  ;;  %v5758_v7 = vld [vmem:[#allocation8 + $0x164] sm:$0xf] }
 0x22c   :  { %v4951_v10 = vor.u32 %v5758_v7, %v4948_v39  ;;  %v5789_v7 = vld [vmem:[#allocation8 + $0x254] sm:$0xf0]  ;;  %v5719_v39 = vld [vmem:[#allocation8 + $0x2c] sm:$0xf] }
 0x231   :  { %v1612_v12 = vpop.f32.mrf.mxu3 }
 0x232   :  { %v1613_v16 = vadd.f32 %v1612_v12, %v1295_v36  ;;  %v4770_v36 = vld [vmem:[#allocation8] sm:$0xf]  ;;  %v5716_v12 = vld [vmem:[#allocation8 + $0xc] sm:$0xf0] }
 0x233   :  { %v4771_v14 = vor.u32 %v5716_v12, %v4770_v36  ;;  %v5754_v36 = vld [vmem:[#allocation8 + $0x144] sm:$0xf]  ;;  %v4932_v12 = vld [vmem:[#allocation8 + $0x150] sm:$0xf0] }
 0x234   :  { %v1626_v18 = vadd.f32 %v6487_v24, %v1613_v16  ;;  %v5010_v24 = vld [vmem:[#allocation8 + $0x1e0] sm:$0xf] }
 0x235   :  { %v5011_v34 = vor.u32 %v5776_v30, %v5010_v24  ;;  %v5806_v24 = vld [vmem:[#allocation8 + $0x2e4] sm:$0xf]  ;;  %v5140_v30 = vld [vmem:[#allocation8 + $0x2f0] sm:$0xf0] }
 0x236   :  { %v1639_v20 = vadd.f32 %v6543_v60, %v1626_v18  ;;  %v5682_v60 = vld [vmem:[%s6939_s9] sm:$0xff] }
 0x237   :  { %2052 = vmatpush.bf16.msrb.mxu2 %v5682_v60 }
 0x238   :  { %v1652_v21 = vadd.f32 %v1651_v32, %v1639_v20  ;;  %v4914_v32 = vld [vmem:[#allocation8 + $0x120] sm:$0xf] }
 0x239   :  { %v1614_v22 = vpop.f32.mrf.mxu3  ;;  %v4915_v4 = vor.u32 %v5752_v2, %v4914_v32  ;;  %v6706_v2 = vpack.c.bf16 %v1231_v61, %v1231_v61  ;;  %v5727_v61 = vld [vmem:[#allocation8 + $0x6c] sm:$0xf] }
 0x23a   :  { %v1656_v25 = vmax.f32 %v1652_v21, 0.0  ;;  %v1694_v21 = vperm.slane %v1691_v19, 1 }
 0x23b   :  { %2938 = vmatpush.bf16.msra.mxu2 %v4883_v42  ;;  %v5774_v42 = vld [vmem:[#allocation8 + $0x1e4] sm:$0xf] }
 0x23c   :  { %v1658_v27 = vpack.c.bf16 %v1656_v25, %v1656_v25  ;;  %v5015_v48 = vor.u32 %v5774_v42, %v5012_v43  ;;  %v5739_v42 = vld [vmem:[#allocation8 + $0xcc] sm:$0xf]  ;;  %v4876_v43 = vld [vmem:[#allocation8 + $0xd8] sm:$0xf0] }
 0x23e   :  { %1878 = vmatmul.bf16.vlgmr.msra.gmra.mxu3 %v1658_v27  ;;  %1904 = vmatmul.bf16.vlgmr.msra.gmra.mxu1 %v1658_v27  ;;  %v1693_v27 = vperm.slane %v1691_v19, 0  ;;  %v5813_v19 = vld [vmem:[#allocation8 + $0x314] sm:$0xf0] }
 0x23f   :  { %2951 = vmatpush.bf16.msra.mxu3 %v5011_v34  ;;  %2939 = vmatpush.bf16.msra.mxu2 %v4867_v40  ;;  %v5143_v34 = vor.u32 %v5806_v24, %v5140_v30  ;;  %v5108_v40 = vld [vmem:[#allocation8 + $0x2b0] sm:$0xf0]  ;;  %v5743_v24 = vld [vmem:[#allocation8 + $0xec] sm:$0xf]  ;;  %v4892_v30 = vld [vmem:[#allocation8 + $0xf8] sm:$0xf0] }
 0x240   :  { %v5111_v52 = vor.u32 %v5798_v47, %v5108_v40  ;;  %v5805_v47 = vld [vmem:[#allocation8 + $0x2d4] sm:$0xf0]  ;;  %v5735_v40 = vld [vmem:[#allocation8 + $0xac] sm:$0xf] }
 0x243   :  { %2952 = vmatpush.bf16.msra.mxu3 %v4995_v37  ;;  %2940 = vmatpush.bf16.msra.mxu2 %v4851_v53  ;;  %v5124_v37 = vld [vmem:[#allocation8 + $0x2d0] sm:$0xf0]  ;;  %v5794_v53 = vld [vmem:[#allocation8 + $0x284] sm:$0xf] }
 0x244   :  { %v5095_v59 = vor.u32 %v5794_v53, %v5092_v54  ;;  %v5731_v53 = vld [vmem:[#allocation8 + $0x8c] sm:$0xf]  ;;  %v4844_v54 = vld [vmem:[#allocation8 + $0x98] sm:$0xf0] }
 0x247   :  { %2953 = vmatpush.bf16.msra.mxu3 %v4979_v45  ;;  %2941 = vmatpush.bf16.msra.mxu2 %v4835_v63  ;;  %v5127_v45 = vor.u32 %v5802_v29, %v5124_v37  ;;  %v5790_v63 = vld [vmem:[#allocation8 + $0x264] sm:$0xf]  ;;  %v5146_v29 = vld [vmem:[#allocation8 + $0x2e8] sm:$0xf]  ;;  %v5809_v37 = vld [vmem:[#allocation8 + $0x2f4] sm:$0xf0] }
 0x24b   :  { %2954 = vmatpush.bf16.msra.mxu3 %v4963_v50  ;;  %2942 = vmatpush.bf16.msra.mxu2 %v4819_v23  ;;  %v5770_v50 = vld [vmem:[#allocation8 + $0x1c4] sm:$0xf]  ;;  %v4964_v23 = vld [vmem:[#allocation8 + $0x190] sm:$0xf0] }
 0x24c   :  { %v4999_v55 = vor.u32 %v5770_v50, %v4996_v51  ;;  %v4967_v5 = vor.u32 %v5762_v3, %v4964_v23  ;;  %v5114_v51 = vld [vmem:[#allocation8 + $0x2a8] sm:$0xf]  ;;  %v5793_v23 = vld [vmem:[#allocation8 + $0x274] sm:$0xf0] }
 0x24d   :  { %v5082_v3 = vld [vmem:[#allocation8 + $0x268] sm:$0xf] }
 0x24f   :  { %2955 = vmatpush.bf16.msra.mxu3 %v4947_v57  ;;  %2943 = vmatpush.bf16.msra.mxu2 %v4803_v6  ;;  %v5766_v57 = vld [vmem:[#allocation8 + $0x1a4] sm:$0xf]  ;;  %v1230_v6 = vmax.f32 %v6412_v17, 0.0  ;;  %v5028_v17 = vld [vmem:[#allocation8 + $0x210] sm:$0xf0] }
 0x250   :  { %v4983_v1 = vor.u32 %v5766_v57, %v4980_v58  ;;  %v5098_v57 = vld [vmem:[#allocation8 + $0x288] sm:$0xf]  ;;  %v5797_v58 = vld [vmem:[#allocation8 + $0x294] sm:$0xf0] }
 0x253   :  { %2956 = vmatpush.bf16.msra.mxu3 %v4931_v0  ;;  %2944 = vmatpush.bf16.msra.mxu2 %v4787_v11  ;;  %v5076_v0 = vld [vmem:[#allocation8 + $0x270] sm:$0xf0]  ;;  %v6710_v11 = vpack.c.bf16 %v1230_v6, %v1230_v6 }
 0x254   :  { %v5079_v32 = vor.u32 %v5790_v63, %v5076_v0  ;;  %v4828_v63 = vld [vmem:[#allocation8 + $0x78] sm:$0xf0]  ;;  %v5099_v0 = vor.u32 %v5797_v58, %v5098_v57  ;;  %v6118_v57 = vmov 1   ;;  %v6119_v58 = vmov 3  }
 0x255   :  { %5909 = vset.pattern.permute.xlu0 %v6118_v57  ;;  %5910 = vset.pattern.permute.xlu1 %v6118_v57 }
 0x256   :  { %5912 = vset.pattern.permute.xlu2 %v6119_v58 }
 0x257   :  { %2957 = vmatpush.bf16.msra.mxu3 %v4915_v4  ;;  %2945 = vmatpush.bf16.msra.mxu2 %v4771_v14  ;;  %v5786_v4 = vld [vmem:[#allocation8 + $0x244] sm:$0xf] }
 0x258   :  { %v5063_v35 = vor.u32 %v5786_v4, %v5060_v26  ;;  %v5778_v14 = vld [vmem:[#allocation8 + $0x204] sm:$0xf]  ;;  %v5723_v4 = vld [vmem:[#allocation8 + $0x4c] sm:$0xf]  ;;  %v4812_v26 = vld [vmem:[#allocation8 + $0x58] sm:$0xf0] }
 0x259   :  { %v4815_v6 = vor.u32 %v5723_v4, %v4812_v26  ;;  %v5705_v4 = vld [vmem:[%s6943_s13 + $0x38] sm:$0xff] }
 0x25a   :  { %v5713_v26 = vld [vmem:[%s6943_s13 + $0x78] sm:$0xff]  ;;  %2285 = vmatpush.bf16.msrb.mxu0 %v5705_v4 }
 0x25b   :  { %2958 = vmatpush.bf16.msra.mxu3 %v4899_v8  ;;  %v5782_v8 = vld [vmem:[#allocation8 + $0x224] sm:$0xf]  ;;  %2298 = vmatpush.bf16.msrb.mxu1 %v5713_v26 }
 0x2a5   :  { %v1892_v13 = vpop.f32.mrf.mxu0 }
 0x2a6   :  { %v1893_v22 = vadd.f32 %v1892_v13, %v1694_v21  ;;  %v5047_v13 = vor.u32 %v5782_v8, %v5044_v9  ;;  %v4916_v21 = vld [vmem:[#allocation8 + $0x130] sm:$0xf0] }
 0x2ab   :  { %v1866_v16 = vpop.f32.mrf.mxu2 }
 0x2ac   :  { %v1867_v60 = vadd.f32 %v1866_v16, %v1693_v27  ;;  %v4935_v16 = vor.u32 %v5754_v36, %v4932_v12  ;;  %v5785_v36 = vld [vmem:[#allocation8 + $0x234] sm:$0xf0]  ;;  %v5715_v12 = vld [vmem:[#allocation8 + $0xc] sm:$0xf] }
 0x2ad   :  { %v1894_v18 = vpop.f32.mrf.mxu0 }
 0x2ae   :  { %v5162_v18 = vld [vmem:[#allocation8 + $0x308] sm:$0xf] }
 0x2af   :  { %v5163_v27 = vor.u32 %v5813_v19, %v5162_v18  ;;  %v5781_v18 = vld [vmem:[#allocation8 + $0x214] sm:$0xf0]  ;;  %v5811_v19 = vld [vmem:[#allocation8 + $0x30c] sm:$0xf] }
 0x2b3   :  { %v1868_v20 = vpop.f32.mrf.mxu2 }
 0x2b4   :  { %v5750_v20 = vld [vmem:[#allocation8 + $0x124] sm:$0xf] }
 0x2bb   :  { %v1905_v25 = vpop.f32.mrf.mxu1 }
 0x2bc   :  { %v6699_v28 = vadd.f32 %v1905_v25, %v1893_v22  ;;  %v5031_v22 = vor.u32 %v5778_v14, %v5028_v17  ;;  %v1232_v25 = vmax.f32 %v6427_v56, 0.0  ;;  %v5147_v56 = vor.u32 %v5809_v37, %v5146_v29  ;;  %v2425_v29 = vld [vmem:[%s6946_s16] sm:$0xf] }
 0x2bd   :  { %v2427_v37 = vperm.slane %v2425_v29, 0 }
 0x2be   :  { %v1910_v31 = vmax.f32 %v6699_v28, 0.0 }
 0x2c0   :  { %v1912_v15 = vpack.c.bf16 %v1910_v31, %v1910_v31  ;;  %v4919_v31 = vor.u32 %v5750_v20, %v4916_v21  ;;  %v5164_v20 = vld [vmem:[#allocation8 + $0x318] sm:$0xf0] }
 0x2c1   :  { %v1879_v38 = vpop.f32.mrf.mxu3 }
 0x2c2   :  { %v6702_v41 = vadd.f32 %v1879_v38, %v1867_v60  ;;  %2066 = vmatmul.bf16.vlgmr.msrb.gmra.mxu3 %v1912_v15  ;;  %v4900_v60 = vld [vmem:[#allocation8 + $0x110] sm:$0xf0]  ;;  %v4895_v15 = vor.u32 %v5743_v24, %v4892_v30  ;;  %v6714_v38 = vpack.c.bf16 %v1232_v25, %v1232_v25 }
 0x2c3   :  { %v1907_v44 = vpop.f32.mrf.mxu1  ;;  %3016 = vmatpush.bf16.msrb.mxu3 %v5143_v34  ;;  %v5746_v34 = vld [vmem:[#allocation8 + $0x104] sm:$0xf] }
 0x2c4   :  { %v1909_v46 = vmax.f32 %v6702_v41, 0.0  ;;  %v4903_v44 = vor.u32 %v5746_v34, %v4900_v60 }
 0x2c6   :  { %v1911_v49 = vpack.c.bf16 %v1909_v46, %v1909_v46  ;;  %v5130_v46 = vld [vmem:[#allocation8 + $0x2c8] sm:$0xf] }
 0x2c7   :  { %3017 = vmatpush.bf16.msrb.mxu3 %v5127_v45  ;;  %v4879_v45 = vor.u32 %v5739_v42, %v4876_v43 }
 0x2c8   :  { %2053 = vmatmul.bf16.vlgmr.msrb.gmra.mxu2 %v1911_v49  ;;  %v5131_v49 = vor.u32 %v5805_v47, %v5130_v46 }
 0x2c9   :  { %3003 = vmatpush.bf16.msrb.mxu2 %v5015_v48  ;;  %v1881_v33 = vpop.f32.mrf.mxu3  ;;  %v4860_v48 = vld [vmem:[#allocation8 + $0xb8] sm:$0xf0] }
 0x2ca   :  { %v4863_v50 = vor.u32 %v5735_v40, %v4860_v48 }
 0x2cb   :  { %3018 = vmatpush.bf16.msrb.mxu3 %v5111_v52  ;;  %v5801_v52 = vld [vmem:[#allocation8 + $0x2b4] sm:$0xf0] }
 0x2cc   :  { %v5115_v33 = vor.u32 %v5801_v52, %v5114_v51 }
 0x2cd   :  { %3004 = vmatpush.bf16.msrb.mxu2 %v4999_v55  ;;  %v4847_v55 = vor.u32 %v5731_v53, %v4844_v54 }
 0x2cf   :  { %3019 = vmatpush.bf16.msrb.mxu3 %v5095_v59  ;;  %v1233_v59 = vmax.f32 %v6435_v62, 0.0  ;;  %v5066_v62 = vld [vmem:[#allocation8 + $0x248] sm:$0xf] }
 0x2d0   :  { %v5067_v8 = vor.u32 %v5789_v7, %v5066_v62  ;;  %v5703_v62 = vld [vmem:[%s6943_s13 + $0x28] sm:$0xff]  ;;  %v5702_v7 = vld [vmem:[%s6943_s13 + $0x20] sm:$0xff] }
 0x2d1   :  { %3005 = vmatpush.bf16.msrb.mxu2 %v4983_v1  ;;  %v4831_v1 = vor.u32 %v5727_v61, %v4828_v63 }
 0x2d2   :  { %2959 = vmatmul.bf16.vlgmr.msra.gmra.mxu3 %v6706_v2 }
 0x2d3   :  { %3020 = vmatpush.bf16.msrb.mxu3 %v5079_v32  ;;  %v6719_v32 = vpack.c.bf16 %v1233_v59, %v1233_v59 }
 0x2d5   :  { %3006 = vmatpush.bf16.msrb.mxu2 %v4967_v5  ;;  %v5083_v5 = vor.u32 %v5793_v23, %v5082_v3 }
 0x2d7   :  { %3021 = vmatpush.bf16.msrb.mxu3 %v5063_v35  ;;  %v4796_v35 = vld [vmem:[#allocation8 + $0x38] sm:$0xf0] }
 0x2d8   :  { %2946 = vmatmul.bf16.vlgmr.msra.gmra.mxu2 %v6710_v11  ;;  %v4799_v9 = vor.u32 %v5719_v39, %v4796_v35  ;;  %v5701_v39 = vld [vmem:[%s6943_s13 + $0x18] sm:$0xff]  ;;  %v5700_v35 = vld [vmem:[%s6943_s13 + $0x10] sm:$0xff] }
 0x2d9   :  { %3007 = vmatpush.bf16.msrb.mxu2 %v4951_v10  ;;  %v5050_v10 = vld [vmem:[#allocation8 + $0x228] sm:$0xf] }
 0x2da   :  { %v5051_v14 = vor.u32 %v5785_v36, %v5050_v10  ;;  %v5710_v10 = vld [vmem:[%s6943_s13 + $0x60] sm:$0xff] }
 0x2db   :  { %3022 = vmatpush.bf16.msrb.mxu3 %v5047_v13  ;;  %v4780_v13 = vld [vmem:[#allocation8 + $0x18] sm:$0xf0]  ;;  %v5698_v36 = vld [vmem:[%s6943_s13] sm:$0xff] }
 0x2dc   :  { %v4783_v17 = vor.u32 %v5715_v12, %v4780_v13  ;;  %v5138_v12 = vld [vmem:[#allocation8 + $0x2e0] sm:$0xf]  ;;  %v5808_v13 = vld [vmem:[#allocation8 + $0x2ec] sm:$0xf0] }
 0x2dd   :  { %3008 = vmatpush.bf16.msrb.mxu2 %v4935_v16  ;;  %v5034_v16 = vld [vmem:[#allocation8 + $0x208] sm:$0xf] }
 0x2de   :  { %v5035_v21 = vor.u32 %v5781_v18, %v5034_v16  ;;  %v5122_v16 = vld [vmem:[#allocation8 + $0x2c0] sm:$0xf]  ;;  %v5804_v18 = vld [vmem:[#allocation8 + $0x2cc] sm:$0xf0] }
 0x2df   :  { %3023 = vmatpush.bf16.msrb.mxu3 %v5031_v22  ;;  %v5167_v22 = vor.u32 %v5811_v19, %v5164_v20  ;;  %v5708_v19 = vld [vmem:[%s6943_s13 + $0x50] sm:$0xff]  ;;  %v5123_v20 = vor.u32 %v5804_v18, %v5122_v16  ;;  %v2139_v18 = vld [vmem:[%s6942_s12] sm:$0x3] }
 0x2e1   :  { %3009 = vmatpush.bf16.msrb.mxu2 %v4919_v31 }
 0x2e2   :  { %3024 = vmatmul.bf16.vlgmr.msrb.gmra.mxu3 %v6714_v38 }
 0x2e3   :  { %3088 = vmatpush.bf16.msra.mxu3 %v5163_v27  ;;  %v5915_v27 = vld [vmem:[%s6940_s10] ss:$0 sm:$0xff]  ;;  %s3853_s10 = sshll.u32 %s6979_s14, 4  ;;  %s3854_s10 = int_to_ptr.hbm [resolvable:$true] %s3853_s10 }
 0x2e5   :  { %3010 = vmatpush.bf16.msrb.mxu2 %v4903_v44 }
 0x2e7   :  { %3094 = vmatpush.bf16.msrb.mxu3 %v4895_v15 }
 0x2e8   :  { %3011 = vmatmul.bf16.vlgmr.msrb.gmra.mxu2 %v6706_v2 }
 0x2e9   :  { %3068 = vmatpush.bf16.msra.mxu2 %v5147_v56 }
 0x2eb   :  { %3095 = vmatpush.bf16.msrb.mxu3 %v4879_v45 }
 0x2ed   :  { %3069 = vmatpush.bf16.msra.mxu2 %v5131_v49 }
 0x2ef   :  { %3096 = vmatpush.bf16.msrb.mxu3 %v4863_v50 }
 0x2f1   :  { %3070 = vmatpush.bf16.msra.mxu2 %v5115_v33 }
 0x2f2   :  { %5170 = vmatmul.msk.bf16.vlgmr.msra.gmra.mxu3 %vm1014_vm3, %v6719_v32 }
 0x2f3   :  { %3097 = vmatpush.bf16.msrb.mxu3 %v4847_v55 }
 0x2f5   :  { %3071 = vmatpush.bf16.msra.mxu2 %v5099_v0 }
 0x2f7   :  { %3098 = vmatpush.bf16.msrb.mxu3 %v4831_v1 }
 0x2f9   :  { %3072 = vmatpush.bf16.msra.mxu2 %v5083_v5  ;;  %v5704_v5 = vld [vmem:[%s6943_s13 + $0x30] sm:$0xff] }
 0x2fa   :  { %2286 = vmatpush.bf16.msrb.mxu0 %v5704_v5 }
 0x2fb   :  { %3099 = vmatpush.bf16.msrb.mxu3 %v4815_v6  ;;  %v5712_v6 = vld [vmem:[%s6943_s13 + $0x70] sm:$0xff] }
 0x2fc   :  { %2299 = vmatpush.bf16.msrb.mxu1 %v5712_v6 }
 0x2fd   :  { %3073 = vmatpush.bf16.msra.mxu2 %v5067_v8  ;;  %v5711_v8 = vld [vmem:[%s6943_s13 + $0x68] sm:$0xff] }
 0x2fe   :  { %2287 = vmatpush.bf16.msrb.mxu0 %v5703_v62 }
 0x2ff   :  { %3100 = vmatpush.bf16.msrb.mxu3 %v4799_v9  ;;  %v5699_v9 = vld [vmem:[%s6943_s13 + $0x8] sm:$0xff] }
 0x300   :  { %2300 = vmatpush.bf16.msrb.mxu1 %v5711_v8 }
 0x301   :  { %3074 = vmatpush.bf16.msra.mxu2 %v5051_v14  ;;  %v5709_v14 = vld [vmem:[%s6943_s13 + $0x58] sm:$0xff] }
 0x302   :  { %2288 = vmatpush.bf16.msrb.mxu0 %v5702_v7 }
 0x303   :  { %3101 = vmatpush.bf16.msrb.mxu3 %v4783_v17  ;;  %v5139_v17 = vor.u32 %v5808_v13, %v5138_v12 }
 0x304   :  { %2301 = vmatpush.bf16.msrb.mxu1 %v5710_v10 }
 0x305   :  { %3075 = vmatpush.bf16.msra.mxu2 %v5035_v21  ;;  %v5707_v21 = vld [vmem:[%s6943_s13 + $0x48] sm:$0xff] }
 0x306   :  { %3102 = vmatmul.bf16.vlgmr.msrb.gmra.mxu3 %v6710_v11  ;;  %2289 = vmatpush.bf16.msrb.mxu0 %v5701_v39 }
 0x308   :  { %3076 = vmatmul.bf16.vlgmr.msra.gmra.mxu2 %v6714_v38  ;;  %2302 = vmatpush.bf16.msrb.mxu1 %v5709_v14 }
 0x309   :  { %3140 = vmatpush.bf16.msrb.mxu2 %v5167_v22  ;;  %v5106_v22 = vld [vmem:[#allocation8 + $0x2a0] sm:$0xf] }
 0x30a   :  { %2290 = vmatpush.bf16.msrb.mxu0 %v5700_v35 }
 0x30c   :  { %2303 = vmatpush.bf16.msrb.mxu1 %v5708_v19 }
 0x30e   :  { %2291 = vmatpush.bf16.msrb.mxu0 %v5699_v9 }
 0x310   :  { %2304 = vmatpush.bf16.msrb.mxu1 %v5707_v21 }
 0x312   :  { %2292 = vmatpush.bf16.msrb.mxu0 %v5698_v36 }
 0x316   :  { %2964 = vmatpush.bf16.msra.mxu0 %v5139_v17 }
 0x318   :  { %5171 = vmatmul.msk.bf16.vlgmr.msrb.gmra.mxu2 %vm1014_vm3, %v6719_v32 }
 0x31a   :  { %2965 = vmatpush.bf16.msra.mxu0 %v5123_v20 }
 0x345   :  { %v2067_v25 = vpop.f32.mrf.mxu3 }
 0x34b   :  { %v2054_v24 = vpop.f32.mrf.mxu2 }
 0x34c   :  { %v2055_v30 = vadd.f32 %v5915_v27, %v2054_v24  ;;  %v5090_v24 = vld [vmem:[#allocation8 + $0x280] sm:$0xf] }
 0x34d   :  { %v2069_v31 = vpop.f32.mrf.mxu3 }
 0x34e   :  { %v2068_v34 = vadd.f32 %v2067_v25, %v2055_v30  ;;  %v5800_v25 = vld [vmem:[#allocation8 + $0x2ac] sm:$0xf0]  ;;  %v5154_v31 = vld [vmem:[#allocation8 + $0x300] sm:$0xf] }
 0x34f   :  { %v5107_v27 = vor.u32 %v5800_v25, %v5106_v22  ;;  %v5796_v30 = vld [vmem:[#allocation8 + $0x28c] sm:$0xf0] }
 0x350   :  { %2072 = vrot.lane.b32.xlu0 %v2068_v34, %s6117_s29 }
 0x351   :  { %2966 = vmatpush.bf16.msra.mxu0 %v5107_v27 }
 0x353   :  { %v2056_v60 = vpop.f32.mrf.mxu2 }
 0x354   :  { %v5706_v60 = vld [vmem:[%s6943_s13 + $0x40] sm:$0xff] }
 0x355   :  { %v2960_v15 = vpop.f32.mrf.mxu3  ;;  %2305 = vmatpush.bf16.msrb.mxu1 %v5706_v60 }
 0x35b   :  { %v2947_v42 = vpop.f32.mrf.mxu2 }
 0x35c   :  { %v2948_v43 = vadd.f32 %v2947_v42, %v2427_v37  ;;  %v5074_v37 = vld [vmem:[#allocation8 + $0x260] sm:$0xf]  ;;  %v5792_v42 = vld [vmem:[#allocation8 + $0x26c] sm:$0xf0] }
 0x35d   :  { %v2962_v44 = vpop.f32.mrf.mxu3 }
 0x35e   :  { %v6734_v56 = vadd.f32 %v2960_v15, %v2948_v43  ;;  %v5091_v15 = vor.u32 %v5796_v30, %v5090_v24  ;;  %v5075_v43 = vor.u32 %v5792_v42, %v5074_v37  ;;  %v5058_v44 = vld [vmem:[#allocation8 + $0x240] sm:$0xf]  ;;  %v5742_v42 = vld [vmem:[#allocation8 + $0xe4] sm:$0xf] }
 0x360   :  { %2967 = vmatpush.bf16.msra.mxu0 %v5091_v15 }
 0x363   :  { %v2949_v45 = vpop.f32.mrf.mxu2 }
 0x364   :  { %2968 = vmatpush.bf16.msra.mxu0 %v5075_v43  ;;  %v5788_v45 = vld [vmem:[#allocation8 + $0x24c] sm:$0xf0] }
 0x365   :  { %v6736_v46 = vpop.f32.mrf.mxu3 }
 0x36b   :  { %v6738_v47 = vpop.f32.mrf.mxu2 }
 0x36d   :  { %v3027_v40 = vpop.f32.mrf.mxu3 }
 0x36e   :  { %v5059_v40 = vor.u32 %v5788_v45, %v5058_v44  ;;  %v4884_v45 = vld [vmem:[#allocation8 + $0xf0] sm:$0xf0] }
 0x370   :  { %2969 = vmatpush.bf16.msra.mxu0 %v5059_v40  ;;  %v5810_v40 = vld [vmem:[#allocation8 + $0x304] sm:$0xf] }
 0x373   :  { %v3014_v48 = vpop.f32.mrf.mxu2 }
 0x374   :  { %v2081_v48 = vld [vmem:[%s6941_s11] sm:$0xff] }
 0x375   :  { %v6740_v49 = vpop.f32.mrf.mxu3  ;;  %v2116_v4 = vperm.slane %v2081_v48, 6  ;;  %v2129_v5 = vperm.slane %v2081_v48, 3  ;;  %v2130_v6 = vperm.slane %v2081_v48, 7 }
 0x377   :  { %v2120_v10 = vperm.slane %v2116_v4, 2  ;;  %v2133_v36 = vperm.slane %v2129_v5, 3  ;;  %v2134_v12 = vperm.slane %v2130_v6, 3  ;;  %v4820_v5 = vld [vmem:[#allocation8 + $0x70] sm:$0xf0] }
 0x378   :  { %v4890_v6 = vld [vmem:[#allocation8 + $0xe8] sm:$0xf] }
 0x37d   :  { %v3092_v50 = vpop.f32.mrf.mxu3 }
 0x37e   :  { %v2101_v50 = vperm.slane %v2081_v48, 1 }
 0x389   :  { %v6742_v51 = vpop.f32.mrf.mxu3 }
 0x38b   :  { %v6744_v52 = vpop.f32.mrf.mxu2 }
 0x391   :  { %v3105_v53 = vpop.f32.mrf.mxu3 }
 0x392   :  { %v5042_v53 = vld [vmem:[#allocation8 + $0x220] sm:$0xf] }
 0x393   :  { %v3079_v54 = vpop.f32.mrf.mxu2 }
 0x394   :  { %v5784_v54 = vld [vmem:[#allocation8 + $0x22c] sm:$0xf0] }
 0x39b   :  { %v6746_v33 = vpop.f32.mrf.mxu2 }
 0x3a3   :  { %v3144_v55 = vpop.f32.mrf.mxu2 }
 0x3a4   :  { %v2102_v55 = vperm.slane %v2081_v48, 5 }
 0x3c2   :  { %v2073_v59 = vpop.permute.xlu0 %2072 }
 0x3c3   :  { %v2075_v61 = vsub.f32 %v2068_v34, %v2073_v59  ;;  %v5812_v34 = vld [vmem:[#allocation8 + $0x30c] sm:$0xf0]  ;;  %v2089_v59 = vperm.slane %v2081_v48, 4 }
 0x3c4   :  { %v5155_v29 = vor.u32 %v5812_v34, %v5154_v31  ;;  %v2141_v31 = vperm.slane %v2139_v18, 0  ;;  %v2142_v34 = vperm.slane %v2139_v18, 1  ;;  %v4788_v18 = vld [vmem:[#allocation8 + $0x30] sm:$0xf0] }
 0x3c5   :  { %v2076_v63 = vmul.f32 1.442695, %v2075_v61  ;;  %v2093_v7 = vperm.slane %v2089_v59, 0  ;;  %v5738_v59 = vld [vmem:[#allocation8 + $0xc4] sm:$0xf] }
 0x3c6   :  { %2984 = vmatpush.bf16.msra.mxu1 %v5155_v29 }
 0x3c7   :  { %5918 = vpow2.f32 %v2076_v63  ;;  %v2105_v63 = vperm.slane %v2101_v50, 1 }
 0x3cd   :  { %v5919_v0 = vpop.eup %5918 }
 0x3ce   :  { %v2078_v1 = vadd.f32 1.0, %v5919_v0  ;;  %v5026_v0 = vld [vmem:[#allocation8 + $0x200] sm:$0xf] }
 0x3d0   :  { %5920 = vrcp.f32 %v2078_v1  ;;  %v5780_v1 = vld [vmem:[#allocation8 + $0x20c] sm:$0xf0] }
 0x3d1   :  { %v5027_v26 = vor.u32 %v5780_v1, %v5026_v0  ;;  %v5734_v1 = vld [vmem:[#allocation8 + $0xa4] sm:$0xf] }
 0x3d6   :  { %v5921_v3 = vpop.eup %5920 }
 0x3d7   :  { %2084 = vperm.xlu0 %5909, %v5921_v3   ;;  %v2080_v23 = vsub.f32 1.0, %v5921_v3 }
 0x3d9   :  { %2126 = vperm.xlu2 %5912, %v2080_v23   ;;  %2098 = vperm.xlu1 %5910, %v2080_v23   ;;  %v2115_v23 = vperm.slane %v2081_v48, 2 }
 0x3db   :  { %v2119_v9 = vperm.slane %v2115_v23, 2  ;;  %v4836_v23 = vld [vmem:[#allocation8 + $0x90] sm:$0xf0] }
 0x3e1   :  { %5911 = vset.pattern.permute.xlu1 %v6119_v58  ;;  %5914 = vset.pattern.permute.xlu2 %v6118_v57  ;;  %v2088_v58 = vperm.slane %v2081_v48, 0  ;;  %v5156_v48 = vld [vmem:[#allocation8 + $0x310] sm:$0xf0] }
 0x3e2   :  { %2112 = vperm.xlu1 %5911, %v5921_v3   ;;  %v2106_v3 = vperm.slane %v2102_v55, 1  ;;  %v5159_v55 = vor.u32 %v5810_v40, %v5156_v48  ;;  %v4810_v48 = vld [vmem:[#allocation8 + $0x48] sm:$0xf] }
 0x3e3   :  { %v2092_v62 = vperm.slane %v2088_v58, 0 }
 0x3ea   :  { %5913 = vset.pattern.permute.xlu1 %v6118_v57  ;;  %v5043_v57 = vor.u32 %v5784_v54, %v5042_v53  ;;  %v4887_v54 = vor.u32 %v5742_v42, %v4884_v45  ;;  %v5729_v42 = vld [vmem:[#allocation8 + $0x74] sm:$0xf0] }
 0x3ec   :  { %2970 = vmatpush.bf16.msra.mxu0 %v5043_v57 }
 0x3f0   :  { %2971 = vmatpush.bf16.msra.mxu0 %v5027_v26  ;;  %v5726_v26 = vld [vmem:[#allocation8 + $0x64] sm:$0xf] }
 0x433   :  { %v6805_v13 = vpop.permute.xlu2 %2126 }
 0x434   :  { %v2135_v25 = vmul.f32 %v2133_v36, %v6805_v13  ;;  %v2136_v27 = vmul.f32 %v2134_v12, %v6805_v13  ;;  %v5741_v36 = vld [vmem:[#allocation8 + $0xd4] sm:$0xf0] }
 0x449   :  { %v6801_v39 = vpop.permute.xlu0 %2084 }
 0x44a   :  { %v2094_v14 = vmul.f32 %v2092_v62, %v6801_v39  ;;  %v2095_v17 = vmul.f32 %v2093_v7, %v6801_v39  ;;  %v5745_v62 = vld [vmem:[#allocation8 + $0xf4] sm:$0xf0]  ;;  %v4823_v7 = vor.u32 %v5726_v26, %v4820_v5  ;;  %v5775_v26 = vld [vmem:[#allocation8 + $0x1ec] sm:$0xf]  ;;  %v5020_v5 = vld [vmem:[#allocation8 + $0x1f8] sm:$0xf0] }
 0x44b   :  { %v6799_v61 = vpop.permute.xlu1 %2098 }
 0x44c   :  { %v2107_v35 = vmul.f32 %v2105_v63, %v6799_v61  ;;  %v2108_v8 = vmul.f32 %v2106_v3, %v6799_v61  ;;  %v4868_v63 = vld [vmem:[#allocation8 + $0xd0] sm:$0xf0]  ;;  %v5730_v3 = vld [vmem:[#allocation8 + $0x84] sm:$0xf] }
 0x44d   :  { %v4871_v0 = vor.u32 %v5738_v59, %v4868_v63  ;;  %v4839_v4 = vor.u32 %v5730_v3, %v4836_v23  ;;  %v5721_v59 = vld [vmem:[#allocation8 + $0x34] sm:$0xf0]  ;;  %v4970_v63 = vld [vmem:[#allocation8 + $0x188] sm:$0xf] }
 0x44e   :  { %v2109_v19 = vadd.f32 %v2107_v35, %v2094_v14  ;;  %v2110_v20 = vadd.f32 %v2108_v8, %v2095_v17  ;;  %v4891_v35 = vor.u32 %v5745_v62, %v4890_v6  ;;  %v5722_v8 = vld [vmem:[#allocation8 + $0x44] sm:$0xf]  ;;  %v5717_v3 = vld [vmem:[#allocation8 + $0x14] sm:$0xf0]  ;;  %v4954_v23 = vld [vmem:[#allocation8 + $0x168] sm:$0xf]  ;;  %v5023_v62 = vor.u32 %v5775_v26, %v5020_v5 }
 0x44f   :  { %v5718_v17 = vld [vmem:[#allocation8 + $0x24] sm:$0xf]  ;;  %v5068_v26 = vld [vmem:[#allocation8 + $0x258] sm:$0xf0] }
 0x454   :  { %v6809_v16 = vpop.permute.xlu1 %2112 }
 0x455   :  { %v2121_v21 = vmul.f32 %v2119_v9, %v6809_v16  ;;  %v2122_v22 = vmul.f32 %v2120_v10, %v6809_v16  ;;  %v4804_v9 = vld [vmem:[#allocation8 + $0x50] sm:$0xf0]  ;;  %v4874_v10 = vld [vmem:[#allocation8 + $0xc8] sm:$0xf] }
 0x456   :  { %v4807_v12 = vor.u32 %v5722_v8, %v4804_v9  ;;  %v4875_v14 = vor.u32 %v5741_v36, %v4874_v10  ;;  %v5771_v8 = vld [vmem:[#allocation8 + $0x1cc] sm:$0xf]  ;;  %v5004_v9 = vld [vmem:[#allocation8 + $0x1d8] sm:$0xf0] }
 0x457   :  { %v2123_v24 = vadd.f32 %v2121_v21, %v2109_v19  ;;  %v2124_v30 = vadd.f32 %v2122_v22, %v2110_v20  ;;  %v4858_v19 = vld [vmem:[#allocation8 + $0xa8] sm:$0xf]  ;;  %v5737_v20 = vld [vmem:[#allocation8 + $0xb4] sm:$0xf0]  ;;  %v4791_v21 = vor.u32 %v5718_v17, %v4788_v18  ;;  %v5007_v36 = vor.u32 %v5771_v8, %v5004_v9  ;;  %v5767_v17 = vld [vmem:[#allocation8 + $0x1ac] sm:$0xf] }
 0x458   :  { %v4859_v22 = vor.u32 %v5737_v20, %v4858_v19  ;;  %v4988_v18 = vld [vmem:[#allocation8 + $0x1b8] sm:$0xf0]  ;;  %v5230_v9 = vld [vmem:[#allocation10 + $0x70] sm:$0xf] }
 0x459   :  { %v2137_v60 = vadd.f32 %v2135_v25, %v2123_v24  ;;  %v2138_v15 = vadd.f32 %v2136_v27, %v2124_v30  ;;  %v5714_v25 = vld [vmem:[#allocation8 + $0x4] sm:$0xf]  ;;  %v4772_v27 = vld [vmem:[#allocation8 + $0x10] sm:$0xf0]  ;;  %v4842_v24 = vld [vmem:[#allocation8 + $0x88] sm:$0xf]  ;;  %v4991_v20 = vor.u32 %v5767_v17, %v4988_v18 }
 0x45a   :  { %v5733_v30 = vld [vmem:[#allocation8 + $0x94] sm:$0xf0]  ;;  %v5916_v18 = vld [vmem:[#allocation7] ss:$0 sm:$0xff] }
 0x45b   :  { %v2145_v29 = vadd.f32 %v2141_v31, %v2137_v60  ;;  %v2146_v37 = vadd.f32 %v2142_v34, %v2138_v15  ;;  %v5018_v31 = vld [vmem:[#allocation8 + $0x1e8] sm:$0xf]  ;;  %v5777_v34 = vld [vmem:[#allocation8 + $0x1f4] sm:$0xf0]  ;;  %v4775_v60 = vor.u32 %v5714_v25, %v4772_v27  ;;  %v4843_v15 = vor.u32 %v5733_v30, %v4842_v24  ;;  %v5763_v25 = vld [vmem:[#allocation8 + $0x18c] sm:$0xf] }
 0x45c   :  { %v4972_v27 = vld [vmem:[#allocation8 + $0x198] sm:$0xf0]  ;;  %v5807_v24 = vld [vmem:[#allocation8 + $0x2ec] sm:$0xf] }
 0x45d   :  { %v2147_v43 = vmul.f32 %v2145_v29, %v6702_v41  ;;  %v2148_v44 = vmul.f32 %v2146_v37, %v6699_v28  ;;  %v4852_v41 = vld [vmem:[#allocation8 + $0xb0] sm:$0xf0]  ;;  %v5019_v29 = vor.u32 %v5777_v34, %v5018_v31  ;;  %v4826_v37 = vld [vmem:[#allocation8 + $0x68] sm:$0xf]  ;;  %v5148_v30 = vld [vmem:[#allocation8 + $0x2f8] sm:$0xf0]  ;;  %v4975_v34 = vor.u32 %v5763_v25, %v4972_v27 }
 0x45e   :  { %v4855_v28 = vor.u32 %v5734_v1, %v4852_v41  ;;  %v4827_v45 = vor.u32 %v5729_v42, %v4826_v37  ;;  %v5803_v37 = vld [vmem:[#allocation8 + $0x2cc] sm:$0xf]  ;;  %v5132_v42 = vld [vmem:[#allocation8 + $0x2d8] sm:$0xf0]  ;;  %v5826_v25 = vld [vmem:[#allocation10 + $0x64] sm:$0xf] }
 0x45f   :  { %v2149_v50 = vmax.f32 %v2147_v43, 0.0  ;;  %v2150_v53 = vmax.f32 %v2148_v44, 0.0  ;;  %v5002_v43 = vld [vmem:[#allocation8 + $0x1c8] sm:$0xf]  ;;  %v5773_v44 = vld [vmem:[#allocation8 + $0x1d4] sm:$0xf0] }
 0x460   :  { %v5003_v40 = vor.u32 %v5773_v44, %v5002_v43  ;;  %v5135_v43 = vor.u32 %v5803_v37, %v5132_v42  ;;  %v5755_v44 = vld [vmem:[#allocation8 + $0x14c] sm:$0xf] }
 0x461   :  { %v2151_v57 = vpack.c.bf16 %v2149_v50, %v2149_v50  ;;  %v2152_v58 = vpack.c.bf16 %v2150_v53, %v2150_v53  ;;  %v5725_v50 = vld [vmem:[#allocation8 + $0x54] sm:$0xf0]  ;;  %v4986_v53 = vld [vmem:[#allocation8 + $0x1a8] sm:$0xf] }
 0x463   :  { %2293 = vmatmul.bf16.vlgmr.msrb.gmra.mxu0 %v2151_v57  ;;  %2306 = vmatmul.bf16.vlgmr.msrb.gmra.mxu1 %v2152_v58  ;;  %v4794_v58 = vld [vmem:[#allocation8 + $0x28] sm:$0xf] }
 0x464   :  { %2990 = vmatpush.bf16.msrb.mxu1 %v4887_v54  ;;  %3036 = vmatpush.bf16.msrb.mxu0 %v5159_v55  ;;  %v5769_v54 = vld [vmem:[#allocation8 + $0x1b4] sm:$0xf0]  ;;  %v4811_v55 = vor.u32 %v5725_v50, %v4810_v48  ;;  %v4795_v1 = vor.u32 %v5721_v59, %v4794_v58  ;;  %v5116_v48 = vld [vmem:[#allocation8 + $0x2b8] sm:$0xf0] }
 0x465   :  { %v4987_v57 = vor.u32 %v5769_v54, %v4986_v53  ;;  %v5751_v54 = vld [vmem:[#allocation8 + $0x12c] sm:$0xf]  ;;  %v5100_v58 = vld [vmem:[#allocation8 + $0x298] sm:$0xf0] }
 0x468   :  { %2991 = vmatpush.bf16.msrb.mxu1 %v4871_v0  ;;  %v5765_v0 = vld [vmem:[#allocation8 + $0x194] sm:$0xf0] }
 0x469   :  { %v4971_v41 = vor.u32 %v5765_v0, %v4970_v63  ;;  %v5747_v0 = vld [vmem:[#allocation8 + $0x10c] sm:$0xf] }
 0x46c   :  { %2992 = vmatpush.bf16.msrb.mxu1 %v4855_v28  ;;  %v4778_v28 = vld [vmem:[#allocation8 + $0x8] sm:$0xf] }
 0x470   :  { %2993 = vmatpush.bf16.msrb.mxu1 %v4839_v4  ;;  %v5761_v4 = vld [vmem:[#allocation8 + $0x174] sm:$0xf0] }
 0x471   :  { %v4955_v6 = vor.u32 %v5761_v4, %v4954_v23  ;;  %v5787_v4 = vld [vmem:[#allocation8 + $0x24c] sm:$0xf] }
 0x472   :  { %v5071_v5 = vor.u32 %v5787_v4, %v5068_v26  ;;  %v5182_v4 = vld [vmem:[#allocation10 + $0x10] sm:$0xf]  ;;  %v5817_v26 = vld [vmem:[#allocation10 + $0x14] sm:$0xf0] }
 0x473   :  { %2972 = vmatmul.bf16.vlgmr.msra.gmra.mxu0 %v6714_v38  ;;  %5168 = vmatmul.msk.bf16.vlgmr.msra.gmra.mxu1 %vm1014_vm3, %v6719_v32 }
 0x474   :  { %2994 = vmatpush.bf16.msrb.mxu1 %v4823_v7  ;;  %3042 = vmatpush.bf16.msra.mxu0 %v4891_v35  ;;  %v4938_v7 = vld [vmem:[#allocation8 + $0x148] sm:$0xf]  ;;  %v5757_v35 = vld [vmem:[#allocation8 + $0x154] sm:$0xf0] }
 0x475   :  { %v4939_v10 = vor.u32 %v5757_v35, %v4938_v7  ;;  %v5779_v7 = vld [vmem:[#allocation8 + $0x20c] sm:$0xf]  ;;  %v5036_v35 = vld [vmem:[#allocation8 + $0x218] sm:$0xf0] }
 0x476   :  { %v5039_v8 = vor.u32 %v5779_v7, %v5036_v35 }
 0x478   :  { %2995 = vmatpush.bf16.msrb.mxu1 %v4807_v12  ;;  %3043 = vmatpush.bf16.msra.mxu0 %v4875_v14  ;;  %v4922_v12 = vld [vmem:[#allocation8 + $0x128] sm:$0xf]  ;;  %v5753_v14 = vld [vmem:[#allocation8 + $0x134] sm:$0xf0] }
 0x479   :  { %v4923_v19 = vor.u32 %v5753_v14, %v4922_v12  ;;  %v5232_v14 = vld [vmem:[#allocation10 + $0x78] sm:$0xf0] }
 0x47c   :  { %2996 = vmatpush.bf16.msrb.mxu1 %v4791_v21  ;;  %3044 = vmatpush.bf16.msra.mxu0 %v4859_v22  ;;  %v4906_v21 = vld [vmem:[#allocation8 + $0x108] sm:$0xf]  ;;  %v5749_v22 = vld [vmem:[#allocation8 + $0x114] sm:$0xf0] }
 0x47d   :  { %v4907_v31 = vor.u32 %v5749_v22, %v4906_v21  ;;  %v5222_v21 = vld [vmem:[#allocation10 + $0x60] sm:$0xf]  ;;  %v5827_v22 = vld [vmem:[#allocation10 + $0x64] sm:$0xf0] }
 0x47e   :  { %v5223_v27 = vor.u32 %v5827_v22, %v5222_v21  ;;  %v5176_v21 = vld [vmem:[#allocation10 + $0x8] sm:$0xf0]  ;;  %v5358_v22 = vld [vmem:[#allocation11 + $0x70] sm:$0xf] }
 0x480   :  { %2997 = vmatpush.bf16.msrb.mxu1 %v4775_v60  ;;  %3045 = vmatpush.bf16.msra.mxu0 %v4843_v15  ;;  %v5151_v60 = vor.u32 %v5807_v24, %v5148_v30  ;;  %v5759_v15 = vld [vmem:[#allocation8 + $0x16c] sm:$0xf] }
 0x481   :  { %v5224_v24 = vld [vmem:[#allocation10 + $0x68] sm:$0xf0] }
 0x483   :  { %2998 = vmatmul.bf16.vlgmr.msrb.gmra.mxu1 %v6710_v11  ;;  %5169 = vmatmul.msk.bf16.vlgmr.msrb.gmra.mxu0 %vm1014_vm3, %v6719_v32  ;;  %v4779_v32 = vor.u32 %v5717_v3, %v4778_v28  ;;  %v5084_v28 = vld [vmem:[#allocation8 + $0x278] sm:$0xf0] }
 0x484   :  { %3055 = vmatpush.bf16.msra.mxu1 %v5019_v29  ;;  %3046 = vmatpush.bf16.msra.mxu0 %v4827_v45  ;;  %v4956_v29 = vld [vmem:[#allocation8 + $0x178] sm:$0xf0] }
 0x485   :  { %v4940_v45 = vld [vmem:[#allocation8 + $0x158] sm:$0xf0] }
 0x486   :  { %v4943_v50 = vor.u32 %v5755_v44, %v4940_v45  ;;  %v5823_v44 = vld [vmem:[#allocation10 + $0x44] sm:$0xf0]  ;;  %v5822_v45 = vld [vmem:[#allocation10 + $0x44] sm:$0xf] }
 0x488   :  { %3056 = vmatpush.bf16.msra.mxu1 %v5003_v40  ;;  %3047 = vmatpush.bf16.msra.mxu0 %v4811_v55  ;;  %v5799_v40 = vld [vmem:[#allocation8 + $0x2ac] sm:$0xf]  ;;  %v4924_v55 = vld [vmem:[#allocation8 + $0x138] sm:$0xf0] }
 0x489   :  { %v5119_v53 = vor.u32 %v5799_v40, %v5116_v48  ;;  %v4927_v59 = vor.u32 %v5751_v54, %v4924_v55  ;;  %v5208_v48 = vld [vmem:[#allocation10 + $0x48] sm:$0xf0]  ;;  %v5820_v55 = vld [vmem:[#allocation10 + $0x34] sm:$0xf] }
 0x48a   :  { %v5211_v54 = vor.u32 %v5822_v45, %v5208_v48  ;;  %v5858_v45 = vld [vmem:[#allocation11 + $0x64] sm:$0xf]  ;;  %v5352_v48 = vld [vmem:[#allocation11 + $0x68] sm:$0xf0] }
 0x48c   :  { %3057 = vmatpush.bf16.msra.mxu1 %v4987_v57  ;;  %3048 = vmatpush.bf16.msra.mxu0 %v4795_v1  ;;  %v5795_v57 = vld [vmem:[#allocation8 + $0x28c] sm:$0xf]  ;;  %v4908_v1 = vld [vmem:[#allocation8 + $0x118] sm:$0xf0] }
 0x48d   :  { %v5103_v63 = vor.u32 %v5795_v57, %v5100_v58  ;;  %v4911_v3 = vor.u32 %v5747_v0, %v4908_v1  ;;  %v5200_v57 = vld [vmem:[#allocation10 + $0x38] sm:$0xf0]  ;;  %v5190_v1 = vld [vmem:[#allocation10 + $0x20] sm:$0xf] }
 0x490   :  { %3058 = vmatpush.bf16.msra.mxu1 %v4971_v41  ;;  %3049 = vmatpush.bf16.msra.mxu0 %v4779_v32  ;;  %v5791_v41 = vld [vmem:[#allocation8 + $0x26c] sm:$0xf] }
 0x491   :  { %v5087_v23 = vor.u32 %v5791_v41, %v5084_v28  ;;  %v5783_v32 = vld [vmem:[#allocation8 + $0x22c] sm:$0xf]  ;;  %v5819_v41 = vld [vmem:[#allocation10 + $0x24] sm:$0xf0]  ;;  %v5818_v28 = vld [vmem:[#allocation10 + $0x24] sm:$0xf] }
 0x493   :  { %3050 = vmatmul.bf16.vlgmr.msra.gmra.mxu0 %v6710_v11  ;;  %v4959_v11 = vor.u32 %v5759_v15, %v4956_v29  ;;  %v5216_v29 = vld [vmem:[#allocation10 + $0x58] sm:$0xf0] }
 0x494   :  { %3059 = vmatpush.bf16.msra.mxu1 %v4955_v6  ;;  %3107 = vmatpush.bf16.msrb.mxu0 %v5023_v62  ;;  %v5052_v6 = vld [vmem:[#allocation8 + $0x238] sm:$0xf0] }
 0x495   :  { %v5055_v62 = vor.u32 %v5783_v32, %v5052_v6  ;;  %v5816_v32 = vld [vmem:[#allocation10 + $0x14] sm:$0xf]  ;;  %v5184_v6 = vld [vmem:[#allocation10 + $0x18] sm:$0xf0] }
 0x496   :  { %v5187_v7 = vor.u32 %v5816_v32, %v5184_v6  ;;  %v5270_v32 = vld [vmem:[#allocation10 + $0xc0] sm:$0xf]  ;;  %v5839_v6 = vld [vmem:[#allocation10 + $0xc4] sm:$0xf0] }
 0x498   :  { %3060 = vmatpush.bf16.msra.mxu1 %v4939_v10  ;;  %3108 = vmatpush.bf16.msrb.mxu0 %v5007_v36  ;;  %v5829_v10 = vld [vmem:[#allocation10 + $0x74] sm:$0xf0]  ;;  %v5828_v36 = vld [vmem:[#allocation10 + $0x74] sm:$0xf] }
 0x499   :  { %v5231_v12 = vor.u32 %v5829_v10, %v5230_v9  ;;  %v5235_v17 = vor.u32 %v5828_v36, %v5232_v14  ;;  %v5294_v9 = vld [vmem:[#allocation10 + $0xf0] sm:$0xf]  ;;  %v5845_v10 = vld [vmem:[#allocation10 + $0xf4] sm:$0xf0]  ;;  %v5844_v36 = vld [vmem:[#allocation10 + $0xf4] sm:$0xf] }
 0x49a   :  { %v5296_v14 = vld [vmem:[#allocation10 + $0xf8] sm:$0xf0] }
 0x49b   :  { %3362 = vmatpush.bf16.msra.mxu2 %v5231_v12  ;;  %v5295_v12 = vor.u32 %v5845_v10, %v5294_v9  ;;  %v5334_v9 = vld [vmem:[#allocation11 + $0x40] sm:$0xf]  ;;  %v5855_v10 = vld [vmem:[#allocation11 + $0x44] sm:$0xf0] }
 0x49c   :  { %3061 = vmatpush.bf16.msra.mxu1 %v4923_v19  ;;  %3109 = vmatpush.bf16.msrb.mxu0 %v4991_v20 }
 0x49d   :  { %3375 = vmatpush.bf16.msra.mxu3 %v5295_v12  ;;  %v5335_v12 = vor.u32 %v5855_v10, %v5334_v9  ;;  %v5240_v10 = vld [vmem:[#allocation10 + $0x88] sm:$0xf0] }
 0x49f   :  { %3363 = vmatpush.bf16.msra.mxu2 %v5223_v27  ;;  %v5861_v27 = vld [vmem:[#allocation11 + $0x74] sm:$0xf0] }
 0x4a0   :  { %3062 = vmatpush.bf16.msra.mxu1 %v4907_v31  ;;  %3110 = vmatpush.bf16.msrb.mxu0 %v4975_v34  ;;  %v5214_v31 = vld [vmem:[#allocation10 + $0x50] sm:$0xf]  ;;  %v5825_v34 = vld [vmem:[#allocation10 + $0x54] sm:$0xf0] }
 0x4a1   :  { %v5215_v15 = vor.u32 %v5825_v34, %v5214_v31  ;;  %v5359_v31 = vor.u32 %v5861_v27, %v5358_v22 }
 0x4a3   :  { %3063 = vmatmul.bf16.vlgmr.msra.gmra.mxu1 %v6706_v2  ;;  %3364 = vmatpush.bf16.msra.mxu2 %v5215_v15  ;;  %v5843_v15 = vld [vmem:[#allocation10 + $0xe4] sm:$0xf0] }
 0x4a4   :  { %3120 = vmatpush.bf16.msrb.mxu1 %v5151_v60  ;;  %3111 = vmatpush.bf16.msrb.mxu0 %v4959_v11  ;;  %v5824_v60 = vld [vmem:[#allocation10 + $0x54] sm:$0xf] }
 0x4a5   :  { %v5219_v37 = vor.u32 %v5824_v60, %v5216_v29  ;;  %v5286_v60 = vld [vmem:[#allocation10 + $0xe0] sm:$0xf]  ;;  %v5842_v29 = vld [vmem:[#allocation10 + $0xe4] sm:$0xf] }
 0x4a8   :  { %3121 = vmatpush.bf16.msrb.mxu1 %v5135_v43  ;;  %3112 = vmatpush.bf16.msrb.mxu0 %v4943_v50  ;;  %v5206_v43 = vld [vmem:[#allocation10 + $0x40] sm:$0xf]  ;;  %v5198_v50 = vld [vmem:[#allocation10 + $0x30] sm:$0xf] }
 0x4a9   :  { %v5207_v40 = vor.u32 %v5823_v44, %v5206_v43  ;;  %v5350_v43 = vld [vmem:[#allocation11 + $0x60] sm:$0xf]  ;;  %v5859_v44 = vld [vmem:[#allocation11 + $0x64] sm:$0xf0] }
 0x4ab   :  { %3365 = vmatpush.bf16.msra.mxu2 %v5207_v40  ;;  %v5351_v40 = vor.u32 %v5859_v44, %v5350_v43  ;;  %v5256_v43 = vld [vmem:[#allocation10 + $0xa8] sm:$0xf0] }
 0x4ac   :  { %3122 = vmatpush.bf16.msrb.mxu1 %v5119_v53  ;;  %3113 = vmatpush.bf16.msrb.mxu0 %v4927_v59  ;;  %v5821_v53 = vld [vmem:[#allocation10 + $0x34] sm:$0xf0]  ;;  %v5203_v59 = vor.u32 %v5820_v55, %v5200_v57  ;;  %v5278_v55 = vld [vmem:[#allocation10 + $0xd0] sm:$0xf] }
 0x4ad   :  { %v5199_v58 = vor.u32 %v5821_v53, %v5198_v50  ;;  %v5841_v57 = vld [vmem:[#allocation10 + $0xd4] sm:$0xf0] }
 0x4af   :  { %3366 = vmatpush.bf16.msra.mxu2 %v5199_v58  ;;  %v5840_v58 = vld [vmem:[#allocation10 + $0xd4] sm:$0xf] }
 0x4b0   :  { %3123 = vmatpush.bf16.msrb.mxu1 %v5103_v63  ;;  %3114 = vmatpush.bf16.msrb.mxu0 %v4911_v3  ;;  %v5191_v3 = vor.u32 %v5819_v41, %v5190_v1  ;;  %v5280_v1 = vld [vmem:[#allocation10 + $0xd8] sm:$0xf0] }
 0x4b1   :  { %v5283_v41 = vor.u32 %v5840_v58, %v5280_v1  ;;  %v5833_v58 = vld [vmem:[#allocation10 + $0x94] sm:$0xf0] }
 0x4b3   :  { %3115 = vmatmul.bf16.vlgmr.msrb.gmra.mxu0 %v6706_v2  ;;  %3367 = vmatpush.bf16.msra.mxu2 %v5191_v3  ;;  %v5857_v3 = vld [vmem:[#allocation11 + $0x54] sm:$0xf0] }
 0x4b4   :  { %3124 = vmatpush.bf16.msrb.mxu1 %v5087_v23  ;;  %3388 = vmatpush.bf16.msra.mxu0 %v5235_v17  ;;  %v5192_v23 = vld [vmem:[#allocation10 + $0x28] sm:$0xf0]  ;;  %v5174_v17 = vld [vmem:[#allocation10] sm:$0xf] }
 0x4b8   :  { %3125 = vmatpush.bf16.msrb.mxu1 %v5071_v5  ;;  %v5195_v5 = vor.u32 %v5818_v28, %v5192_v23  ;;  %v5342_v28 = vld [vmem:[#allocation11 + $0x50] sm:$0xf]  ;;  %v5856_v23 = vld [vmem:[#allocation11 + $0x54] sm:$0xf] }
 0x4bc   :  { %3126 = vmatpush.bf16.msrb.mxu1 %v5055_v62  ;;  %v5183_v62 = vor.u32 %v5817_v26, %v5182_v4  ;;  %v5343_v4 = vor.u32 %v5857_v3, %v5342_v28  ;;  %v5344_v26 = vld [vmem:[#allocation11 + $0x58] sm:$0xf0]  ;;  %v5832_v28 = vld [vmem:[#allocation10 + $0x94] sm:$0xf] }
 0x4bd   :  { %v5248_v3 = vld [vmem:[#allocation10 + $0x98] sm:$0xf0] }
 0x4be   :  { %3368 = vmatpush.bf16.msra.mxu2 %v5183_v62  ;;  %v5838_v62 = vld [vmem:[#allocation10 + $0xc4] sm:$0xf] }
 0x4c0   :  { %3127 = vmatpush.bf16.msrb.mxu1 %v5039_v8 }
 0x4c3   :  { %3128 = vmatmul.bf16.vlgmr.msrb.gmra.mxu1 %v6714_v38  ;;  %v5227_v38 = vor.u32 %v5826_v25, %v5224_v24  ;;  %v5860_v24 = vld [vmem:[#allocation11 + $0x74] sm:$0xf] }
 0x4c5   :  { %3389 = vmatpush.bf16.msra.mxu0 %v5227_v38  ;;  %v5360_v38 = vld [vmem:[#allocation11 + $0x78] sm:$0xf0] }
 0x4c6   :  { %v5363_v34 = vor.u32 %v5860_v24, %v5360_v38  ;;  %v5326_v24 = vld [vmem:[#allocation11 + $0x30] sm:$0xf]  ;;  %v5853_v38 = vld [vmem:[#allocation11 + $0x34] sm:$0xf0] }
 0x4c9   :  { %3390 = vmatpush.bf16.msra.mxu0 %v5219_v37  ;;  %v5287_v37 = vor.u32 %v5843_v15, %v5286_v60  ;;  %v5328_v60 = vld [vmem:[#allocation11 + $0x38] sm:$0xf0] }
 0x4cb   :  { %3376 = vmatpush.bf16.msra.mxu3 %v5287_v37  ;;  %v5835_v37 = vld [vmem:[#allocation10 + $0xa4] sm:$0xf0] }
 0x4cd   :  { %3391 = vmatpush.bf16.msra.mxu0 %v5211_v54  ;;  %v5355_v54 = vor.u32 %v5858_v45, %v5352_v48  ;;  %v5318_v45 = vld [vmem:[#allocation11 + $0x20] sm:$0xf]  ;;  %v5850_v48 = vld [vmem:[#allocation11 + $0x24] sm:$0xf] }
 0x4d1   :  { %3392 = vmatpush.bf16.msra.mxu0 %v5203_v59  ;;  %v5279_v59 = vor.u32 %v5841_v57, %v5278_v55  ;;  %v5320_v55 = vld [vmem:[#allocation11 + $0x28] sm:$0xf0]  ;;  %v5246_v57 = vld [vmem:[#allocation10 + $0x90] sm:$0xf] }
 0x4d2   :  { %v5323_v1 = vor.u32 %v5850_v48, %v5320_v55  ;;  %v5873_v48 = vld [vmem:[#allocation11 + $0xd4] sm:$0xf0] }
 0x4d3   :  { %3377 = vmatpush.bf16.msra.mxu3 %v5279_v59 }
 0x4d5   :  { %3393 = vmatpush.bf16.msra.mxu0 %v5195_v5  ;;  %v5347_v5 = vor.u32 %v5856_v23, %v5344_v26  ;;  %v5251_v23 = vor.u32 %v5832_v28, %v5248_v3  ;;  %v5849_v26 = vld [vmem:[#allocation11 + $0x14] sm:$0xf0]  ;;  %v5398_v3 = vld [vmem:[#allocation11 + $0xc0] sm:$0xf] }
 0x4d9   :  { %3394 = vmatpush.bf16.msra.mxu0 %v5187_v7  ;;  %v5271_v7 = vor.u32 %v5839_v6, %v5270_v32  ;;  %v5312_v6 = vld [vmem:[#allocation11 + $0x18] sm:$0xf0] }
 0x4db   :  { %3378 = vmatpush.bf16.msra.mxu3 %v5271_v7  ;;  %v5238_v7 = vld [vmem:[#allocation10 + $0x80] sm:$0xf] }
 0x4e0   :  { %v2294_v19 = vpop.f32.mrf.mxu0  ;;  %v2307_v2 = vpop.f32.mrf.mxu1 }
 0x4e1   :  { %v2295_v20 = vadd.f32 %v5916_v18, %v2294_v19  ;;  %v5815_v18 = vld [vmem:[#allocation10 + $0x4] sm:$0xf0]  ;;  %v5299_v19 = vor.u32 %v5844_v36, %v5296_v14  ;;  %v5854_v36 = vld [vmem:[#allocation11 + $0x44] sm:$0xf]  ;;  %v5336_v14 = vld [vmem:[#allocation11 + $0x48] sm:$0xf0] }
 0x4e3   :  { %v6830_v30 = vadd.f32 %v2307_v2, %v2295_v20  ;;  %v5175_v2 = vor.u32 %v5815_v18, %v5174_v17  ;;  %v5814_v20 = vld [vmem:[#allocation10 + $0x4] sm:$0xf]  ;;  %3401 = vmatpush.bf16.msra.mxu1 %v5299_v19  ;;  %v5339_v19 = vor.u32 %v5854_v36, %v5336_v14  ;;  %v5422_v36 = vld [vmem:[#allocation11 + $0xf0] sm:$0xf] }
 0x4e4   :  { %v5179_v25 = vor.u32 %v5814_v20, %v5176_v21  ;;  %v5837_v20 = vld [vmem:[#allocation10 + $0xb4] sm:$0xf0]  ;;  %v5836_v21 = vld [vmem:[#allocation10 + $0xb4] sm:$0xf] }
 0x4e5   :  { %2312 = vrot.lane.b32.xlu2 %v6830_v30, %s6117_s29  ;;  %3369 = vmatpush.bf16.msra.mxu2 %v5175_v2  ;;  %v5262_v2 = vld [vmem:[#allocation10 + $0xb0] sm:$0xf] }
 0x4e6   :  { %3395 = vmatpush.bf16.msra.mxu0 %v5179_v25  ;;  %v5263_v22 = vor.u32 %v5837_v20, %v5262_v2  ;;  %v5264_v25 = vld [vmem:[#allocation10 + $0xb8] sm:$0xf0]  ;;  %v5302_v2 = vld [vmem:[#allocation11] sm:$0xf] }
 0x4e7   :  { %v5267_v27 = vor.u32 %v5836_v21, %v5264_v25  ;;  %v5847_v21 = vld [vmem:[#allocation11 + $0x4] sm:$0xf0]  ;;  %v5304_v25 = vld [vmem:[#allocation11 + $0x8] sm:$0xf0] }
 0x4e8   :  { %v2296_v42 = vpop.f32.mrf.mxu0  ;;  %v2309_v11 = vpop.f32.mrf.mxu1  ;;  %3379 = vmatpush.bf16.msra.mxu3 %v5263_v22  ;;  %v5846_v22 = vld [vmem:[#allocation11 + $0x4] sm:$0xf] }
 0x4e9   :  { %v5288_v42 = vld [vmem:[#allocation10 + $0xe8] sm:$0xf0]  ;;  %3614 = vmatpush.bf16.msrb.mxu2 %v5359_v31  ;;  %v5852_v31 = vld [vmem:[#allocation11 + $0x34] sm:$0xf] }
 0x4ea   :  { %3640 = vmatpush.bf16.msrb.mxu0 %v5363_v34  ;;  %v5291_v11 = vor.u32 %v5842_v29, %v5288_v42  ;;  %v5327_v34 = vor.u32 %v5853_v38, %v5326_v24  ;;  %v5331_v15 = vor.u32 %v5852_v31, %v5328_v60  ;;  %v5254_v29 = vld [vmem:[#allocation10 + $0xa0] sm:$0xf]  ;;  %v5834_v42 = vld [vmem:[#allocation10 + $0xa4] sm:$0xf]  ;;  %v5303_v31 = vor.u32 %v5847_v21, %v5302_v2  ;;  %v5374_v21 = vld [vmem:[#allocation11 + $0x90] sm:$0xf] }
 0x4eb   :  { %v5259_v44 = vor.u32 %v5834_v42, %v5256_v43  ;;  %v5414_v60 = vld [vmem:[#allocation11 + $0xe0] sm:$0xf]  ;;  %v5416_v42 = vld [vmem:[#allocation11 + $0xe8] sm:$0xf0] }
 0x4ec   :  { %3402 = vmatpush.bf16.msra.mxu1 %v5291_v11  ;;  %v5255_v11 = vor.u32 %v5835_v37, %v5254_v29  ;;  %v5874_v29 = vld [vmem:[#allocation11 + $0xe4] sm:$0xf] }
 0x4ed   :  { %3615 = vmatpush.bf16.msrb.mxu2 %v5351_v40  ;;  %v5851_v40 = vld [vmem:[#allocation11 + $0x24] sm:$0xf0] }
 0x4ee   :  { %3641 = vmatpush.bf16.msrb.mxu0 %v5355_v54  ;;  %3380 = vmatpush.bf16.msra.mxu3 %v5255_v11  ;;  %v5319_v54 = vor.u32 %v5851_v40, %v5318_v45  ;;  %v5419_v11 = vor.u32 %v5874_v29, %v5416_v42  ;;  %v5406_v40 = vld [vmem:[#allocation11 + $0xd0] sm:$0xf]  ;;  %v5368_v42 = vld [vmem:[#allocation11 + $0x88] sm:$0xf0] }
 0x4f0   :  { %v6834_v63 = vpop.f32.mrf.mxu0  ;;  %v6836_v0 = vpop.f32.mrf.mxu1  ;;  %3403 = vmatpush.bf16.msra.mxu1 %v5283_v41  ;;  %v5247_v41 = vor.u32 %v5833_v58, %v5246_v57  ;;  %v5407_v57 = vor.u32 %v5873_v48, %v5406_v40  ;;  %v5408_v58 = vld [vmem:[#allocation11 + $0xd8] sm:$0xf0] }
 0x4f1   :  { %3616 = vmatpush.bf16.msrb.mxu2 %v5343_v4  ;;  %v5310_v4 = vld [vmem:[#allocation11 + $0x10] sm:$0xf]  ;;  %v2974_v43 = vadd.f32 %v6834_v63, %v6734_v56  ;;  %v5870_v56 = vld [vmem:[#allocation11 + $0xc4] sm:$0xf] }
 0x4f2   :  { %3642 = vmatpush.bf16.msrb.mxu0 %v5347_v5  ;;  %v5848_v5 = vld [vmem:[#allocation11 + $0x14] sm:$0xf]  ;;  %3381 = vmatpush.bf16.msra.mxu3 %v5247_v41  ;;  %v5311_v32 = vor.u32 %v5849_v26, %v5310_v4  ;;  %v5400_v4 = vld [vmem:[#allocation11 + $0xc8] sm:$0xf0] }
 0x4f3   :  { %v2987_v41 = vadd.f32 %v6836_v0, %v2974_v43  ;;  %v5403_v26 = vor.u32 %v5870_v56, %v5400_v4  ;;  %v5390_v0 = vld [vmem:[#allocation11 + $0xb0] sm:$0xf] }
 0x4f5   :  { %3617 = vmatpush.bf16.msrb.mxu2 %v5335_v12  ;;  %v5877_v12 = vld [vmem:[#allocation11 + $0xf4] sm:$0xf0] }
 0x4f6   :  { %3643 = vmatpush.bf16.msrb.mxu0 %v5339_v19  ;;  %v5424_v19 = vld [vmem:[#allocation11 + $0xf8] sm:$0xf0] }
 0x4f8   :  { %v2975_v35 = vpop.f32.mrf.mxu0  ;;  %v2988_v8 = vpop.f32.mrf.mxu1 }
 0x4f9   :  { %v5272_v35 = vld [vmem:[#allocation10 + $0xc8] sm:$0xf0]  ;;  %3618 = vmatpush.bf16.msrb.mxu2 %v5327_v34  ;;  %v5307_v34 = vor.u32 %v5846_v22, %v5304_v25  ;;  %v5865_v22 = vld [vmem:[#allocation11 + $0x94] sm:$0xf0]  ;;  %v5864_v25 = vld [vmem:[#allocation11 + $0x94] sm:$0xf] }
 0x4fa   :  { %v5275_v8 = vor.u32 %v5838_v62, %v5272_v35  ;;  %3644 = vmatpush.bf16.msrb.mxu0 %v5331_v15  ;;  %v5315_v62 = vor.u32 %v5848_v5, %v5312_v6  ;;  %v5831_v35 = vld [vmem:[#allocation10 + $0x84] sm:$0xf0]  ;;  %v3146_v5 = vmul.f32 %v2987_v41, %v6801_v39 }
 0x4fb   :  { %v5239_v9 = vor.u32 %v5831_v35, %v5238_v7  ;;  %v5875_v15 = vld [vmem:[#allocation11 + $0xe4] sm:$0xf0] }
 0x4fc   :  { %3404 = vmatpush.bf16.msra.mxu1 %v5275_v8  ;;  %v5830_v8 = vld [vmem:[#allocation10 + $0x84] sm:$0xf]  ;;  %v5415_v37 = vor.u32 %v5875_v15, %v5414_v60  ;;  %v5863_v60 = vld [vmem:[#allocation11 + $0x84] sm:$0xf0] }
 0x4fd   :  { %3619 = vmatpush.bf16.msrb.mxu2 %v5319_v54  ;;  %v5243_v14 = vor.u32 %v5830_v8, %v5240_v10  ;;  %3382 = vmatpush.bf16.msra.mxu3 %v5239_v9  ;;  %v5872_v54 = vld [vmem:[#allocation11 + $0xd4] sm:$0xf]  ;;  %v5392_v8 = vld [vmem:[#allocation11 + $0xb8] sm:$0xf0] }
 0x4fe   :  { %3645 = vmatpush.bf16.msrb.mxu0 %v5323_v1  ;;  %v5411_v1 = vor.u32 %v5872_v54, %v5408_v58 }
 0x500   :  { %v6838_v50 = vpop.f32.mrf.mxu1  ;;  %v6840_v53 = vpop.f32.mrf.mxu0  ;;  %3405 = vmatpush.bf16.msra.mxu1 %v5267_v27  ;;  %v6845_v27 = vld [vmem:[%s6946_s16] sm:$0xf] }
 0x501   :  { %3620 = vmatpush.bf16.msrb.mxu2 %v5311_v32  ;;  %v2429_v24 = vperm.slane %v6845_v27, 2  ;;  %v2430_v40 = vperm.slane %v6845_v27, 3 }
 0x502   :  { %3646 = vmatpush.bf16.msrb.mxu0 %v5315_v62  ;;  %v5869_v62 = vld [vmem:[#allocation11 + $0xb4] sm:$0xf0] }
 0x503   :  { %v5391_v35 = vor.u32 %v5869_v62, %v5390_v0  ;;  %v5893_v62 = vld [vmem:[%s6951_s21 + $0x78] sm:$0xff] }
 0x504   :  { %3406 = vmatpush.bf16.msra.mxu1 %v5259_v44 }
 0x505   :  { %3621 = vmatpush.bf16.msrb.mxu2 %v5303_v31  ;;  %v5376_v31 = vld [vmem:[#allocation11 + $0x98] sm:$0xf0] }
 0x506   :  { %3647 = vmatpush.bf16.msrb.mxu0 %v5307_v34  ;;  %v5366_v34 = vld [vmem:[#allocation11 + $0x80] sm:$0xf]  ;;  %v5379_v29 = vor.u32 %v5864_v25, %v5376_v31 }
 0x507   :  { %v5367_v43 = vor.u32 %v5863_v60, %v5366_v34  ;;  %v3196_v60 = vld [vmem:[%s6948_s18] sm:$0x3] }
 0x508   :  { %v3001_v17 = vpop.f32.mrf.mxu1  ;;  %v3040_v18 = vpop.f32.mrf.mxu0  ;;  %3407 = vmatpush.bf16.msra.mxu1 %v5251_v23  ;;  %v5871_v23 = vld [vmem:[#allocation11 + $0xc4] sm:$0xf0] }
 0x509   :  { %v5423_v17 = vor.u32 %v5877_v12, %v5422_v36  ;;  %v5876_v18 = vld [vmem:[#allocation11 + $0xf4] sm:$0xf]  ;;  %v5867_v36 = vld [vmem:[#allocation11 + $0xa4] sm:$0xf0]  ;;  %v5866_v12 = vld [vmem:[#allocation11 + $0xa4] sm:$0xf] }
 0x50a   :  { %v5427_v20 = vor.u32 %v5876_v18, %v5424_v19  ;;  %v5384_v18 = vld [vmem:[#allocation11 + $0xa8] sm:$0xf0]  ;;  %v2428_v19 = vperm.slane %v6845_v27, 1 }
 0x50b   :  { %3627 = vmatpush.bf16.msrb.mxu3 %v5423_v17  ;;  %v5387_v2 = vor.u32 %v5866_v12, %v5384_v18  ;;  %v5887_v18 = vld [vmem:[%s6951_s21 + $0x48] sm:$0xff] }
 0x50c   :  { %3408 = vmatpush.bf16.msra.mxu1 %v5243_v14  ;;  %v3000_v15 = vadd.f32 %v6838_v50, %v2428_v19  ;;  %v3104_v50 = vadd.f32 %v6742_v51, %v2430_v40 }
 0x50e   :  { %v3013_v48 = vadd.f32 %v6738_v47, %v3000_v15 }
 0x50f   :  { %3628 = vmatpush.bf16.msrb.mxu3 %v5415_v37  ;;  %v5862_v37 = vld [vmem:[#allocation11 + $0x84] sm:$0xf] }
 0x510   :  { %v3051_v59 = vpop.f32.mrf.mxu0  ;;  %3653 = vmatpush.bf16.msrb.mxu1 %v5427_v20 }
 0x511   :  { %v3052_v44 = vadd.f32 %v3051_v59, %v2429_v24  ;;  %v5399_v59 = vor.u32 %v5871_v23, %v5398_v3 }
 0x513   :  { %3629 = vmatpush.bf16.msrb.mxu3 %v5407_v57  ;;  %v3026_v57 = vadd.f32 %v6736_v46, %v3013_v48 }
 0x514   :  { %3654 = vmatpush.bf16.msrb.mxu1 %v5419_v11  ;;  %v3154_v11 = vmul.f32 %v2987_v41, %v6809_v16 }
 0x517   :  { %3630 = vmatpush.bf16.msrb.mxu3 %v5399_v59 }
 0x518   :  { %v3053_v38 = vpop.f32.mrf.mxu0  ;;  %3655 = vmatpush.bf16.msrb.mxu1 %v5411_v1 }
 0x519   :  { %v5375_v38 = vor.u32 %v5865_v22, %v5374_v21  ;;  %v5886_v21 = vld [vmem:[%s6951_s21 + $0x40] sm:$0xff]  ;;  %v5879_v22 = vld [vmem:[%s6951_s21 + $0x8] sm:$0xff] }
 0x51b   :  { %3631 = vmatpush.bf16.msrb.mxu3 %v5391_v35 }
 0x51c   :  { %3656 = vmatpush.bf16.msrb.mxu1 %v5403_v26 }
 0x520   :  { %v3064_v45 = vpop.f32.mrf.mxu1 }
 0x521   :  { %v3065_v55 = vadd.f32 %v3064_v45, %v3052_v44  ;;  %v5371_v44 = vor.u32 %v5862_v37, %v5368_v42  ;;  %v3199_v42 = vperm.slane %v3196_v60, 1 }
 0x523   :  { %v3078_v28 = vadd.f32 %v6744_v52, %v3065_v55  ;;  %v5868_v52 = vld [vmem:[#allocation11 + $0xb4] sm:$0xf] }
 0x524   :  { %v5395_v9 = vor.u32 %v5868_v52, %v5392_v8  ;;  %v5891_v52 = vld [vmem:[%s6951_s21 + $0x68] sm:$0xff]  ;;  %v5890_v8 = vld [vmem:[%s6951_s21 + $0x60] sm:$0xff] }
 0x525   :  { %v3091_v63 = vadd.f32 %v6740_v49, %v3078_v28  ;;  %v5382_v49 = vld [vmem:[#allocation11 + $0xa0] sm:$0xf]  ;;  %v3039_v28 = vadd.f32 %v6840_v53, %v3026_v57 }
 0x526   :  { %3657 = vmatpush.bf16.msrb.mxu1 %v5395_v9  ;;  %v5383_v17 = vor.u32 %v5867_v36, %v5382_v49  ;;  %v5883_v9 = vld [vmem:[%s6951_s21 + $0x28] sm:$0xff]  ;;  %v5882_v36 = vld [vmem:[%s6951_s21 + $0x20] sm:$0xff] }
 0x527   :  { %v3148_v32 = vmul.f32 %v3091_v63, %v6799_v61  ;;  %v3156_v24 = vmul.f32 %v3091_v63, %v6805_v13  ;;  %v3147_v47 = vmul.f32 %v3039_v28, %v6801_v39 }
 0x528   :  { %v3066_v6 = vpop.f32.mrf.mxu1  ;;  %3632 = vmatpush.bf16.msrb.mxu3 %v5383_v17  ;;  %v5881_v17 = vld [vmem:[%s6951_s21 + $0x18] sm:$0xff] }
 0x529   :  { %v3150_v7 = vadd.f32 %v3148_v32, %v3146_v5  ;;  %v3158_v45 = vadd.f32 %v3156_v24, %v3154_v11  ;;  %v5878_v24 = vld [vmem:[%s6951_s21] sm:$0xff] }
 0x52a   :  { %3658 = vmatpush.bf16.msrb.mxu1 %v5387_v2  ;;  %v5880_v2 = vld [vmem:[%s6951_s21 + $0x10] sm:$0xff] }
 0x52b   :  { %v3152_v10 = vmax.f32 %v3150_v7, 0.0  ;;  %v3160_v55 = vmax.f32 %v3158_v45, 0.0  ;;  %v5884_v7 = vld [vmem:[%s6951_s21 + $0x30] sm:$0xff]  ;;  %v3198_v45 = vperm.slane %v3196_v60, 0 }
 0x52c   :  { %3633 = vmatpush.bf16.msrb.mxu3 %v5375_v38 }
 0x52d   :  { %v3162_v14 = vpack.c.bf16 %v3152_v10, %v3152_v10  ;;  %v3414_v1 = vpack.c.bf16 %v3160_v55, %v3160_v55  ;;  %v5889_v10 = vld [vmem:[%s6951_s21 + $0x58] sm:$0xff] }
 0x52e   :  { %3659 = vmatpush.bf16.msrb.mxu1 %v5379_v29  ;;  %v3448_v29 = vld [vmem:[%s6950_s20] sm:$0x3] }
 0x52f   :  { %3370 = vmatmul.bf16.vlgmr.msra.gmra.mxu2 %v3162_v14  ;;  %3396 = vmatmul.bf16.vlgmr.msra.gmra.mxu0 %v3162_v14  ;;  %v5888_v14 = vld [vmem:[%s6951_s21 + $0x50] sm:$0xff]  ;;  %v3451_v11 = vperm.slane %v3448_v29, 1 }
 0x530   :  { %v3116_v20 = vpop.f32.mrf.mxu0  ;;  %3634 = vmatpush.bf16.msrb.mxu3 %v5367_v43 }
 0x531   :  { %v3117_v58 = vadd.f32 %v3116_v20, %v3104_v50  ;;  %v3450_v50 = vperm.slane %v3448_v29, 0 }
 0x532   :  { %3660 = vmatpush.bf16.msrb.mxu1 %v5371_v44 }
 0x538   :  { %v3118_v54 = vpop.f32.mrf.mxu0 }
 0x53f   :  { %3622 = vmatmul.bf16.vlgmr.msrb.gmra.mxu2 %v3414_v1  ;;  %3648 = vmatmul.bf16.vlgmr.msrb.gmra.mxu0 %v3414_v1  ;;  %v2313_v56 = vpop.permute.xlu2 %2312 }
 0x540   :  { %v3129_v41 = vpop.f32.mrf.mxu1  ;;  %v2315_v63 = vsub.f32 %v6830_v30, %v2313_v56 }
 0x541   :  { %v3130_v3 = vadd.f32 %v3129_v41, %v3117_v58 }
 0x542   :  { %v2316_v59 = vmul.f32 1.442695, %v2315_v63 }
 0x543   :  { %v3143_v27 = vadd.f32 %v6746_v33, %v3130_v3  ;;  %v3155_v33 = vmul.f32 %v3039_v28, %v6809_v16  ;;  %v5885_v16 = vld [vmem:[%s6951_s21 + $0x38] sm:$0xff] }
 0x544   :  { %5922 = vpow2.f32 %v2316_v59  ;;  %3818 = vmatpush.bf16.msra.mxu2 %v5885_v16 }
 0x545   :  { %v3149_v23 = vmul.f32 %v3143_v27, %v6799_v61  ;;  %v3157_v53 = vmul.f32 %v3143_v27, %v6805_v13  ;;  %v5892_v13 = vld [vmem:[%s6951_s21 + $0x70] sm:$0xff]  ;;  %s6978_s21 = sld [smem:[#allocation27_spill]] }
 0x547   :  { %v3151_v51 = vadd.f32 %v3149_v23, %v3147_v47  ;;  %v3159_v39 = vadd.f32 %v3157_v53, %v3155_v33 }
 0x548   :  { %v3131_v46 = vpop.f32.mrf.mxu1  ;;  %3819 = vmatpush.bf16.msra.mxu2 %v5884_v7 }
 0x549   :  { %v3153_v4 = vmax.f32 %v3151_v51, 0.0  ;;  %v3161_v61 = vmax.f32 %v3159_v39, 0.0 }
 0x54a   :  { %v5923_v5 = vpop.eup %5922 }
 0x54b   :  { %v3163_v26 = vpack.c.bf16 %v3153_v4, %v3153_v4  ;;  %v2318_v32 = vadd.f32 1.0, %v5923_v5  ;;  %v3415_v0 = vpack.c.bf16 %v3161_v61, %v3161_v61  ;;  %v5917_v39 = vld [vmem:[%s6978_s21] ss:$0 sm:$0xff] }
 0x54c   :  { %3820 = vmatpush.bf16.msra.mxu2 %v5883_v9 }
 0x54d   :  { %3383 = vmatmul.bf16.vlgmr.msra.gmra.mxu3 %v3163_v26  ;;  %3409 = vmatmul.bf16.vlgmr.msra.gmra.mxu1 %v3163_v26  ;;  %5924 = vrcp.f32 %v2318_v32 }
 0x54e   :  { %3831 = vmatpush.bf16.msra.mxu3 %v5893_v62 }
 0x550   :  { %3821 = vmatpush.bf16.msra.mxu2 %v5882_v36 }
 0x552   :  { %3832 = vmatpush.bf16.msra.mxu3 %v5892_v13 }
 0x553   :  { %v5925_v6 = vpop.eup %5924 }
 0x554   :  { %3668 = vperm.xlu1 %5913, %v5925_v6   ;;  %v2320_v30 = vsub.f32 1.0, %v5925_v6  ;;  %3822 = vmatpush.bf16.msra.mxu2 %v5881_v17 }
 0x556   :  { %3675 = vperm.xlu2 %5914, %v2320_v30   ;;  %3833 = vmatpush.bf16.msra.mxu3 %v5891_v52 }
 0x558   :  { %3823 = vmatpush.bf16.msra.mxu2 %v5880_v2 }
 0x55a   :  { %3834 = vmatpush.bf16.msra.mxu3 %v5890_v8 }
 0x55c   :  { %3824 = vmatpush.bf16.msra.mxu2 %v5879_v22 }
 0x55d   :  { %3635 = vmatmul.bf16.vlgmr.msrb.gmra.mxu3 %v3415_v0  ;;  %3661 = vmatmul.bf16.vlgmr.msrb.gmra.mxu1 %v3415_v0 }
 0x55e   :  { %3835 = vmatpush.bf16.msra.mxu3 %v5889_v10 }
 0x560   :  { %3825 = vmatpush.bf16.msra.mxu2 %v5878_v24 }
 0x562   :  { %3836 = vmatpush.bf16.msra.mxu3 %v5888_v14 }
 0x566   :  { %3837 = vmatpush.bf16.msra.mxu3 %v5887_v18 }
 0x56a   :  { %3838 = vmatpush.bf16.msra.mxu3 %v5886_v21 }
 0x5ac   :  { %v3397_v35 = vpop.f32.mrf.mxu0 }
 0x5ad   :  { %v3398_v43 = vadd.f32 %v3397_v35, %v3199_v42 }
 0x5b0   :  { %v3676_v58 = vpop.permute.xlu2 %3675 }
 0x5b2   :  { %v3371_v49 = vpop.f32.mrf.mxu2 }
 0x5b3   :  { %v3372_v1 = vadd.f32 %v3371_v49, %v3198_v45 }
 0x5b4   :  { %v3399_v12 = vpop.f32.mrf.mxu0 }
 0x5ba   :  { %v3373_v19 = vpop.f32.mrf.mxu2 }
 0x5bc   :  { %v3649_v20 = vpop.f32.mrf.mxu0 }
 0x5bd   :  { %v3650_v40 = vadd.f32 %v3649_v20, %v3451_v11 }
 0x5c2   :  { %v3623_v25 = vpop.f32.mrf.mxu2 }
 0x5c3   :  { %v3624_v3 = vadd.f32 %v3623_v25, %v3450_v50 }
 0x5c4   :  { %v3651_v38 = vpop.f32.mrf.mxu0 }
 0x5c6   :  { %v3669_v54 = vpop.permute.xlu1 %3668 }
 0x5ca   :  { %v3410_v31 = vpop.f32.mrf.mxu1  ;;  %v3625_v34 = vpop.f32.mrf.mxu2 }
 0x5cb   :  { %v3411_v48 = vadd.f32 %v3410_v31, %v3398_v43 }
 0x5cd   :  { %v3672_v41 = vmul.f32 %v3669_v54, %v3411_v48 }
 0x5d0   :  { %v3384_v15 = vpop.f32.mrf.mxu3 }
 0x5d1   :  { %v3385_v27 = vadd.f32 %v3384_v15, %v3372_v1 }
 0x5d2   :  { %v3412_v37 = vpop.f32.mrf.mxu1 }
 0x5d3   :  { %v3671_v59 = vmul.f32 %v3669_v54, %v3385_v27 }
 0x5d8   :  { %v3386_v44 = vpop.f32.mrf.mxu3 }
 0x5da   :  { %v3662_v55 = vpop.f32.mrf.mxu1 }
 0x5db   :  { %v3663_v57 = vadd.f32 %v3662_v55, %v3650_v40 }
 0x5dd   :  { %v3679_v28 = vmul.f32 %v3676_v58, %v3663_v57 }
 0x5df   :  { %v3681_v47 = vadd.f32 %v3679_v28, %v3672_v41 }
 0x5e0   :  { %v3636_v23 = vpop.f32.mrf.mxu3 }
 0x5e1   :  { %v3683_v56 = vmax.f32 %v3681_v47, 0.0  ;;  %v3637_v63 = vadd.f32 %v3636_v23, %v3624_v3 }
 0x5e2   :  { %v3664_v51 = vpop.f32.mrf.mxu1 }
 0x5e3   :  { %v3685_v46 = vpack.c.bf16 %v3683_v56, %v3683_v56  ;;  %v3678_v4 = vmul.f32 %v3676_v58, %v3637_v63 }
 0x5e5   :  { %v3680_v26 = vadd.f32 %v3678_v4, %v3671_v59  ;;  %3839 = vmatmul.bf16.vlgmr.msra.gmra.mxu3 %v3685_v46 }
 0x5e7   :  { %v3682_v53 = vmax.f32 %v3680_v26, 0.0 }
 0x5e8   :  { %v3638_v5 = vpop.f32.mrf.mxu3 }
 0x5e9   :  { %v3684_v33 = vpack.c.bf16 %v3682_v53, %v3682_v53 }
 0x5eb   :  { %3826 = vmatmul.bf16.vlgmr.msra.gmra.mxu2 %v3684_v33 }
 0x668   :  { %v3840_v32 = vpop.f32.mrf.mxu3 }
 0x66e   :  { %v3827_v61 = vpop.f32.mrf.mxu2 }
 0x66f   :  { %v3828_v6 = vadd.f32 %v5917_v39, %v3827_v61 }
 0x670   :  { %v3842_v30 = vpop.f32.mrf.mxu3 }
 0x671   :  { %v3841_v0 = vadd.f32 %v3840_v32, %v3828_v6 }
 0x673   :  { %3845 = vst.msk [vmem:[#allocation13] sm:$0xff] %vm3844_vm4, %v3841_v0 }
 0x674   :  { %3856 = dma.vmem_to_hbm [thread:$0]  %s3852_s8, 128, %s3854_s10, [#allocation4]  }
 0x676   :  { %v3829_v62 = vpop.f32.mrf.mxu2 }
 0x677   :  { %6104 = dma.done.wait [#allocation4], 128  }
 0x678   :  { %6105 = vsyncadd [#allocation4], 4294967168 }
 0x679   :  { %3861 = vsyncpa [#allocation3], 1 }
 0x67a   :  { %3862 = vsyncpa [#allocation6], 1 }
 0x67b   :  { %3863 = vsyncpa [#allocation9], 1 }
 0x67c   :  { %3864 = vsyncpa [#allocation12], 1 }
 0x67d   :  { %3865 = vsyncpa [#allocation4], 1 }

</bundles_post_ra>
